<compile_context>
chip_gen: v6e
topology: v6e:2x2x1
jax: 0.10.0
libtpu: 0.0.40
codegen_flags: <defaults>
</compile_context>

<pallas_src>
import functools

import jax
import jax.numpy as jnp
from jax.experimental import pallas as pl
from jax.experimental.pallas import tpu as pltpu

# -------------------- config (small, consistent with the module) ------------
B, S = 2, 8              # batch, seq_len
E = 16                   # embed_dim
CATE_COLS = 3            # len(args.cate_cols)
CONT_COLS = 4            # len(args.cont_cols)
H = 32                   # hidden_dim
NH = 4                   # n_heads
NL = 2                   # n_layers (LSTM)
OFFSET = 20              # args.offset (cate vocab)
F32 = jnp.float32
LN_EPS = 1e-5
NEG_BIG = -1e30          # finite "-inf": fully-masked rows stay NaN-free

# Row layout of the packed [24, H] bias/LayerNorm stack (grouped by phase,
# padded to a multiple of 8 sublanes).
(B_CP, G_CP, BE_CP, B_CE, G_CE, BE_CE, B_CB, G_CB,       # group A: encoder
 BE_CB, B_O, G1, BE1, B_F1, B_F2, G2, BE2,               # group B: attn / ffn
 W_FC, BFC) = range(18)                                  # group C: fc head
VEC_ROWS = 24

# Slice layout of the packed [5, H, H] matmul-weight stack.
(WH_CB_TOP, WH_CB_BOT, WH_O, WH_F1, WH_F2) = range(5)


def _vspec():
    return pl.BlockSpec(memory_space=pltpu.MemorySpace.VMEM)


def _ln(x, g, b):
    m = jnp.mean(x, axis=-1, keepdims=True)
    v = jnp.mean((x - m) ** 2, axis=-1, keepdims=True)
    return (x - m) * jax.lax.rsqrt(v + LN_EPS) * g + b


# -------------------- fused forward kernel ----------------------------------
def lastquery_kernel(cate_ref, cont_ref, mask_ref,
                     w_cp_ref, w_ce_ref, w_hh_ref,
                     w_qkv_ref, b_qkv_ref, seg_ref, segt_ref,
                     vec_ref, w_lstm_ref, b_lstm_ref,
                     out_ref, *, n_heads):
    b, s = mask_ref.shape
    h = w_hh_ref.shape[1]
    nh = n_heads
    hd = h // nh
    m = b * s

    vec = vec_ref[...]                       # one aligned [24, H] load

    def vp(i):                               # [1, H] row of the bias/LN stack
        return vec[i:i + 1, :]

    def mm(x, w):
        return jnp.dot(x, w, preferred_element_type=F32)

    # ---------------- encoder: cate_proj / cont_embed / comb_proj -----------
    # (BatchNorm eval-mode already folded into w_ce / b_ce in the wrapper.)
    cate_h = _ln(mm(cate_ref[...], w_cp_ref[...]) + vp(B_CP), vp(G_CP), vp(BE_CP))
    cont_h = _ln(mm(cont_ref[...], w_ce_ref[...]) + vp(B_CE), vp(G_CE), vp(BE_CE))
    # ReLU(concat(a, b)) @ W_cb == ReLU(a) @ W_top + ReLU(b) @ W_bot
    comb = (mm(jnp.maximum(cate_h, 0.0), w_hh_ref[WH_CB_TOP]) +
            mm(jnp.maximum(cont_h, 0.0), w_hh_ref[WH_CB_BOT]) + vp(B_CB))
    embed_f = _ln(comb, vp(G_CB), vp(BE_CB))                      # [M, H]
    embed = embed_f.reshape(b, s, h)                              # [B, S, H]

    # ---------------- last-query multi-head attention -----------------------
    # Composite q/k/v (self.{query,key,value} folded with MHA in_proj) fused
    # into a single [M,H] x [H,3H] matmul.
    qkv = mm(embed_f, w_qkv_ref[...]) + b_qkv_ref[...]            # [M, 3H]
    qkv3 = qkv.reshape(b, s, 3 * h)
    q = qkv3[:, s - 1, 0:h] * (hd ** -0.5)                        # [B, H]
    k3 = qkv3[:, :, h:2 * h]                                      # [B, S, H]
    v3 = qkv3[:, :, 2 * h:3 * h]                                  # [B, S, H]

    # scores[b,s,n] = sum_{d in head n} Q[b,d] * K[b,s,d]  (segmented reduce
    # on the MXU via the precomputed one-hot seg matrix).
    prod = q[:, None, :] * k3                                     # [B, S, H]
    scores = mm(prod.reshape(m, h), seg_ref[...]).reshape(b, s, nh)
    # key-padding mask (mask == 0 -> -1e30), same as get_mask + masked_fill
    neg = jnp.where(mask_ref[...] == 0.0, jnp.float32(NEG_BIG), jnp.float32(0.0))
    scores = scores + neg[:, :, None]
    scores = scores - jnp.max(scores, axis=1, keepdims=True)      # softmax over seq
    p = jnp.exp(scores)
    p = p * pl.reciprocal(jnp.sum(p, axis=1, keepdims=True), approx=True)
    # expand per-head weights back to per-lane and contract over the sequence
    p_full = mm(p.reshape(m, nh), segt_ref[...]).reshape(b, s, h)
    ctx = jnp.sum(p_full * v3, axis=1)                            # [B, H]
    attn = mm(ctx, w_hh_ref[WH_O]) + vp(B_O)                      # [B, H]

    out1 = _ln(embed + attn[:, None, :], vp(G1), vp(BE1))         # residual + ln1
    ff = jnp.maximum(mm(out1.reshape(m, h), w_hh_ref[WH_F1]) + vp(B_F1), 0.0)
    ff = mm(ff, w_hh_ref[WH_F2]) + vp(B_F2)
    out2 = _ln(embed + ff.reshape(b, s, h), vp(G2), vp(BE2))      # residual + ln2

    # ---------------- 2-layer LSTM, wavefront-interleaved -------------------
    # Gates packed as (i, f, o | g): one sigmoid over 3H lanes + one tanh per
    # step -> 2 EUP pushes on the recurrence chain instead of 4.
    def lstm_cell(gates, cs):
        sg = jax.nn.sigmoid(gates[:, 0:3 * h])
        gg = jnp.tanh(gates[:, 3 * h:4 * h])
        ig, fg, og = sg[:, 0:h], sg[:, h:2 * h], sg[:, 2 * h:3 * h]
        cs_new = fg * cs + ig * gg
        hs_new = og * jnp.tanh(cs_new)
        return hs_new, cs_new

    # Layer-0 input projection hoisted out of the recurrence (one big matmul).
    gin0 = (mm(out2.reshape(m, h), w_lstm_ref[0]) +
            b_lstm_ref[0:1, :]).reshape(b, s, 4 * h)
    b1 = b_lstm_ref[1:2, :]
    h0 = jnp.zeros((b, h), F32); c0 = jnp.zeros((b, h), F32)
    h1 = jnp.zeros((b, h), F32); c1 = jnp.zeros((b, h), F32)
    g1_in = None
    ys = []
    # Wavefront: iteration u runs layer-1 step u-1 (needs only h0_{u-1}) and
    # layer-0 step u, so the two recurrence chains overlap.
    for u in range(s + 1):                                        # static unroll
        if u >= 1:
            h1, c1 = lstm_cell(g1_in + mm(h1, w_lstm_ref[3]), c1)
            ys.append(h1)
        if u < s:
            h0, c0 = lstm_cell(gin0[:, u, :] + mm(h0, w_lstm_ref[1]), c0)
            g1_in = mm(h0, w_lstm_ref[2]) + b1
    y1 = jnp.stack(ys, axis=1)                                    # [B, S, H]

    # ---------------- fc + sigmoid (lane-dense [B, S] output) ---------------
    logits = jnp.sum(y1 * vp(W_FC), axis=-1) + vec[BFC:BFC + 1, 0:1]
    out_ref[...] = jax.nn.sigmoid(logits)


# -------------------- parameter init (deterministic, PyTorch-like) ----------
def init_params(key):
    ks = iter(jax.random.split(key, 64))

    def w(shape, scale=0.1):
        return jax.random.normal(next(ks), shape, F32) * scale

    p = {}
    emb = w((OFFSET, E))
    p['cate_embed'] = emb.at[0].set(0.0)              # padding_idx=0
    p['w_cp'] = w((E * CATE_COLS, H)); p['b_cp'] = w((1, H), 0.01)
    p['g_cp'] = jnp.ones((1, H), F32); p['be_cp'] = jnp.zeros((1, H), F32)
    p['w_ce'] = w((CONT_COLS, H)); p['b_ce'] = w((1, H), 0.01)
    p['g_ce'] = jnp.ones((1, H), F32); p['be_ce'] = jnp.zeros((1, H), F32)
    p['w_cb'] = w((2 * H, H)); p['b_cb'] = w((1, H), 0.01)
    p['g_cb'] = jnp.ones((1, H), F32); p['be_cb'] = jnp.zeros((1, H), F32)
    for nm in ('q', 'k', 'v'):
        p[f'w_{nm}'] = w((H, H)); p[f'b_{nm}'] = w((1, H), 0.01)
        p[f'w_i{nm}'] = w((H, H)); p[f'b_i{nm}'] = w((1, H), 0.01)
    p['w_o'] = w((H, H)); p['b_o'] = w((1, H), 0.01)
    p['g1'] = jnp.ones((1, H), F32); p['be1'] = jnp.zeros((1, H), F32)
    p['w_f1'] = w((H, H)); p['b_f1'] = w((1, H), 0.01)
    p['w_f2'] = w((H, H)); p['b_f2'] = w((1, H), 0.01)
    p['g2'] = jnp.ones((1, H), F32); p['be2'] = jnp.zeros((1, H), F32)
    # nn.LSTM: per layer (weight_ih, weight_hh, bias_ih, bias_hh), stored here
    # pre-transposed to [H, 4H] with PyTorch gate order (i, f, g, o).
    p['lstm'] = [(w((H, 4 * H)), w((H, 4 * H)),
                  w((1, 4 * H), 0.01), w((1, 4 * H), 0.01))
                 for _ in range(NL)]
    p['w_fc'] = w((1, H)); p['b_fc'] = w((1, 1), 0.01)
    # BatchNorm1d eval mode: running_mean=0, running_var=1, gamma=1, beta=0.
    p['bn_scale'] = jnp.full((1, CONT_COLS), 1.0 / jnp.sqrt(1.0 + 1e-5), F32)
    p['bn_shift'] = jnp.zeros((1, CONT_COLS), F32)
    return p


# -------------------- parameter packing (done once, outside jit) ------------
def _reorder_gates(x):
    # PyTorch LSTM gate order (i, f, g, o) -> kernel order (i, f, o, g)
    i, f, g, o = jnp.split(x, 4, axis=-1)
    return jnp.concatenate([i, f, o, g], axis=-1)


def pack_params(p):
    # Fold eval-mode BatchNorm into the cont_embed linear.
    w_ce_eff = p['bn_scale'].reshape(-1, 1) * p['w_ce']           # [C, H]
    b_ce_eff = p['bn_shift'] @ p['w_ce'] + p['b_ce']              # [1, H]
    # Fold query/key/value linears with the MHA in_proj, then fuse Q|K|V.
    w_q_c = p['w_q'] @ p['w_iq']; b_q_c = p['b_q'] @ p['w_iq'] + p['b_iq']
    w_k_c = p['w_k'] @ p['w_ik']; b_k_c = p['b_k'] @ p['w_ik'] + p['b_ik']
    w_v_c = p['w_v'] @ p['w_iv']; b_v_c = p['b_v'] @ p['w_iv'] + p['b_iv']
    w_qkv = jnp.concatenate([w_q_c, w_k_c, w_v_c], axis=1)        # [H, 3H]
    b_qkv = jnp.concatenate([b_q_c, b_k_c, b_v_c], axis=1)        # [1, 3H]

    w_hh = jnp.stack([p['w_cb'][:H], p['w_cb'][H:],
                      p['w_o'], p['w_f1'], p['w_f2']], axis=0)    # [5, H, H]

    vec = jnp.concatenate([
        # group A (rows 0..7): encoder biases / LayerNorms
        p['b_cp'], p['g_cp'], p['be_cp'],
        b_ce_eff, p['g_ce'], p['be_ce'],
        p['b_cb'], p['g_cb'],
        # group B (rows 8..15): comb LN tail, attn out, ln1, ffn, ln2
        p['be_cb'], p['b_o'], p['g1'], p['be1'],
        p['b_f1'], p['b_f2'], p['g2'], p['be2'],
        # group C (rows 16..): fc head
        p['w_fc'], jnp.broadcast_to(p['b_fc'], (1, H)),
    ], axis=0)
    vec = jnp.pad(vec, ((0, VEC_ROWS - vec.shape[0]), (0, 0)))    # [24, H]

    # LSTM: gate-reordered to (i,f,o,g); b_ih + b_hh summed per layer.
    w_lstm = jnp.stack([_reorder_gates(p['lstm'][0][0]),
                        _reorder_gates(p['lstm'][0][1]),
                        _reorder_gates(p['lstm'][1][0]),
                        _reorder_gates(p['lstm'][1][1])], axis=0)  # [4, H, 4H]
    b_lstm = jnp.concatenate(
        [_reorder_gates(p['lstm'][0][2] + p['lstm'][0][3]),
         _reorder_gates(p['lstm'][1][2] + p['lstm'][1][3])], axis=0)  # [2, 4H]

    # Per-head one-hot segment matrices (compile-time constants of the config).
    hd = H // NH
    d = jnp.arange(H)
    n = jnp.arange(NH)
    seg = ((d[:, None] // hd) == n[None, :]).astype(F32)          # [H, NH]

    return {'cate_embed': p['cate_embed'], 'w_cp': p['w_cp'], 'w_ce': w_ce_eff,
            'w_hh': w_hh, 'w_qkv': w_qkv, 'b_qkv': b_qkv,
            'seg': seg, 'seg_t': seg.T,
            'vec': vec, 'w_lstm': w_lstm, 'b_lstm': b_lstm}


# -------------------- forward ------------------------------------------------
@jax.jit
def lastquery_forward(packed, cate_x, cont_x, mask):
    bsz, slen = cate_x.shape[0], cate_x.shape[1]
    # Embedding lookup (gather) stays in the JAX wrapper (glue).
    cate_emb = jnp.take(packed['cate_embed'], cate_x, axis=0)     # [B,S,Cc,E]
    cate_flat = cate_emb.reshape(bsz * slen, -1)                  # [M, Cc*E]
    cont_flat = cont_x.reshape(bsz * slen, -1).astype(F32)        # [M, Cc2]
    maskf = mask.astype(F32)                                      # [B, S]

    preds = pl.pallas_call(
        functools.partial(lastquery_kernel, n_heads=NH),
        out_shape=jax.ShapeDtypeStruct((bsz, slen), F32),
        in_specs=[_vspec()] * 13,
        out_specs=_vspec(),
    )(cate_flat, cont_flat, maskf,
      packed['w_cp'], packed['w_ce'], packed['w_hh'],
      packed['w_qkv'], packed['b_qkv'], packed['seg'], packed['seg_t'],
      packed['vec'], packed['w_lstm'], packed['b_lstm'])
    return preds


if __name__ == "__main__":
    root = jax.random.PRNGKey(0)
    kp, k1, k2 = jax.random.split(root, 3)
    params = init_params(kp)
    packed = pack_params(params)

    cate_x = jax.random.randint(k1, (B, S, CATE_COLS), 1, OFFSET)   # int indices
    cont_x = jax.random.normal(k2, (B, S, CONT_COLS), F32)
    # 1 = valid, 0 = padded (first two positions of each row are padding).
    mask = jnp.concatenate(
        [jnp.zeros((B, 2), jnp.int32), jnp.ones((B, S - 2), jnp.int32)], axis=1)

    preds = lastquery_forward(packed, cate_x, cont_x, mask)
    jax.block_until_ready(preds)
    assert preds.shape == (B, S)
    assert bool(jnp.all(jnp.isfinite(preds)))
    print("KERNEL_OK")
</pallas_src>

<mosaic_0001>
module attributes {stable_mosaic.version = 11 : i64} {
  func.func @lastquery_kernel(%arg0: memref<16x48xf32, #tpu.memory_space<vmem>>, %arg1: memref<16x4xf32, #tpu.memory_space<vmem>>, %arg2: memref<2x8xf32, #tpu.memory_space<vmem>>, %arg3: memref<48x32xf32, #tpu.memory_space<vmem>>, %arg4: memref<4x32xf32, #tpu.memory_space<vmem>>, %arg5: memref<5x32x32xf32, #tpu.memory_space<vmem>>, %arg6: memref<32x96xf32, #tpu.memory_space<vmem>>, %arg7: memref<1x96xf32, #tpu.memory_space<vmem>>, %arg8: memref<32x4xf32, #tpu.memory_space<vmem>>, %arg9: memref<4x32xf32, #tpu.memory_space<vmem>>, %arg10: memref<24x32xf32, #tpu.memory_space<vmem>>, %arg11: memref<4x32x128xf32, #tpu.memory_space<vmem>>, %arg12: memref<2x128xf32, #tpu.memory_space<vmem>>, %arg13: memref<2x8xf32, #tpu.memory_space<vmem>>) attributes {dimension_semantics = [], scalar_prefetch = 0 : i64, scratch_operands = 0 : i64, tpu.core_type = #tpu.core_type<tc>} {
    %c0 = arith.constant 0 : index
    %c0_0 = arith.constant 0 : index
    %0 = vector.load %arg10[%c0, %c0_0] : memref<24x32xf32, #tpu.memory_space<vmem>>, vector<24x32xf32>
    %c0_1 = arith.constant 0 : index
    %c0_2 = arith.constant 0 : index
    %1 = vector.load %arg0[%c0_1, %c0_2] : memref<16x48xf32, #tpu.memory_space<vmem>>, vector<16x48xf32>
    %c0_3 = arith.constant 0 : index
    %c0_4 = arith.constant 0 : index
    %2 = vector.load %arg3[%c0_3, %c0_4] : memref<48x32xf32, #tpu.memory_space<vmem>>, vector<48x32xf32>
    %cst = arith.constant dense<0.000000e+00> : vector<16x32xf32>
    %3 = tpu.matmul %1, %2, %cst {dimension_numbers = #tpu.dot_dimension_numbers<[1], [0], [0], [1], [0, 0, 1, 1], [], []>} : vector<16x48xf32>, vector<48x32xf32>, vector<16x32xf32> -> vector<16x32xf32>
    %4 = vector.extract_strided_slice %0 {offsets = [0, 0], sizes = [1, 32], strides = [1, 1]} : vector<24x32xf32> to vector<1x32xf32>
    %5 = vector.broadcast %4 : vector<1x32xf32> to vector<16x32xf32>
    %6 = arith.addf %3, %5 : vector<16x32xf32>
    %7 = vector.extract_strided_slice %0 {offsets = [1, 0], sizes = [1, 32], strides = [1, 1]} : vector<24x32xf32> to vector<1x32xf32>
    %8 = vector.extract_strided_slice %0 {offsets = [2, 0], sizes = [1, 32], strides = [1, 1]} : vector<24x32xf32> to vector<1x32xf32>
    %cst_5 = arith.constant dense<0.000000e+00> : vector<16xf32>
    %9 = vector.multi_reduction <add>, %6, %cst_5 [1] : vector<16x32xf32> to vector<16xf32>
    %10 = vector.shape_cast %9 : vector<16xf32> to vector<16x1xf32>
    %cst_6 = arith.constant 3.200000e+01 : f32
    %11 = vector.broadcast %cst_6 : f32 to vector<16x1xf32>
    %12 = arith.divf %10, %11 : vector<16x1xf32>
    %13 = vector.broadcast %12 : vector<16x1xf32> to vector<16x32xf32>
    %14 = arith.subf %6, %13 : vector<16x32xf32>
    %15 = arith.mulf %14, %14 : vector<16x32xf32>
    %cst_7 = arith.constant dense<0.000000e+00> : vector<16xf32>
    %16 = vector.multi_reduction <add>, %15, %cst_7 [1] : vector<16x32xf32> to vector<16xf32>
    %17 = vector.shape_cast %16 : vector<16xf32> to vector<16x1xf32>
    %cst_8 = arith.constant 3.200000e+01 : f32
    %18 = vector.broadcast %cst_8 : f32 to vector<16x1xf32>
    %19 = arith.divf %17, %18 : vector<16x1xf32>
    %20 = vector.broadcast %12 : vector<16x1xf32> to vector<16x32xf32>
    %21 = arith.subf %6, %20 : vector<16x32xf32>
    %cst_9 = arith.constant 9.99999974E-6 : f32
    %22 = vector.broadcast %cst_9 : f32 to vector<16x1xf32>
    %23 = arith.addf %19, %22 : vector<16x1xf32>
    %24 = math.rsqrt %23 : vector<16x1xf32>
    %25 = vector.broadcast %24 : vector<16x1xf32> to vector<16x32xf32>
    %26 = arith.mulf %21, %25 : vector<16x32xf32>
    %27 = vector.broadcast %7 : vector<1x32xf32> to vector<16x32xf32>
    %28 = arith.mulf %26, %27 : vector<16x32xf32>
    %29 = vector.broadcast %8 : vector<1x32xf32> to vector<16x32xf32>
    %30 = arith.addf %28, %29 : vector<16x32xf32>
    %c0_10 = arith.constant 0 : index
    %c0_11 = arith.constant 0 : index
    %31 = vector.load %arg1[%c0_10, %c0_11] : memref<16x4xf32, #tpu.memory_space<vmem>>, vector<16x4xf32>
    %c0_12 = arith.constant 0 : index
    %c0_13 = arith.constant 0 : index
    %32 = vector.load %arg4[%c0_12, %c0_13] : memref<4x32xf32, #tpu.memory_space<vmem>>, vector<4x32xf32>
    %cst_14 = arith.constant dense<0.000000e+00> : vector<16x32xf32>
    %33 = tpu.matmul %31, %32, %cst_14 {dimension_numbers = #tpu.dot_dimension_numbers<[1], [0], [0], [1], [0, 0, 1, 1], [], []>} : vector<16x4xf32>, vector<4x32xf32>, vector<16x32xf32> -> vector<16x32xf32>
    %34 = vector.extract_strided_slice %0 {offsets = [3, 0], sizes = [1, 32], strides = [1, 1]} : vector<24x32xf32> to vector<1x32xf32>
    %35 = vector.broadcast %34 : vector<1x32xf32> to vector<16x32xf32>
    %36 = arith.addf %33, %35 : vector<16x32xf32>
    %37 = vector.extract_strided_slice %0 {offsets = [4, 0], sizes = [1, 32], strides = [1, 1]} : vector<24x32xf32> to vector<1x32xf32>
    %38 = vector.extract_strided_slice %0 {offsets = [5, 0], sizes = [1, 32], strides = [1, 1]} : vector<24x32xf32> to vector<1x32xf32>
    %cst_15 = arith.constant dense<0.000000e+00> : vector<16xf32>
    %39 = vector.multi_reduction <add>, %36, %cst_15 [1] : vector<16x32xf32> to vector<16xf32>
    %40 = vector.shape_cast %39 : vector<16xf32> to vector<16x1xf32>
    %cst_16 = arith.constant 3.200000e+01 : f32
    %41 = vector.broadcast %cst_16 : f32 to vector<16x1xf32>
    %42 = arith.divf %40, %41 : vector<16x1xf32>
    %43 = vector.broadcast %42 : vector<16x1xf32> to vector<16x32xf32>
    %44 = arith.subf %36, %43 : vector<16x32xf32>
    %45 = arith.mulf %44, %44 : vector<16x32xf32>
    %cst_17 = arith.constant dense<0.000000e+00> : vector<16xf32>
    %46 = vector.multi_reduction <add>, %45, %cst_17 [1] : vector<16x32xf32> to vector<16xf32>
    %47 = vector.shape_cast %46 : vector<16xf32> to vector<16x1xf32>
    %cst_18 = arith.constant 3.200000e+01 : f32
    %48 = vector.broadcast %cst_18 : f32 to vector<16x1xf32>
    %49 = arith.divf %47, %48 : vector<16x1xf32>
    %50 = vector.broadcast %42 : vector<16x1xf32> to vector<16x32xf32>
    %51 = arith.subf %36, %50 : vector<16x32xf32>
    %cst_19 = arith.constant 9.99999974E-6 : f32
    %52 = vector.broadcast %cst_19 : f32 to vector<16x1xf32>
    %53 = arith.addf %49, %52 : vector<16x1xf32>
    %54 = math.rsqrt %53 : vector<16x1xf32>
    %55 = vector.broadcast %54 : vector<16x1xf32> to vector<16x32xf32>
    %56 = arith.mulf %51, %55 : vector<16x32xf32>
    %57 = vector.broadcast %37 : vector<1x32xf32> to vector<16x32xf32>
    %58 = arith.mulf %56, %57 : vector<16x32xf32>
    %59 = vector.broadcast %38 : vector<1x32xf32> to vector<16x32xf32>
    %60 = arith.addf %58, %59 : vector<16x32xf32>
    %cst_20 = arith.constant 0.000000e+00 : f32
    %61 = vector.broadcast %cst_20 : f32 to vector<16x32xf32>
    %62 = arith.maximumf %30, %61 : vector<16x32xf32>
    %c0_21 = arith.constant 0 : index
    %c0_22 = arith.constant 0 : index
    %c0_23 = arith.constant 0 : index
    %63 = vector.load %arg5[%c0_21, %c0_22, %c0_23] : memref<5x32x32xf32, #tpu.memory_space<vmem>>, vector<1x32x32xf32>
    %64 = vector.shape_cast %63 : vector<1x32x32xf32> to vector<32x32xf32>
    %cst_24 = arith.constant dense<0.000000e+00> : vector<16x32xf32>
    %65 = tpu.matmul %62, %64, %cst_24 {dimension_numbers = #tpu.dot_dimension_numbers<[1], [0], [0], [1], [0, 0, 1, 1], [], []>} : vector<16x32xf32>, vector<32x32xf32>, vector<16x32xf32> -> vector<16x32xf32>
    %cst_25 = arith.constant 0.000000e+00 : f32
    %66 = vector.broadcast %cst_25 : f32 to vector<16x32xf32>
    %67 = arith.maximumf %60, %66 : vector<16x32xf32>
    %c1 = arith.constant 1 : index
    %c0_26 = arith.constant 0 : index
    %c0_27 = arith.constant 0 : index
    %68 = vector.load %arg5[%c1, %c0_26, %c0_27] : memref<5x32x32xf32, #tpu.memory_space<vmem>>, vector<1x32x32xf32>
    %69 = vector.shape_cast %68 : vector<1x32x32xf32> to vector<32x32xf32>
    %cst_28 = arith.constant dense<0.000000e+00> : vector<16x32xf32>
    %70 = tpu.matmul %67, %69, %cst_28 {dimension_numbers = #tpu.dot_dimension_numbers<[1], [0], [0], [1], [0, 0, 1, 1], [], []>} : vector<16x32xf32>, vector<32x32xf32>, vector<16x32xf32> -> vector<16x32xf32>
    %71 = arith.addf %65, %70 : vector<16x32xf32>
    %72 = vector.extract_strided_slice %0 {offsets = [6, 0], sizes = [1, 32], strides = [1, 1]} : vector<24x32xf32> to vector<1x32xf32>
    %73 = vector.broadcast %72 : vector<1x32xf32> to vector<16x32xf32>
    %74 = arith.addf %71, %73 : vector<16x32xf32>
    %75 = vector.extract_strided_slice %0 {offsets = [7, 0], sizes = [1, 32], strides = [1, 1]} : vector<24x32xf32> to vector<1x32xf32>
    %76 = vector.extract_strided_slice %0 {offsets = [8, 0], sizes = [1, 32], strides = [1, 1]} : vector<24x32xf32> to vector<1x32xf32>
    %cst_29 = arith.constant dense<0.000000e+00> : vector<16xf32>
    %77 = vector.multi_reduction <add>, %74, %cst_29 [1] : vector<16x32xf32> to vector<16xf32>
    %78 = vector.shape_cast %77 : vector<16xf32> to vector<16x1xf32>
    %cst_30 = arith.constant 3.200000e+01 : f32
    %79 = vector.broadcast %cst_30 : f32 to vector<16x1xf32>
    %80 = arith.divf %78, %79 : vector<16x1xf32>
    %81 = vector.broadcast %80 : vector<16x1xf32> to vector<16x32xf32>
    %82 = arith.subf %74, %81 : vector<16x32xf32>
    %83 = arith.mulf %82, %82 : vector<16x32xf32>
    %cst_31 = arith.constant dense<0.000000e+00> : vector<16xf32>
    %84 = vector.multi_reduction <add>, %83, %cst_31 [1] : vector<16x32xf32> to vector<16xf32>
    %85 = vector.shape_cast %84 : vector<16xf32> to vector<16x1xf32>
    %cst_32 = arith.constant 3.200000e+01 : f32
    %86 = vector.broadcast %cst_32 : f32 to vector<16x1xf32>
    %87 = arith.divf %85, %86 : vector<16x1xf32>
    %88 = vector.broadcast %80 : vector<16x1xf32> to vector<16x32xf32>
    %89 = arith.subf %74, %88 : vector<16x32xf32>
    %cst_33 = arith.constant 9.99999974E-6 : f32
    %90 = vector.broadcast %cst_33 : f32 to vector<16x1xf32>
    %91 = arith.addf %87, %90 : vector<16x1xf32>
    %92 = math.rsqrt %91 : vector<16x1xf32>
    %93 = vector.broadcast %92 : vector<16x1xf32> to vector<16x32xf32>
    %94 = arith.mulf %89, %93 : vector<16x32xf32>
    %95 = vector.broadcast %75 : vector<1x32xf32> to vector<16x32xf32>
    %96 = arith.mulf %94, %95 : vector<16x32xf32>
    %97 = vector.broadcast %76 : vector<1x32xf32> to vector<16x32xf32>
    %98 = arith.addf %96, %97 : vector<16x32xf32>
    %99 = vector.shape_cast %98 : vector<16x32xf32> to vector<2x8x32xf32>
    %c0_34 = arith.constant 0 : index
    %c0_35 = arith.constant 0 : index
    %100 = vector.load %arg6[%c0_34, %c0_35] : memref<32x96xf32, #tpu.memory_space<vmem>>, vector<32x96xf32>
    %cst_36 = arith.constant dense<0.000000e+00> : vector<16x96xf32>
    %101 = tpu.matmul %98, %100, %cst_36 {dimension_numbers = #tpu.dot_dimension_numbers<[1], [0], [0], [1], [0, 0, 1, 1], [], []>} : vector<16x32xf32>, vector<32x96xf32>, vector<16x96xf32> -> vector<16x96xf32>
    %c0_37 = arith.constant 0 : index
    %c0_38 = arith.constant 0 : index
    %102 = vector.load %arg7[%c0_37, %c0_38] : memref<1x96xf32, #tpu.memory_space<vmem>>, vector<1x96xf32>
    %103 = vector.broadcast %102 : vector<1x96xf32> to vector<16x96xf32>
    %104 = arith.addf %101, %103 : vector<16x96xf32>
    %105 = vector.shape_cast %104 : vector<16x96xf32> to vector<2x8x96xf32>
    %106 = vector.extract_strided_slice %105 {offsets = [0, 7, 0], sizes = [2, 1, 32], strides = [1, 1, 1]} : vector<2x8x96xf32> to vector<2x1x32xf32>
    %107 = vector.shape_cast %106 : vector<2x1x32xf32> to vector<2x32xf32>
    %cst_39 = arith.constant 0.353553385 : f32
    %108 = vector.broadcast %cst_39 : f32 to vector<2x32xf32>
    %109 = arith.mulf %107, %108 : vector<2x32xf32>
    %110 = vector.extract_strided_slice %105 {offsets = [0, 0, 32], sizes = [2, 8, 32], strides = [1, 1, 1]} : vector<2x8x96xf32> to vector<2x8x32xf32>
    %111 = vector.extract_strided_slice %105 {offsets = [0, 0, 64], sizes = [2, 8, 32], strides = [1, 1, 1]} : vector<2x8x96xf32> to vector<2x8x32xf32>
    %112 = vector.shape_cast %109 : vector<2x32xf32> to vector<2x1x32xf32>
    %113 = vector.broadcast %112 : vector<2x1x32xf32> to vector<2x8x32xf32>
    %114 = arith.mulf %113, %110 : vector<2x8x32xf32>
    %115 = vector.shape_cast %114 : vector<2x8x32xf32> to vector<16x32xf32>
    %c0_40 = arith.constant 0 : index
    %c0_41 = arith.constant 0 : index
    %116 = vector.load %arg8[%c0_40, %c0_41] : memref<32x4xf32, #tpu.memory_space<vmem>>, vector<32x4xf32>
    %cst_42 = arith.constant dense<0.000000e+00> : vector<16x4xf32>
    %117 = tpu.matmul %115, %116, %cst_42 {dimension_numbers = #tpu.dot_dimension_numbers<[1], [0], [0], [1], [0, 0, 1, 1], [], []>} : vector<16x32xf32>, vector<32x4xf32>, vector<16x4xf32> -> vector<16x4xf32>
    %118 = vector.shape_cast %117 : vector<16x4xf32> to vector<2x8x4xf32>
    %c0_43 = arith.constant 0 : index
    %c0_44 = arith.constant 0 : index
    %119 = vector.load %arg2[%c0_43, %c0_44] : memref<2x8xf32, #tpu.memory_space<vmem>>, vector<2x8xf32>
    %cst_45 = arith.constant 0.000000e+00 : f32
    %120 = vector.broadcast %cst_45 : f32 to vector<2x8xf32>
    %121 = arith.cmpf oeq, %119, %120 : vector<2x8xf32>
    %cst_46 = arith.constant -1.000000e+30 : f32
    %cst_47 = arith.constant 0.000000e+00 : f32
    %122 = vector.broadcast %cst_46 : f32 to vector<2x8xf32>
    %123 = vector.broadcast %cst_47 : f32 to vector<2x8xf32>
    %124 = arith.select %121, %122, %123 : vector<2x8xi1>, vector<2x8xf32>
    %125 = vector.shape_cast %124 : vector<2x8xf32> to vector<2x8x1xf32>
    %126 = vector.broadcast %125 : vector<2x8x1xf32> to vector<2x8x4xf32>
    %127 = arith.addf %118, %126 : vector<2x8x4xf32>
    %cst_48 = arith.constant dense<0xFF800000> : vector<2x4xf32>
    %128 = vector.multi_reduction <maximumf>, %127, %cst_48 [1] : vector<2x8x4xf32> to vector<2x4xf32>
    %129 = vector.shape_cast %128 : vector<2x4xf32> to vector<2x1x4xf32>
    %130 = vector.broadcast %129 : vector<2x1x4xf32> to vector<2x8x4xf32>
    %131 = arith.subf %127, %130 : vector<2x8x4xf32>
    %132 = math.exp %131 : vector<2x8x4xf32>
    %cst_49 = arith.constant dense<0.000000e+00> : vector<2x4xf32>
    %133 = vector.multi_reduction <add>, %132, %cst_49 [1] : vector<2x8x4xf32> to vector<2x4xf32>
    %134 = vector.shape_cast %133 : vector<2x4xf32> to vector<2x1x4xf32>
    %135 = tpu.reciprocal %134 {approx = true} : vector<2x1x4xf32> -> vector<2x1x4xf32>
    %136 = vector.broadcast %135 : vector<2x1x4xf32> to vector<2x8x4xf32>
    %137 = arith.mulf %132, %136 : vector<2x8x4xf32>
    %138 = vector.shape_cast %137 : vector<2x8x4xf32> to vector<16x4xf32>
    %c0_50 = arith.constant 0 : index
    %c0_51 = arith.constant 0 : index
    %139 = vector.load %arg9[%c0_50, %c0_51] : memref<4x32xf32, #tpu.memory_space<vmem>>, vector<4x32xf32>
    %cst_52 = arith.constant dense<0.000000e+00> : vector<16x32xf32>
    %140 = tpu.matmul %138, %139, %cst_52 {dimension_numbers = #tpu.dot_dimension_numbers<[1], [0], [0], [1], [0, 0, 1, 1], [], []>} : vector<16x4xf32>, vector<4x32xf32>, vector<16x32xf32> -> vector<16x32xf32>
    %141 = vector.shape_cast %140 : vector<16x32xf32> to vector<2x8x32xf32>
    %142 = arith.mulf %141, %111 : vector<2x8x32xf32>
    %cst_53 = arith.constant dense<0.000000e+00> : vector<2x32xf32>
    %143 = vector.multi_reduction <add>, %142, %cst_53 [1] : vector<2x8x32xf32> to vector<2x32xf32>
    %c2 = arith.constant 2 : index
    %c0_54 = arith.constant 0 : index
    %c0_55 = arith.constant 0 : index
    %144 = vector.load %arg5[%c2, %c0_54, %c0_55] : memref<5x32x32xf32, #tpu.memory_space<vmem>>, vector<1x32x32xf32>
    %145 = vector.shape_cast %144 : vector<1x32x32xf32> to vector<32x32xf32>
    %cst_56 = arith.constant dense<0.000000e+00> : vector<2x32xf32>
    %146 = tpu.matmul %143, %145, %cst_56 {dimension_numbers = #tpu.dot_dimension_numbers<[1], [0], [0], [1], [0, 0, 1, 1], [], []>} : vector<2x32xf32>, vector<32x32xf32>, vector<2x32xf32> -> vector<2x32xf32>
    %147 = vector.extract_strided_slice %0 {offsets = [9, 0], sizes = [1, 32], strides = [1, 1]} : vector<24x32xf32> to vector<1x32xf32>
    %148 = vector.broadcast %147 : vector<1x32xf32> to vector<2x32xf32>
    %149 = arith.addf %146, %148 : vector<2x32xf32>
    %150 = vector.shape_cast %149 : vector<2x32xf32> to vector<2x1x32xf32>
    %151 = vector.broadcast %150 : vector<2x1x32xf32> to vector<2x8x32xf32>
    %152 = arith.addf %99, %151 : vector<2x8x32xf32>
    %153 = vector.extract_strided_slice %0 {offsets = [10, 0], sizes = [1, 32], strides = [1, 1]} : vector<24x32xf32> to vector<1x32xf32>
    %154 = vector.extract_strided_slice %0 {offsets = [11, 0], sizes = [1, 32], strides = [1, 1]} : vector<24x32xf32> to vector<1x32xf32>
    %cst_57 = arith.constant dense<0.000000e+00> : vector<2x8xf32>
    %155 = vector.multi_reduction <add>, %152, %cst_57 [2] : vector<2x8x32xf32> to vector<2x8xf32>
    %156 = vector.shape_cast %155 : vector<2x8xf32> to vector<2x8x1xf32>
    %cst_58 = arith.constant 3.200000e+01 : f32
    %157 = vector.broadcast %cst_58 : f32 to vector<2x8x1xf32>
    %158 = arith.divf %156, %157 : vector<2x8x1xf32>
    %159 = vector.broadcast %158 : vector<2x8x1xf32> to vector<2x8x32xf32>
    %160 = arith.subf %152, %159 : vector<2x8x32xf32>
    %161 = arith.mulf %160, %160 : vector<2x8x32xf32>
    %cst_59 = arith.constant dense<0.000000e+00> : vector<2x8xf32>
    %162 = vector.multi_reduction <add>, %161, %cst_59 [2] : vector<2x8x32xf32> to vector<2x8xf32>
    %163 = vector.shape_cast %162 : vector<2x8xf32> to vector<2x8x1xf32>
    %cst_60 = arith.constant 3.200000e+01 : f32
    %164 = vector.broadcast %cst_60 : f32 to vector<2x8x1xf32>
    %165 = arith.divf %163, %164 : vector<2x8x1xf32>
    %166 = vector.broadcast %158 : vector<2x8x1xf32> to vector<2x8x32xf32>
    %167 = arith.subf %152, %166 : vector<2x8x32xf32>
    %cst_61 = arith.constant 9.99999974E-6 : f32
    %168 = vector.broadcast %cst_61 : f32 to vector<2x8x1xf32>
    %169 = arith.addf %165, %168 : vector<2x8x1xf32>
    %170 = math.rsqrt %169 : vector<2x8x1xf32>
    %171 = vector.broadcast %170 : vector<2x8x1xf32> to vector<2x8x32xf32>
    %172 = arith.mulf %167, %171 : vector<2x8x32xf32>
    %173 = vector.shape_cast %153 : vector<1x32xf32> to vector<1x1x32xf32>
    %174 = vector.broadcast %173 : vector<1x1x32xf32> to vector<2x8x32xf32>
    %175 = arith.mulf %172, %174 : vector<2x8x32xf32>
    %176 = vector.shape_cast %154 : vector<1x32xf32> to vector<1x1x32xf32>
    %177 = vector.broadcast %176 : vector<1x1x32xf32> to vector<2x8x32xf32>
    %178 = arith.addf %175, %177 : vector<2x8x32xf32>
    %179 = vector.shape_cast %178 : vector<2x8x32xf32> to vector<16x32xf32>
    %c3 = arith.constant 3 : index
    %c0_62 = arith.constant 0 : index
    %c0_63 = arith.constant 0 : index
    %180 = vector.load %arg5[%c3, %c0_62, %c0_63] : memref<5x32x32xf32, #tpu.memory_space<vmem>>, vector<1x32x32xf32>
    %181 = vector.shape_cast %180 : vector<1x32x32xf32> to vector<32x32xf32>
    %cst_64 = arith.constant dense<0.000000e+00> : vector<16x32xf32>
    %182 = tpu.matmul %179, %181, %cst_64 {dimension_numbers = #tpu.dot_dimension_numbers<[1], [0], [0], [1], [0, 0, 1, 1], [], []>} : vector<16x32xf32>, vector<32x32xf32>, vector<16x32xf32> -> vector<16x32xf32>
    %183 = vector.extract_strided_slice %0 {offsets = [12, 0], sizes = [1, 32], strides = [1, 1]} : vector<24x32xf32> to vector<1x32xf32>
    %184 = vector.broadcast %183 : vector<1x32xf32> to vector<16x32xf32>
    %185 = arith.addf %182, %184 : vector<16x32xf32>
    %cst_65 = arith.constant 0.000000e+00 : f32
    %186 = vector.broadcast %cst_65 : f32 to vector<16x32xf32>
    %187 = arith.maximumf %185, %186 : vector<16x32xf32>
    %c4 = arith.constant 4 : index
    %c0_66 = arith.constant 0 : index
    %c0_67 = arith.constant 0 : index
    %188 = vector.load %arg5[%c4, %c0_66, %c0_67] : memref<5x32x32xf32, #tpu.memory_space<vmem>>, vector<1x32x32xf32>
    %189 = vector.shape_cast %188 : vector<1x32x32xf32> to vector<32x32xf32>
    %cst_68 = arith.constant dense<0.000000e+00> : vector<16x32xf32>
    %190 = tpu.matmul %187, %189, %cst_68 {dimension_numbers = #tpu.dot_dimension_numbers<[1], [0], [0], [1], [0, 0, 1, 1], [], []>} : vector<16x32xf32>, vector<32x32xf32>, vector<16x32xf32> -> vector<16x32xf32>
    %191 = vector.extract_strided_slice %0 {offsets = [13, 0], sizes = [1, 32], strides = [1, 1]} : vector<24x32xf32> to vector<1x32xf32>
    %192 = vector.broadcast %191 : vector<1x32xf32> to vector<16x32xf32>
    %193 = arith.addf %190, %192 : vector<16x32xf32>
    %194 = vector.shape_cast %193 : vector<16x32xf32> to vector<2x8x32xf32>
    %195 = arith.addf %99, %194 : vector<2x8x32xf32>
    %196 = vector.extract_strided_slice %0 {offsets = [14, 0], sizes = [1, 32], strides = [1, 1]} : vector<24x32xf32> to vector<1x32xf32>
    %197 = vector.extract_strided_slice %0 {offsets = [15, 0], sizes = [1, 32], strides = [1, 1]} : vector<24x32xf32> to vector<1x32xf32>
    %cst_69 = arith.constant dense<0.000000e+00> : vector<2x8xf32>
    %198 = vector.multi_reduction <add>, %195, %cst_69 [2] : vector<2x8x32xf32> to vector<2x8xf32>
    %199 = vector.shape_cast %198 : vector<2x8xf32> to vector<2x8x1xf32>
    %cst_70 = arith.constant 3.200000e+01 : f32
    %200 = vector.broadcast %cst_70 : f32 to vector<2x8x1xf32>
    %201 = arith.divf %199, %200 : vector<2x8x1xf32>
    %202 = vector.broadcast %201 : vector<2x8x1xf32> to vector<2x8x32xf32>
    %203 = arith.subf %195, %202 : vector<2x8x32xf32>
    %204 = arith.mulf %203, %203 : vector<2x8x32xf32>
    %cst_71 = arith.constant dense<0.000000e+00> : vector<2x8xf32>
    %205 = vector.multi_reduction <add>, %204, %cst_71 [2] : vector<2x8x32xf32> to vector<2x8xf32>
    %206 = vector.shape_cast %205 : vector<2x8xf32> to vector<2x8x1xf32>
    %cst_72 = arith.constant 3.200000e+01 : f32
    %207 = vector.broadcast %cst_72 : f32 to vector<2x8x1xf32>
    %208 = arith.divf %206, %207 : vector<2x8x1xf32>
    %209 = vector.broadcast %201 : vector<2x8x1xf32> to vector<2x8x32xf32>
    %210 = arith.subf %195, %209 : vector<2x8x32xf32>
    %cst_73 = arith.constant 9.99999974E-6 : f32
    %211 = vector.broadcast %cst_73 : f32 to vector<2x8x1xf32>
    %212 = arith.addf %208, %211 : vector<2x8x1xf32>
    %213 = math.rsqrt %212 : vector<2x8x1xf32>
    %214 = vector.broadcast %213 : vector<2x8x1xf32> to vector<2x8x32xf32>
    %215 = arith.mulf %210, %214 : vector<2x8x32xf32>
    %216 = vector.shape_cast %196 : vector<1x32xf32> to vector<1x1x32xf32>
    %217 = vector.broadcast %216 : vector<1x1x32xf32> to vector<2x8x32xf32>
    %218 = arith.mulf %215, %217 : vector<2x8x32xf32>
    %219 = vector.shape_cast %197 : vector<1x32xf32> to vector<1x1x32xf32>
    %220 = vector.broadcast %219 : vector<1x1x32xf32> to vector<2x8x32xf32>
    %221 = arith.addf %218, %220 : vector<2x8x32xf32>
    %222 = vector.shape_cast %221 : vector<2x8x32xf32> to vector<16x32xf32>
    %c0_74 = arith.constant 0 : index
    %c0_75 = arith.constant 0 : index
    %c0_76 = arith.constant 0 : index
    %223 = vector.load %arg11[%c0_74, %c0_75, %c0_76] : memref<4x32x128xf32, #tpu.memory_space<vmem>>, vector<1x32x128xf32>
    %224 = vector.shape_cast %223 : vector<1x32x128xf32> to vector<32x128xf32>
    %cst_77 = arith.constant dense<0.000000e+00> : vector<16x128xf32>
    %225 = tpu.matmul %222, %224, %cst_77 {dimension_numbers = #tpu.dot_dimension_numbers<[1], [0], [0], [1], [0, 0, 1, 1], [], []>} : vector<16x32xf32>, vector<32x128xf32>, vector<16x128xf32> -> vector<16x128xf32>
    %c0_78 = arith.constant 0 : index
    %c0_79 = arith.constant 0 : index
    %226 = vector.load %arg12[%c0_78, %c0_79] : memref<2x128xf32, #tpu.memory_space<vmem>>, vector<1x128xf32>
    %227 = vector.broadcast %226 : vector<1x128xf32> to vector<16x128xf32>
    %228 = arith.addf %225, %227 : vector<16x128xf32>
    %229 = vector.shape_cast %228 : vector<16x128xf32> to vector<2x8x128xf32>
    %c1_80 = arith.constant 1 : index
    %c0_81 = arith.constant 0 : index
    %230 = vector.load %arg12[%c1_80, %c0_81] : memref<2x128xf32, #tpu.memory_space<vmem>>, vector<1x128xf32>
    %cst_82 = arith.constant 0.000000e+00 : f32
    %231 = vector.broadcast %cst_82 : f32 to vector<2x32xf32>
    %cst_83 = arith.constant 0.000000e+00 : f32
    %232 = vector.broadcast %cst_83 : f32 to vector<2x32xf32>
    %cst_84 = arith.constant 0.000000e+00 : f32
    %233 = vector.broadcast %cst_84 : f32 to vector<2x32xf32>
    %cst_85 = arith.constant 0.000000e+00 : f32
    %234 = vector.broadcast %cst_85 : f32 to vector<2x32xf32>
    %235 = vector.extract_strided_slice %229 {offsets = [0, 0, 0], sizes = [2, 1, 128], strides = [1, 1, 1]} : vector<2x8x128xf32> to vector<2x1x128xf32>
    %236 = vector.shape_cast %235 : vector<2x1x128xf32> to vector<2x128xf32>
    %c1_86 = arith.constant 1 : index
    %c0_87 = arith.constant 0 : index
    %c0_88 = arith.constant 0 : index
    %237 = vector.load %arg11[%c1_86, %c0_87, %c0_88] : memref<4x32x128xf32, #tpu.memory_space<vmem>>, vector<1x32x128xf32>
    %238 = vector.shape_cast %237 : vector<1x32x128xf32> to vector<32x128xf32>
    %cst_89 = arith.constant dense<0.000000e+00> : vector<2x128xf32>
    %239 = tpu.matmul %231, %238, %cst_89 {dimension_numbers = #tpu.dot_dimension_numbers<[1], [0], [0], [1], [0, 0, 1, 1], [], []>} : vector<2x32xf32>, vector<32x128xf32>, vector<2x128xf32> -> vector<2x128xf32>
    %240 = arith.addf %236, %239 : vector<2x128xf32>
    %241 = vector.extract_strided_slice %240 {offsets = [0, 0], sizes = [2, 96], strides = [1, 1]} : vector<2x128xf32> to vector<2x96xf32>
    %242 = arith.negf %241 : vector<2x96xf32>
    %243 = math.exp %242 : vector<2x96xf32>
    %cst_90 = arith.constant 1.000000e+00 : f32
    %244 = vector.broadcast %cst_90 : f32 to vector<2x96xf32>
    %245 = arith.addf %244, %243 : vector<2x96xf32>
    %246 = arith.divf %244, %245 : vector<2x96xf32>
    %247 = vector.extract_strided_slice %240 {offsets = [0, 96], sizes = [2, 32], strides = [1, 1]} : vector<2x128xf32> to vector<2x32xf32>
    %248 = math.tanh %247 : vector<2x32xf32>
    %249 = vector.extract_strided_slice %246 {offsets = [0, 0], sizes = [2, 32], strides = [1, 1]} : vector<2x96xf32> to vector<2x32xf32>
    %250 = vector.extract_strided_slice %246 {offsets = [0, 32], sizes = [2, 32], strides = [1, 1]} : vector<2x96xf32> to vector<2x32xf32>
    %251 = vector.extract_strided_slice %246 {offsets = [0, 64], sizes = [2, 32], strides = [1, 1]} : vector<2x96xf32> to vector<2x32xf32>
    %252 = arith.mulf %250, %232 : vector<2x32xf32>
    %253 = arith.mulf %249, %248 : vector<2x32xf32>
    %254 = arith.addf %252, %253 : vector<2x32xf32>
    %255 = math.tanh %254 : vector<2x32xf32>
    %256 = arith.mulf %251, %255 : vector<2x32xf32>
    %c2_91 = arith.constant 2 : index
    %c0_92 = arith.constant 0 : index
    %c0_93 = arith.constant 0 : index
    %257 = vector.load %arg11[%c2_91, %c0_92, %c0_93] : memref<4x32x128xf32, #tpu.memory_space<vmem>>, vector<1x32x128xf32>
    %258 = vector.shape_cast %257 : vector<1x32x128xf32> to vector<32x128xf32>
    %cst_94 = arith.constant dense<0.000000e+00> : vector<2x128xf32>
    %259 = tpu.matmul %256, %258, %cst_94 {dimension_numbers = #tpu.dot_dimension_numbers<[1], [0], [0], [1], [0, 0, 1, 1], [], []>} : vector<2x32xf32>, vector<32x128xf32>, vector<2x128xf32> -> vector<2x128xf32>
    %260 = vector.broadcast %230 : vector<1x128xf32> to vector<2x128xf32>
    %261 = arith.addf %259, %260 : vector<2x128xf32>
    %c3_95 = arith.constant 3 : index
    %c0_96 = arith.constant 0 : index
    %c0_97 = arith.constant 0 : index
    %262 = vector.load %arg11[%c3_95, %c0_96, %c0_97] : memref<4x32x128xf32, #tpu.memory_space<vmem>>, vector<1x32x128xf32>
    %263 = vector.shape_cast %262 : vector<1x32x128xf32> to vector<32x128xf32>
    %cst_98 = arith.constant dense<0.000000e+00> : vector<2x128xf32>
    %264 = tpu.matmul %233, %263, %cst_98 {dimension_numbers = #tpu.dot_dimension_numbers<[1], [0], [0], [1], [0, 0, 1, 1], [], []>} : vector<2x32xf32>, vector<32x128xf32>, vector<2x128xf32> -> vector<2x128xf32>
    %265 = arith.addf %261, %264 : vector<2x128xf32>
    %266 = vector.extract_strided_slice %265 {offsets = [0, 0], sizes = [2, 96], strides = [1, 1]} : vector<2x128xf32> to vector<2x96xf32>
    %267 = arith.negf %266 : vector<2x96xf32>
    %268 = math.exp %267 : vector<2x96xf32>
    %cst_99 = arith.constant 1.000000e+00 : f32
    %269 = vector.broadcast %cst_99 : f32 to vector<2x96xf32>
    %270 = arith.addf %269, %268 : vector<2x96xf32>
    %271 = arith.divf %269, %270 : vector<2x96xf32>
    %272 = vector.extract_strided_slice %265 {offsets = [0, 96], sizes = [2, 32], strides = [1, 1]} : vector<2x128xf32> to vector<2x32xf32>
    %273 = math.tanh %272 : vector<2x32xf32>
    %274 = vector.extract_strided_slice %271 {offsets = [0, 0], sizes = [2, 32], strides = [1, 1]} : vector<2x96xf32> to vector<2x32xf32>
    %275 = vector.extract_strided_slice %271 {offsets = [0, 32], sizes = [2, 32], strides = [1, 1]} : vector<2x96xf32> to vector<2x32xf32>
    %276 = vector.extract_strided_slice %271 {offsets = [0, 64], sizes = [2, 32], strides = [1, 1]} : vector<2x96xf32> to vector<2x32xf32>
    %277 = arith.mulf %275, %234 : vector<2x32xf32>
    %278 = arith.mulf %274, %273 : vector<2x32xf32>
    %279 = arith.addf %277, %278 : vector<2x32xf32>
    %280 = math.tanh %279 : vector<2x32xf32>
    %281 = arith.mulf %276, %280 : vector<2x32xf32>
    %282 = vector.extract_strided_slice %229 {offsets = [0, 1, 0], sizes = [2, 1, 128], strides = [1, 1, 1]} : vector<2x8x128xf32> to vector<2x1x128xf32>
    %283 = vector.shape_cast %282 : vector<2x1x128xf32> to vector<2x128xf32>
    %c1_100 = arith.constant 1 : index
    %c0_101 = arith.constant 0 : index
    %c0_102 = arith.constant 0 : index
    %284 = vector.load %arg11[%c1_100, %c0_101, %c0_102] : memref<4x32x128xf32, #tpu.memory_space<vmem>>, vector<1x32x128xf32>
    %285 = vector.shape_cast %284 : vector<1x32x128xf32> to vector<32x128xf32>
    %cst_103 = arith.constant dense<0.000000e+00> : vector<2x128xf32>
    %286 = tpu.matmul %256, %285, %cst_103 {dimension_numbers = #tpu.dot_dimension_numbers<[1], [0], [0], [1], [0, 0, 1, 1], [], []>} : vector<2x32xf32>, vector<32x128xf32>, vector<2x128xf32> -> vector<2x128xf32>
    %287 = arith.addf %283, %286 : vector<2x128xf32>
    %288 = vector.extract_strided_slice %287 {offsets = [0, 0], sizes = [2, 96], strides = [1, 1]} : vector<2x128xf32> to vector<2x96xf32>
    %289 = arith.negf %288 : vector<2x96xf32>
    %290 = math.exp %289 : vector<2x96xf32>
    %cst_104 = arith.constant 1.000000e+00 : f32
    %291 = vector.broadcast %cst_104 : f32 to vector<2x96xf32>
    %292 = arith.addf %291, %290 : vector<2x96xf32>
    %293 = arith.divf %291, %292 : vector<2x96xf32>
    %294 = vector.extract_strided_slice %287 {offsets = [0, 96], sizes = [2, 32], strides = [1, 1]} : vector<2x128xf32> to vector<2x32xf32>
    %295 = math.tanh %294 : vector<2x32xf32>
    %296 = vector.extract_strided_slice %293 {offsets = [0, 0], sizes = [2, 32], strides = [1, 1]} : vector<2x96xf32> to vector<2x32xf32>
    %297 = vector.extract_strided_slice %293 {offsets = [0, 32], sizes = [2, 32], strides = [1, 1]} : vector<2x96xf32> to vector<2x32xf32>
    %298 = vector.extract_strided_slice %293 {offsets = [0, 64], sizes = [2, 32], strides = [1, 1]} : vector<2x96xf32> to vector<2x32xf32>
    %299 = arith.mulf %297, %254 : vector<2x32xf32>
    %300 = arith.mulf %296, %295 : vector<2x32xf32>
    %301 = arith.addf %299, %300 : vector<2x32xf32>
    %302 = math.tanh %301 : vector<2x32xf32>
    %303 = arith.mulf %298, %302 : vector<2x32xf32>
    %c2_105 = arith.constant 2 : index
    %c0_106 = arith.constant 0 : index
    %c0_107 = arith.constant 0 : index
    %304 = vector.load %arg11[%c2_105, %c0_106, %c0_107] : memref<4x32x128xf32, #tpu.memory_space<vmem>>, vector<1x32x128xf32>
    %305 = vector.shape_cast %304 : vector<1x32x128xf32> to vector<32x128xf32>
    %cst_108 = arith.constant dense<0.000000e+00> : vector<2x128xf32>
    %306 = tpu.matmul %303, %305, %cst_108 {dimension_numbers = #tpu.dot_dimension_numbers<[1], [0], [0], [1], [0, 0, 1, 1], [], []>} : vector<2x32xf32>, vector<32x128xf32>, vector<2x128xf32> -> vector<2x128xf32>
    %307 = vector.broadcast %230 : vector<1x128xf32> to vector<2x128xf32>
    %308 = arith.addf %306, %307 : vector<2x128xf32>
    %c3_109 = arith.constant 3 : index
    %c0_110 = arith.constant 0 : index
    %c0_111 = arith.constant 0 : index
    %309 = vector.load %arg11[%c3_109, %c0_110, %c0_111] : memref<4x32x128xf32, #tpu.memory_space<vmem>>, vector<1x32x128xf32>
    %310 = vector.shape_cast %309 : vector<1x32x128xf32> to vector<32x128xf32>
    %cst_112 = arith.constant dense<0.000000e+00> : vector<2x128xf32>
    %311 = tpu.matmul %281, %310, %cst_112 {dimension_numbers = #tpu.dot_dimension_numbers<[1], [0], [0], [1], [0, 0, 1, 1], [], []>} : vector<2x32xf32>, vector<32x128xf32>, vector<2x128xf32> -> vector<2x128xf32>
    %312 = arith.addf %308, %311 : vector<2x128xf32>
    %313 = vector.extract_strided_slice %312 {offsets = [0, 0], sizes = [2, 96], strides = [1, 1]} : vector<2x128xf32> to vector<2x96xf32>
    %314 = arith.negf %313 : vector<2x96xf32>
    %315 = math.exp %314 : vector<2x96xf32>
    %cst_113 = arith.constant 1.000000e+00 : f32
    %316 = vector.broadcast %cst_113 : f32 to vector<2x96xf32>
    %317 = arith.addf %316, %315 : vector<2x96xf32>
    %318 = arith.divf %316, %317 : vector<2x96xf32>
    %319 = vector.extract_strided_slice %312 {offsets = [0, 96], sizes = [2, 32], strides = [1, 1]} : vector<2x128xf32> to vector<2x32xf32>
    %320 = math.tanh %319 : vector<2x32xf32>
    %321 = vector.extract_strided_slice %318 {offsets = [0, 0], sizes = [2, 32], strides = [1, 1]} : vector<2x96xf32> to vector<2x32xf32>
    %322 = vector.extract_strided_slice %318 {offsets = [0, 32], sizes = [2, 32], strides = [1, 1]} : vector<2x96xf32> to vector<2x32xf32>
    %323 = vector.extract_strided_slice %318 {offsets = [0, 64], sizes = [2, 32], strides = [1, 1]} : vector<2x96xf32> to vector<2x32xf32>
    %324 = arith.mulf %322, %279 : vector<2x32xf32>
    %325 = arith.mulf %321, %320 : vector<2x32xf32>
    %326 = arith.addf %324, %325 : vector<2x32xf32>
    %327 = math.tanh %326 : vector<2x32xf32>
    %328 = arith.mulf %323, %327 : vector<2x32xf32>
    %329 = vector.extract_strided_slice %229 {offsets = [0, 2, 0], sizes = [2, 1, 128], strides = [1, 1, 1]} : vector<2x8x128xf32> to vector<2x1x128xf32>
    %330 = vector.shape_cast %329 : vector<2x1x128xf32> to vector<2x128xf32>
    %c1_114 = arith.constant 1 : index
    %c0_115 = arith.constant 0 : index
    %c0_116 = arith.constant 0 : index
    %331 = vector.load %arg11[%c1_114, %c0_115, %c0_116] : memref<4x32x128xf32, #tpu.memory_space<vmem>>, vector<1x32x128xf32>
    %332 = vector.shape_cast %331 : vector<1x32x128xf32> to vector<32x128xf32>
    %cst_117 = arith.constant dense<0.000000e+00> : vector<2x128xf32>
    %333 = tpu.matmul %303, %332, %cst_117 {dimension_numbers = #tpu.dot_dimension_numbers<[1], [0], [0], [1], [0, 0, 1, 1], [], []>} : vector<2x32xf32>, vector<32x128xf32>, vector<2x128xf32> -> vector<2x128xf32>
    %334 = arith.addf %330, %333 : vector<2x128xf32>
    %335 = vector.extract_strided_slice %334 {offsets = [0, 0], sizes = [2, 96], strides = [1, 1]} : vector<2x128xf32> to vector<2x96xf32>
    %336 = arith.negf %335 : vector<2x96xf32>
    %337 = math.exp %336 : vector<2x96xf32>
    %cst_118 = arith.constant 1.000000e+00 : f32
    %338 = vector.broadcast %cst_118 : f32 to vector<2x96xf32>
    %339 = arith.addf %338, %337 : vector<2x96xf32>
    %340 = arith.divf %338, %339 : vector<2x96xf32>
    %341 = vector.extract_strided_slice %334 {offsets = [0, 96], sizes = [2, 32], strides = [1, 1]} : vector<2x128xf32> to vector<2x32xf32>
    %342 = math.tanh %341 : vector<2x32xf32>
    %343 = vector.extract_strided_slice %340 {offsets = [0, 0], sizes = [2, 32], strides = [1, 1]} : vector<2x96xf32> to vector<2x32xf32>
    %344 = vector.extract_strided_slice %340 {offsets = [0, 32], sizes = [2, 32], strides = [1, 1]} : vector<2x96xf32> to vector<2x32xf32>
    %345 = vector.extract_strided_slice %340 {offsets = [0, 64], sizes = [2, 32], strides = [1, 1]} : vector<2x96xf32> to vector<2x32xf32>
    %346 = arith.mulf %344, %301 : vector<2x32xf32>
    %347 = arith.mulf %343, %342 : vector<2x32xf32>
    %348 = arith.addf %346, %347 : vector<2x32xf32>
    %349 = math.tanh %348 : vector<2x32xf32>
    %350 = arith.mulf %345, %349 : vector<2x32xf32>
    %c2_119 = arith.constant 2 : index
    %c0_120 = arith.constant 0 : index
    %c0_121 = arith.constant 0 : index
    %351 = vector.load %arg11[%c2_119, %c0_120, %c0_121] : memref<4x32x128xf32, #tpu.memory_space<vmem>>, vector<1x32x128xf32>
    %352 = vector.shape_cast %351 : vector<1x32x128xf32> to vector<32x128xf32>
    %cst_122 = arith.constant dense<0.000000e+00> : vector<2x128xf32>
    %353 = tpu.matmul %350, %352, %cst_122 {dimension_numbers = #tpu.dot_dimension_numbers<[1], [0], [0], [1], [0, 0, 1, 1], [], []>} : vector<2x32xf32>, vector<32x128xf32>, vector<2x128xf32> -> vector<2x128xf32>
    %354 = vector.broadcast %230 : vector<1x128xf32> to vector<2x128xf32>
    %355 = arith.addf %353, %354 : vector<2x128xf32>
    %c3_123 = arith.constant 3 : index
    %c0_124 = arith.constant 0 : index
    %c0_125 = arith.constant 0 : index
    %356 = vector.load %arg11[%c3_123, %c0_124, %c0_125] : memref<4x32x128xf32, #tpu.memory_space<vmem>>, vector<1x32x128xf32>
    %357 = vector.shape_cast %356 : vector<1x32x128xf32> to vector<32x128xf32>
    %cst_126 = arith.constant dense<0.000000e+00> : vector<2x128xf32>
    %358 = tpu.matmul %328, %357, %cst_126 {dimension_numbers = #tpu.dot_dimension_numbers<[1], [0], [0], [1], [0, 0, 1, 1], [], []>} : vector<2x32xf32>, vector<32x128xf32>, vector<2x128xf32> -> vector<2x128xf32>
    %359 = arith.addf %355, %358 : vector<2x128xf32>
    %360 = vector.extract_strided_slice %359 {offsets = [0, 0], sizes = [2, 96], strides = [1, 1]} : vector<2x128xf32> to vector<2x96xf32>
    %361 = arith.negf %360 : vector<2x96xf32>
    %362 = math.exp %361 : vector<2x96xf32>
    %cst_127 = arith.constant 1.000000e+00 : f32
    %363 = vector.broadcast %cst_127 : f32 to vector<2x96xf32>
    %364 = arith.addf %363, %362 : vector<2x96xf32>
    %365 = arith.divf %363, %364 : vector<2x96xf32>
    %366 = vector.extract_strided_slice %359 {offsets = [0, 96], sizes = [2, 32], strides = [1, 1]} : vector<2x128xf32> to vector<2x32xf32>
    %367 = math.tanh %366 : vector<2x32xf32>
    %368 = vector.extract_strided_slice %365 {offsets = [0, 0], sizes = [2, 32], strides = [1, 1]} : vector<2x96xf32> to vector<2x32xf32>
    %369 = vector.extract_strided_slice %365 {offsets = [0, 32], sizes = [2, 32], strides = [1, 1]} : vector<2x96xf32> to vector<2x32xf32>
    %370 = vector.extract_strided_slice %365 {offsets = [0, 64], sizes = [2, 32], strides = [1, 1]} : vector<2x96xf32> to vector<2x32xf32>
    %371 = arith.mulf %369, %326 : vector<2x32xf32>
    %372 = arith.mulf %368, %367 : vector<2x32xf32>
    %373 = arith.addf %371, %372 : vector<2x32xf32>
    %374 = math.tanh %373 : vector<2x32xf32>
    %375 = arith.mulf %370, %374 : vector<2x32xf32>
    %376 = vector.extract_strided_slice %229 {offsets = [0, 3, 0], sizes = [2, 1, 128], strides = [1, 1, 1]} : vector<2x8x128xf32> to vector<2x1x128xf32>
    %377 = vector.shape_cast %376 : vector<2x1x128xf32> to vector<2x128xf32>
    %c1_128 = arith.constant 1 : index
    %c0_129 = arith.constant 0 : index
    %c0_130 = arith.constant 0 : index
    %378 = vector.load %arg11[%c1_128, %c0_129, %c0_130] : memref<4x32x128xf32, #tpu.memory_space<vmem>>, vector<1x32x128xf32>
    %379 = vector.shape_cast %378 : vector<1x32x128xf32> to vector<32x128xf32>
    %cst_131 = arith.constant dense<0.000000e+00> : vector<2x128xf32>
    %380 = tpu.matmul %350, %379, %cst_131 {dimension_numbers = #tpu.dot_dimension_numbers<[1], [0], [0], [1], [0, 0, 1, 1], [], []>} : vector<2x32xf32>, vector<32x128xf32>, vector<2x128xf32> -> vector<2x128xf32>
    %381 = arith.addf %377, %380 : vector<2x128xf32>
    %382 = vector.extract_strided_slice %381 {offsets = [0, 0], sizes = [2, 96], strides = [1, 1]} : vector<2x128xf32> to vector<2x96xf32>
    %383 = arith.negf %382 : vector<2x96xf32>
    %384 = math.exp %383 : vector<2x96xf32>
    %cst_132 = arith.constant 1.000000e+00 : f32
    %385 = vector.broadcast %cst_132 : f32 to vector<2x96xf32>
    %386 = arith.addf %385, %384 : vector<2x96xf32>
    %387 = arith.divf %385, %386 : vector<2x96xf32>
    %388 = vector.extract_strided_slice %381 {offsets = [0, 96], sizes = [2, 32], strides = [1, 1]} : vector<2x128xf32> to vector<2x32xf32>
    %389 = math.tanh %388 : vector<2x32xf32>
    %390 = vector.extract_strided_slice %387 {offsets = [0, 0], sizes = [2, 32], strides = [1, 1]} : vector<2x96xf32> to vector<2x32xf32>
    %391 = vector.extract_strided_slice %387 {offsets = [0, 32], sizes = [2, 32], strides = [1, 1]} : vector<2x96xf32> to vector<2x32xf32>
    %392 = vector.extract_strided_slice %387 {offsets = [0, 64], sizes = [2, 32], strides = [1, 1]} : vector<2x96xf32> to vector<2x32xf32>
    %393 = arith.mulf %391, %348 : vector<2x32xf32>
    %394 = arith.mulf %390, %389 : vector<2x32xf32>
    %395 = arith.addf %393, %394 : vector<2x32xf32>
    %396 = math.tanh %395 : vector<2x32xf32>
    %397 = arith.mulf %392, %396 : vector<2x32xf32>
    %c2_133 = arith.constant 2 : index
    %c0_134 = arith.constant 0 : index
    %c0_135 = arith.constant 0 : index
    %398 = vector.load %arg11[%c2_133, %c0_134, %c0_135] : memref<4x32x128xf32, #tpu.memory_space<vmem>>, vector<1x32x128xf32>
    %399 = vector.shape_cast %398 : vector<1x32x128xf32> to vector<32x128xf32>
    %cst_136 = arith.constant dense<0.000000e+00> : vector<2x128xf32>
    %400 = tpu.matmul %397, %399, %cst_136 {dimension_numbers = #tpu.dot_dimension_numbers<[1], [0], [0], [1], [0, 0, 1, 1], [], []>} : vector<2x32xf32>, vector<32x128xf32>, vector<2x128xf32> -> vector<2x128xf32>
    %401 = vector.broadcast %230 : vector<1x128xf32> to vector<2x128xf32>
    %402 = arith.addf %400, %401 : vector<2x128xf32>
    %c3_137 = arith.constant 3 : index
    %c0_138 = arith.constant 0 : index
    %c0_139 = arith.constant 0 : index
    %403 = vector.load %arg11[%c3_137, %c0_138, %c0_139] : memref<4x32x128xf32, #tpu.memory_space<vmem>>, vector<1x32x128xf32>
    %404 = vector.shape_cast %403 : vector<1x32x128xf32> to vector<32x128xf32>
    %cst_140 = arith.constant dense<0.000000e+00> : vector<2x128xf32>
    %405 = tpu.matmul %375, %404, %cst_140 {dimension_numbers = #tpu.dot_dimension_numbers<[1], [0], [0], [1], [0, 0, 1, 1], [], []>} : vector<2x32xf32>, vector<32x128xf32>, vector<2x128xf32> -> vector<2x128xf32>
    %406 = arith.addf %402, %405 : vector<2x128xf32>
    %407 = vector.extract_strided_slice %406 {offsets = [0, 0], sizes = [2, 96], strides = [1, 1]} : vector<2x128xf32> to vector<2x96xf32>
    %408 = arith.negf %407 : vector<2x96xf32>
    %409 = math.exp %408 : vector<2x96xf32>
    %cst_141 = arith.constant 1.000000e+00 : f32
    %410 = vector.broadcast %cst_141 : f32 to vector<2x96xf32>
    %411 = arith.addf %410, %409 : vector<2x96xf32>
    %412 = arith.divf %410, %411 : vector<2x96xf32>
    %413 = vector.extract_strided_slice %406 {offsets = [0, 96], sizes = [2, 32], strides = [1, 1]} : vector<2x128xf32> to vector<2x32xf32>
    %414 = math.tanh %413 : vector<2x32xf32>
    %415 = vector.extract_strided_slice %412 {offsets = [0, 0], sizes = [2, 32], strides = [1, 1]} : vector<2x96xf32> to vector<2x32xf32>
    %416 = vector.extract_strided_slice %412 {offsets = [0, 32], sizes = [2, 32], strides = [1, 1]} : vector<2x96xf32> to vector<2x32xf32>
    %417 = vector.extract_strided_slice %412 {offsets = [0, 64], sizes = [2, 32], strides = [1, 1]} : vector<2x96xf32> to vector<2x32xf32>
    %418 = arith.mulf %416, %373 : vector<2x32xf32>
    %419 = arith.mulf %415, %414 : vector<2x32xf32>
    %420 = arith.addf %418, %419 : vector<2x32xf32>
    %421 = math.tanh %420 : vector<2x32xf32>
    %422 = arith.mulf %417, %421 : vector<2x32xf32>
    %423 = vector.extract_strided_slice %229 {offsets = [0, 4, 0], sizes = [2, 1, 128], strides = [1, 1, 1]} : vector<2x8x128xf32> to vector<2x1x128xf32>
    %424 = vector.shape_cast %423 : vector<2x1x128xf32> to vector<2x128xf32>
    %c1_142 = arith.constant 1 : index
    %c0_143 = arith.constant 0 : index
    %c0_144 = arith.constant 0 : index
    %425 = vector.load %arg11[%c1_142, %c0_143, %c0_144] : memref<4x32x128xf32, #tpu.memory_space<vmem>>, vector<1x32x128xf32>
    %426 = vector.shape_cast %425 : vector<1x32x128xf32> to vector<32x128xf32>
    %cst_145 = arith.constant dense<0.000000e+00> : vector<2x128xf32>
    %427 = tpu.matmul %397, %426, %cst_145 {dimension_numbers = #tpu.dot_dimension_numbers<[1], [0], [0], [1], [0, 0, 1, 1], [], []>} : vector<2x32xf32>, vector<32x128xf32>, vector<2x128xf32> -> vector<2x128xf32>
    %428 = arith.addf %424, %427 : vector<2x128xf32>
    %429 = vector.extract_strided_slice %428 {offsets = [0, 0], sizes = [2, 96], strides = [1, 1]} : vector<2x128xf32> to vector<2x96xf32>
    %430 = arith.negf %429 : vector<2x96xf32>
    %431 = math.exp %430 : vector<2x96xf32>
    %cst_146 = arith.constant 1.000000e+00 : f32
    %432 = vector.broadcast %cst_146 : f32 to vector<2x96xf32>
    %433 = arith.addf %432, %431 : vector<2x96xf32>
    %434 = arith.divf %432, %433 : vector<2x96xf32>
    %435 = vector.extract_strided_slice %428 {offsets = [0, 96], sizes = [2, 32], strides = [1, 1]} : vector<2x128xf32> to vector<2x32xf32>
    %436 = math.tanh %435 : vector<2x32xf32>
    %437 = vector.extract_strided_slice %434 {offsets = [0, 0], sizes = [2, 32], strides = [1, 1]} : vector<2x96xf32> to vector<2x32xf32>
    %438 = vector.extract_strided_slice %434 {offsets = [0, 32], sizes = [2, 32], strides = [1, 1]} : vector<2x96xf32> to vector<2x32xf32>
    %439 = vector.extract_strided_slice %434 {offsets = [0, 64], sizes = [2, 32], strides = [1, 1]} : vector<2x96xf32> to vector<2x32xf32>
    %440 = arith.mulf %438, %395 : vector<2x32xf32>
    %441 = arith.mulf %437, %436 : vector<2x32xf32>
    %442 = arith.addf %440, %441 : vector<2x32xf32>
    %443 = math.tanh %442 : vector<2x32xf32>
    %444 = arith.mulf %439, %443 : vector<2x32xf32>
    %c2_147 = arith.constant 2 : index
    %c0_148 = arith.constant 0 : index
    %c0_149 = arith.constant 0 : index
    %445 = vector.load %arg11[%c2_147, %c0_148, %c0_149] : memref<4x32x128xf32, #tpu.memory_space<vmem>>, vector<1x32x128xf32>
    %446 = vector.shape_cast %445 : vector<1x32x128xf32> to vector<32x128xf32>
    %cst_150 = arith.constant dense<0.000000e+00> : vector<2x128xf32>
    %447 = tpu.matmul %444, %446, %cst_150 {dimension_numbers = #tpu.dot_dimension_numbers<[1], [0], [0], [1], [0, 0, 1, 1], [], []>} : vector<2x32xf32>, vector<32x128xf32>, vector<2x128xf32> -> vector<2x128xf32>
    %448 = vector.broadcast %230 : vector<1x128xf32> to vector<2x128xf32>
    %449 = arith.addf %447, %448 : vector<2x128xf32>
    %c3_151 = arith.constant 3 : index
    %c0_152 = arith.constant 0 : index
    %c0_153 = arith.constant 0 : index
    %450 = vector.load %arg11[%c3_151, %c0_152, %c0_153] : memref<4x32x128xf32, #tpu.memory_space<vmem>>, vector<1x32x128xf32>
    %451 = vector.shape_cast %450 : vector<1x32x128xf32> to vector<32x128xf32>
    %cst_154 = arith.constant dense<0.000000e+00> : vector<2x128xf32>
    %452 = tpu.matmul %422, %451, %cst_154 {dimension_numbers = #tpu.dot_dimension_numbers<[1], [0], [0], [1], [0, 0, 1, 1], [], []>} : vector<2x32xf32>, vector<32x128xf32>, vector<2x128xf32> -> vector<2x128xf32>
    %453 = arith.addf %449, %452 : vector<2x128xf32>
    %454 = vector.extract_strided_slice %453 {offsets = [0, 0], sizes = [2, 96], strides = [1, 1]} : vector<2x128xf32> to vector<2x96xf32>
    %455 = arith.negf %454 : vector<2x96xf32>
    %456 = math.exp %455 : vector<2x96xf32>
    %cst_155 = arith.constant 1.000000e+00 : f32
    %457 = vector.broadcast %cst_155 : f32 to vector<2x96xf32>
    %458 = arith.addf %457, %456 : vector<2x96xf32>
    %459 = arith.divf %457, %458 : vector<2x96xf32>
    %460 = vector.extract_strided_slice %453 {offsets = [0, 96], sizes = [2, 32], strides = [1, 1]} : vector<2x128xf32> to vector<2x32xf32>
    %461 = math.tanh %460 : vector<2x32xf32>
    %462 = vector.extract_strided_slice %459 {offsets = [0, 0], sizes = [2, 32], strides = [1, 1]} : vector<2x96xf32> to vector<2x32xf32>
    %463 = vector.extract_strided_slice %459 {offsets = [0, 32], sizes = [2, 32], strides = [1, 1]} : vector<2x96xf32> to vector<2x32xf32>
    %464 = vector.extract_strided_slice %459 {offsets = [0, 64], sizes = [2, 32], strides = [1, 1]} : vector<2x96xf32> to vector<2x32xf32>
    %465 = arith.mulf %463, %420 : vector<2x32xf32>
    %466 = arith.mulf %462, %461 : vector<2x32xf32>
    %467 = arith.addf %465, %466 : vector<2x32xf32>
    %468 = math.tanh %467 : vector<2x32xf32>
    %469 = arith.mulf %464, %468 : vector<2x32xf32>
    %470 = vector.extract_strided_slice %229 {offsets = [0, 5, 0], sizes = [2, 1, 128], strides = [1, 1, 1]} : vector<2x8x128xf32> to vector<2x1x128xf32>
    %471 = vector.shape_cast %470 : vector<2x1x128xf32> to vector<2x128xf32>
    %c1_156 = arith.constant 1 : index
    %c0_157 = arith.constant 0 : index
    %c0_158 = arith.constant 0 : index
    %472 = vector.load %arg11[%c1_156, %c0_157, %c0_158] : memref<4x32x128xf32, #tpu.memory_space<vmem>>, vector<1x32x128xf32>
    %473 = vector.shape_cast %472 : vector<1x32x128xf32> to vector<32x128xf32>
    %cst_159 = arith.constant dense<0.000000e+00> : vector<2x128xf32>
    %474 = tpu.matmul %444, %473, %cst_159 {dimension_numbers = #tpu.dot_dimension_numbers<[1], [0], [0], [1], [0, 0, 1, 1], [], []>} : vector<2x32xf32>, vector<32x128xf32>, vector<2x128xf32> -> vector<2x128xf32>
    %475 = arith.addf %471, %474 : vector<2x128xf32>
    %476 = vector.extract_strided_slice %475 {offsets = [0, 0], sizes = [2, 96], strides = [1, 1]} : vector<2x128xf32> to vector<2x96xf32>
    %477 = arith.negf %476 : vector<2x96xf32>
    %478 = math.exp %477 : vector<2x96xf32>
    %cst_160 = arith.constant 1.000000e+00 : f32
    %479 = vector.broadcast %cst_160 : f32 to vector<2x96xf32>
    %480 = arith.addf %479, %478 : vector<2x96xf32>
    %481 = arith.divf %479, %480 : vector<2x96xf32>
    %482 = vector.extract_strided_slice %475 {offsets = [0, 96], sizes = [2, 32], strides = [1, 1]} : vector<2x128xf32> to vector<2x32xf32>
    %483 = math.tanh %482 : vector<2x32xf32>
    %484 = vector.extract_strided_slice %481 {offsets = [0, 0], sizes = [2, 32], strides = [1, 1]} : vector<2x96xf32> to vector<2x32xf32>
    %485 = vector.extract_strided_slice %481 {offsets = [0, 32], sizes = [2, 32], strides = [1, 1]} : vector<2x96xf32> to vector<2x32xf32>
    %486 = vector.extract_strided_slice %481 {offsets = [0, 64], sizes = [2, 32], strides = [1, 1]} : vector<2x96xf32> to vector<2x32xf32>
    %487 = arith.mulf %485, %442 : vector<2x32xf32>
    %488 = arith.mulf %484, %483 : vector<2x32xf32>
    %489 = arith.addf %487, %488 : vector<2x32xf32>
    %490 = math.tanh %489 : vector<2x32xf32>
    %491 = arith.mulf %486, %490 : vector<2x32xf32>
    %c2_161 = arith.constant 2 : index
    %c0_162 = arith.constant 0 : index
    %c0_163 = arith.constant 0 : index
    %492 = vector.load %arg11[%c2_161, %c0_162, %c0_163] : memref<4x32x128xf32, #tpu.memory_space<vmem>>, vector<1x32x128xf32>
    %493 = vector.shape_cast %492 : vector<1x32x128xf32> to vector<32x128xf32>
    %cst_164 = arith.constant dense<0.000000e+00> : vector<2x128xf32>
    %494 = tpu.matmul %491, %493, %cst_164 {dimension_numbers = #tpu.dot_dimension_numbers<[1], [0], [0], [1], [0, 0, 1, 1], [], []>} : vector<2x32xf32>, vector<32x128xf32>, vector<2x128xf32> -> vector<2x128xf32>
    %495 = vector.broadcast %230 : vector<1x128xf32> to vector<2x128xf32>
    %496 = arith.addf %494, %495 : vector<2x128xf32>
    %c3_165 = arith.constant 3 : index
    %c0_166 = arith.constant 0 : index
    %c0_167 = arith.constant 0 : index
    %497 = vector.load %arg11[%c3_165, %c0_166, %c0_167] : memref<4x32x128xf32, #tpu.memory_space<vmem>>, vector<1x32x128xf32>
    %498 = vector.shape_cast %497 : vector<1x32x128xf32> to vector<32x128xf32>
    %cst_168 = arith.constant dense<0.000000e+00> : vector<2x128xf32>
    %499 = tpu.matmul %469, %498, %cst_168 {dimension_numbers = #tpu.dot_dimension_numbers<[1], [0], [0], [1], [0, 0, 1, 1], [], []>} : vector<2x32xf32>, vector<32x128xf32>, vector<2x128xf32> -> vector<2x128xf32>
    %500 = arith.addf %496, %499 : vector<2x128xf32>
    %501 = vector.extract_strided_slice %500 {offsets = [0, 0], sizes = [2, 96], strides = [1, 1]} : vector<2x128xf32> to vector<2x96xf32>
    %502 = arith.negf %501 : vector<2x96xf32>
    %503 = math.exp %502 : vector<2x96xf32>
    %cst_169 = arith.constant 1.000000e+00 : f32
    %504 = vector.broadcast %cst_169 : f32 to vector<2x96xf32>
    %505 = arith.addf %504, %503 : vector<2x96xf32>
    %506 = arith.divf %504, %505 : vector<2x96xf32>
    %507 = vector.extract_strided_slice %500 {offsets = [0, 96], sizes = [2, 32], strides = [1, 1]} : vector<2x128xf32> to vector<2x32xf32>
    %508 = math.tanh %507 : vector<2x32xf32>
    %509 = vector.extract_strided_slice %506 {offsets = [0, 0], sizes = [2, 32], strides = [1, 1]} : vector<2x96xf32> to vector<2x32xf32>
    %510 = vector.extract_strided_slice %506 {offsets = [0, 32], sizes = [2, 32], strides = [1, 1]} : vector<2x96xf32> to vector<2x32xf32>
    %511 = vector.extract_strided_slice %506 {offsets = [0, 64], sizes = [2, 32], strides = [1, 1]} : vector<2x96xf32> to vector<2x32xf32>
    %512 = arith.mulf %510, %467 : vector<2x32xf32>
    %513 = arith.mulf %509, %508 : vector<2x32xf32>
    %514 = arith.addf %512, %513 : vector<2x32xf32>
    %515 = math.tanh %514 : vector<2x32xf32>
    %516 = arith.mulf %511, %515 : vector<2x32xf32>
    %517 = vector.extract_strided_slice %229 {offsets = [0, 6, 0], sizes = [2, 1, 128], strides = [1, 1, 1]} : vector<2x8x128xf32> to vector<2x1x128xf32>
    %518 = vector.shape_cast %517 : vector<2x1x128xf32> to vector<2x128xf32>
    %c1_170 = arith.constant 1 : index
    %c0_171 = arith.constant 0 : index
    %c0_172 = arith.constant 0 : index
    %519 = vector.load %arg11[%c1_170, %c0_171, %c0_172] : memref<4x32x128xf32, #tpu.memory_space<vmem>>, vector<1x32x128xf32>
    %520 = vector.shape_cast %519 : vector<1x32x128xf32> to vector<32x128xf32>
    %cst_173 = arith.constant dense<0.000000e+00> : vector<2x128xf32>
    %521 = tpu.matmul %491, %520, %cst_173 {dimension_numbers = #tpu.dot_dimension_numbers<[1], [0], [0], [1], [0, 0, 1, 1], [], []>} : vector<2x32xf32>, vector<32x128xf32>, vector<2x128xf32> -> vector<2x128xf32>
    %522 = arith.addf %518, %521 : vector<2x128xf32>
    %523 = vector.extract_strided_slice %522 {offsets = [0, 0], sizes = [2, 96], strides = [1, 1]} : vector<2x128xf32> to vector<2x96xf32>
    %524 = arith.negf %523 : vector<2x96xf32>
    %525 = math.exp %524 : vector<2x96xf32>
    %cst_174 = arith.constant 1.000000e+00 : f32
    %526 = vector.broadcast %cst_174 : f32 to vector<2x96xf32>
    %527 = arith.addf %526, %525 : vector<2x96xf32>
    %528 = arith.divf %526, %527 : vector<2x96xf32>
    %529 = vector.extract_strided_slice %522 {offsets = [0, 96], sizes = [2, 32], strides = [1, 1]} : vector<2x128xf32> to vector<2x32xf32>
    %530 = math.tanh %529 : vector<2x32xf32>
    %531 = vector.extract_strided_slice %528 {offsets = [0, 0], sizes = [2, 32], strides = [1, 1]} : vector<2x96xf32> to vector<2x32xf32>
    %532 = vector.extract_strided_slice %528 {offsets = [0, 32], sizes = [2, 32], strides = [1, 1]} : vector<2x96xf32> to vector<2x32xf32>
    %533 = vector.extract_strided_slice %528 {offsets = [0, 64], sizes = [2, 32], strides = [1, 1]} : vector<2x96xf32> to vector<2x32xf32>
    %534 = arith.mulf %532, %489 : vector<2x32xf32>
    %535 = arith.mulf %531, %530 : vector<2x32xf32>
    %536 = arith.addf %534, %535 : vector<2x32xf32>
    %537 = math.tanh %536 : vector<2x32xf32>
    %538 = arith.mulf %533, %537 : vector<2x32xf32>
    %c2_175 = arith.constant 2 : index
    %c0_176 = arith.constant 0 : index
    %c0_177 = arith.constant 0 : index
    %539 = vector.load %arg11[%c2_175, %c0_176, %c0_177] : memref<4x32x128xf32, #tpu.memory_space<vmem>>, vector<1x32x128xf32>
    %540 = vector.shape_cast %539 : vector<1x32x128xf32> to vector<32x128xf32>
    %cst_178 = arith.constant dense<0.000000e+00> : vector<2x128xf32>
    %541 = tpu.matmul %538, %540, %cst_178 {dimension_numbers = #tpu.dot_dimension_numbers<[1], [0], [0], [1], [0, 0, 1, 1], [], []>} : vector<2x32xf32>, vector<32x128xf32>, vector<2x128xf32> -> vector<2x128xf32>
    %542 = vector.broadcast %230 : vector<1x128xf32> to vector<2x128xf32>
    %543 = arith.addf %541, %542 : vector<2x128xf32>
    %c3_179 = arith.constant 3 : index
    %c0_180 = arith.constant 0 : index
    %c0_181 = arith.constant 0 : index
    %544 = vector.load %arg11[%c3_179, %c0_180, %c0_181] : memref<4x32x128xf32, #tpu.memory_space<vmem>>, vector<1x32x128xf32>
    %545 = vector.shape_cast %544 : vector<1x32x128xf32> to vector<32x128xf32>
    %cst_182 = arith.constant dense<0.000000e+00> : vector<2x128xf32>
    %546 = tpu.matmul %516, %545, %cst_182 {dimension_numbers = #tpu.dot_dimension_numbers<[1], [0], [0], [1], [0, 0, 1, 1], [], []>} : vector<2x32xf32>, vector<32x128xf32>, vector<2x128xf32> -> vector<2x128xf32>
    %547 = arith.addf %543, %546 : vector<2x128xf32>
    %548 = vector.extract_strided_slice %547 {offsets = [0, 0], sizes = [2, 96], strides = [1, 1]} : vector<2x128xf32> to vector<2x96xf32>
    %549 = arith.negf %548 : vector<2x96xf32>
    %550 = math.exp %549 : vector<2x96xf32>
    %cst_183 = arith.constant 1.000000e+00 : f32
    %551 = vector.broadcast %cst_183 : f32 to vector<2x96xf32>
    %552 = arith.addf %551, %550 : vector<2x96xf32>
    %553 = arith.divf %551, %552 : vector<2x96xf32>
    %554 = vector.extract_strided_slice %547 {offsets = [0, 96], sizes = [2, 32], strides = [1, 1]} : vector<2x128xf32> to vector<2x32xf32>
    %555 = math.tanh %554 : vector<2x32xf32>
    %556 = vector.extract_strided_slice %553 {offsets = [0, 0], sizes = [2, 32], strides = [1, 1]} : vector<2x96xf32> to vector<2x32xf32>
    %557 = vector.extract_strided_slice %553 {offsets = [0, 32], sizes = [2, 32], strides = [1, 1]} : vector<2x96xf32> to vector<2x32xf32>
    %558 = vector.extract_strided_slice %553 {offsets = [0, 64], sizes = [2, 32], strides = [1, 1]} : vector<2x96xf32> to vector<2x32xf32>
    %559 = arith.mulf %557, %514 : vector<2x32xf32>
    %560 = arith.mulf %556, %555 : vector<2x32xf32>
    %561 = arith.addf %559, %560 : vector<2x32xf32>
    %562 = math.tanh %561 : vector<2x32xf32>
    %563 = arith.mulf %558, %562 : vector<2x32xf32>
    %564 = vector.extract_strided_slice %229 {offsets = [0, 7, 0], sizes = [2, 1, 128], strides = [1, 1, 1]} : vector<2x8x128xf32> to vector<2x1x128xf32>
    %565 = vector.shape_cast %564 : vector<2x1x128xf32> to vector<2x128xf32>
    %c1_184 = arith.constant 1 : index
    %c0_185 = arith.constant 0 : index
    %c0_186 = arith.constant 0 : index
    %566 = vector.load %arg11[%c1_184, %c0_185, %c0_186] : memref<4x32x128xf32, #tpu.memory_space<vmem>>, vector<1x32x128xf32>
    %567 = vector.shape_cast %566 : vector<1x32x128xf32> to vector<32x128xf32>
    %cst_187 = arith.constant dense<0.000000e+00> : vector<2x128xf32>
    %568 = tpu.matmul %538, %567, %cst_187 {dimension_numbers = #tpu.dot_dimension_numbers<[1], [0], [0], [1], [0, 0, 1, 1], [], []>} : vector<2x32xf32>, vector<32x128xf32>, vector<2x128xf32> -> vector<2x128xf32>
    %569 = arith.addf %565, %568 : vector<2x128xf32>
    %570 = vector.extract_strided_slice %569 {offsets = [0, 0], sizes = [2, 96], strides = [1, 1]} : vector<2x128xf32> to vector<2x96xf32>
    %571 = arith.negf %570 : vector<2x96xf32>
    %572 = math.exp %571 : vector<2x96xf32>
    %cst_188 = arith.constant 1.000000e+00 : f32
    %573 = vector.broadcast %cst_188 : f32 to vector<2x96xf32>
    %574 = arith.addf %573, %572 : vector<2x96xf32>
    %575 = arith.divf %573, %574 : vector<2x96xf32>
    %576 = vector.extract_strided_slice %569 {offsets = [0, 96], sizes = [2, 32], strides = [1, 1]} : vector<2x128xf32> to vector<2x32xf32>
    %577 = math.tanh %576 : vector<2x32xf32>
    %578 = vector.extract_strided_slice %575 {offsets = [0, 0], sizes = [2, 32], strides = [1, 1]} : vector<2x96xf32> to vector<2x32xf32>
    %579 = vector.extract_strided_slice %575 {offsets = [0, 32], sizes = [2, 32], strides = [1, 1]} : vector<2x96xf32> to vector<2x32xf32>
    %580 = vector.extract_strided_slice %575 {offsets = [0, 64], sizes = [2, 32], strides = [1, 1]} : vector<2x96xf32> to vector<2x32xf32>
    %581 = arith.mulf %579, %536 : vector<2x32xf32>
    %582 = arith.mulf %578, %577 : vector<2x32xf32>
    %583 = arith.addf %581, %582 : vector<2x32xf32>
    %584 = math.tanh %583 : vector<2x32xf32>
    %585 = arith.mulf %580, %584 : vector<2x32xf32>
    %c2_189 = arith.constant 2 : index
    %c0_190 = arith.constant 0 : index
    %c0_191 = arith.constant 0 : index
    %586 = vector.load %arg11[%c2_189, %c0_190, %c0_191] : memref<4x32x128xf32, #tpu.memory_space<vmem>>, vector<1x32x128xf32>
    %587 = vector.shape_cast %586 : vector<1x32x128xf32> to vector<32x128xf32>
    %cst_192 = arith.constant dense<0.000000e+00> : vector<2x128xf32>
    %588 = tpu.matmul %585, %587, %cst_192 {dimension_numbers = #tpu.dot_dimension_numbers<[1], [0], [0], [1], [0, 0, 1, 1], [], []>} : vector<2x32xf32>, vector<32x128xf32>, vector<2x128xf32> -> vector<2x128xf32>
    %589 = vector.broadcast %230 : vector<1x128xf32> to vector<2x128xf32>
    %590 = arith.addf %588, %589 : vector<2x128xf32>
    %c3_193 = arith.constant 3 : index
    %c0_194 = arith.constant 0 : index
    %c0_195 = arith.constant 0 : index
    %591 = vector.load %arg11[%c3_193, %c0_194, %c0_195] : memref<4x32x128xf32, #tpu.memory_space<vmem>>, vector<1x32x128xf32>
    %592 = vector.shape_cast %591 : vector<1x32x128xf32> to vector<32x128xf32>
    %cst_196 = arith.constant dense<0.000000e+00> : vector<2x128xf32>
    %593 = tpu.matmul %563, %592, %cst_196 {dimension_numbers = #tpu.dot_dimension_numbers<[1], [0], [0], [1], [0, 0, 1, 1], [], []>} : vector<2x32xf32>, vector<32x128xf32>, vector<2x128xf32> -> vector<2x128xf32>
    %594 = arith.addf %590, %593 : vector<2x128xf32>
    %595 = vector.extract_strided_slice %594 {offsets = [0, 0], sizes = [2, 96], strides = [1, 1]} : vector<2x128xf32> to vector<2x96xf32>
    %596 = arith.negf %595 : vector<2x96xf32>
    %597 = math.exp %596 : vector<2x96xf32>
    %cst_197 = arith.constant 1.000000e+00 : f32
    %598 = vector.broadcast %cst_197 : f32 to vector<2x96xf32>
    %599 = arith.addf %598, %597 : vector<2x96xf32>
    %600 = arith.divf %598, %599 : vector<2x96xf32>
    %601 = vector.extract_strided_slice %594 {offsets = [0, 96], sizes = [2, 32], strides = [1, 1]} : vector<2x128xf32> to vector<2x32xf32>
    %602 = math.tanh %601 : vector<2x32xf32>
    %603 = vector.extract_strided_slice %600 {offsets = [0, 0], sizes = [2, 32], strides = [1, 1]} : vector<2x96xf32> to vector<2x32xf32>
    %604 = vector.extract_strided_slice %600 {offsets = [0, 32], sizes = [2, 32], strides = [1, 1]} : vector<2x96xf32> to vector<2x32xf32>
    %605 = vector.extract_strided_slice %600 {offsets = [0, 64], sizes = [2, 32], strides = [1, 1]} : vector<2x96xf32> to vector<2x32xf32>
    %606 = arith.mulf %604, %561 : vector<2x32xf32>
    %607 = arith.mulf %603, %602 : vector<2x32xf32>
    %608 = arith.addf %606, %607 : vector<2x32xf32>
    %609 = math.tanh %608 : vector<2x32xf32>
    %610 = arith.mulf %605, %609 : vector<2x32xf32>
    %611 = vector.shape_cast %281 : vector<2x32xf32> to vector<2x1x32xf32>
    %612 = vector.shape_cast %328 : vector<2x32xf32> to vector<2x1x32xf32>
    %613 = vector.shape_cast %375 : vector<2x32xf32> to vector<2x1x32xf32>
    %614 = vector.shape_cast %422 : vector<2x32xf32> to vector<2x1x32xf32>
    %615 = vector.shape_cast %469 : vector<2x32xf32> to vector<2x1x32xf32>
    %616 = vector.shape_cast %516 : vector<2x32xf32> to vector<2x1x32xf32>
    %617 = vector.shape_cast %563 : vector<2x32xf32> to vector<2x1x32xf32>
    %618 = vector.shape_cast %610 : vector<2x32xf32> to vector<2x1x32xf32>
    %619 = tpu.concatenate %611, %612, %613, %614, %615, %616, %617, %618 in 1 : vector<2x1x32xf32>, vector<2x1x32xf32>, vector<2x1x32xf32>, vector<2x1x32xf32>, vector<2x1x32xf32>, vector<2x1x32xf32>, vector<2x1x32xf32>, vector<2x1x32xf32> -> vector<2x8x32xf32>
    %620 = vector.extract_strided_slice %0 {offsets = [16, 0], sizes = [1, 32], strides = [1, 1]} : vector<24x32xf32> to vector<1x32xf32>
    %621 = vector.shape_cast %620 : vector<1x32xf32> to vector<1x1x32xf32>
    %622 = vector.broadcast %621 : vector<1x1x32xf32> to vector<2x8x32xf32>
    %623 = arith.mulf %619, %622 : vector<2x8x32xf32>
    %cst_198 = arith.constant dense<0.000000e+00> : vector<2x8xf32>
    %624 = vector.multi_reduction <add>, %623, %cst_198 [2] : vector<2x8x32xf32> to vector<2x8xf32>
    %625 = vector.extract_strided_slice %0 {offsets = [17, 0], sizes = [1, 1], strides = [1, 1]} : vector<24x32xf32> to vector<1x1xf32>
    %626 = vector.broadcast %625 : vector<1x1xf32> to vector<2x8xf32>
    %627 = arith.addf %624, %626 : vector<2x8xf32>
    %628 = arith.negf %627 : vector<2x8xf32>
    %629 = math.exp %628 : vector<2x8xf32>
    %cst_199 = arith.constant 1.000000e+00 : f32
    %630 = vector.broadcast %cst_199 : f32 to vector<2x8xf32>
    %631 = arith.addf %630, %629 : vector<2x8xf32>
    %632 = arith.divf %630, %631 : vector<2x8xf32>
    %c0_200 = arith.constant 0 : index
    %c0_201 = arith.constant 0 : index
    %633 = vector.load %arg13[%c0_200, %c0_201] : memref<2x8xf32, #tpu.memory_space<vmem>>, vector<2x8xf32>
    tpu.vector_store %arg13[%c0_200, %c0_201], %632 {strides = array<i32>} : memref<2x8xf32, #tpu.memory_space<vmem>>, vector<2x8xf32>,
    return
  }
}

</mosaic_0001>

<bundles_post_ra>
// kernel: lastquery_forward.1
= control target key start
LH: loop header
LB: loop body
LE: loop exit
PB: predicated region body
PF: predicated region fallthrough
CT: control target
= control target key end

     0   :  { %vm196_vm0 = vcmask 1043456   ;;  %vm189_vm1 = vcmask 31744   ;;  %vm60_vm2 = vcmask 392192   ;;  %s6186_s0 = inlined_call_operand.vmem [shape: f32[16,48], index: 0, kind: input, shape index: {}]   ;;  %s6187_s1 = inlined_call_operand.vmem [shape: f32[16,4], index: 1, kind: input, shape index: {}]   ;;  %s6188_s2 = inlined_call_operand.vmem [shape: f32[2,8], index: 2, kind: input, shape index: {}]   ;;  %s6189_s3 = inlined_call_operand.vmem [shape: f32[48,32], index: 3, kind: input, shape index: {}]   ;;  %s6190_s4 = inlined_call_operand.vmem [shape: f32[4,32], index: 4, kind: input, shape index: {}]   ;;  %s6191_s5 = inlined_call_operand.vmem [shape: f32[5,32,32], index: 5, kind: input, shape index: {}]   ;;  %s6192_s6 = inlined_call_operand.vmem [shape: f32[32,96], index: 6, kind: input, shape index: {}]   ;;  %s6193_s7 = inlined_call_operand.vmem [shape: f32[1,96], index: 7, kind: input, shape index: {}]   ;;  %s6194_s8 = inlined_call_operand.vmem [shape: f32[32,4], index: 8, kind: input, shape index: {}]   ;;  %s6195_s9 = inlined_call_operand.vmem [shape: f32[4,32], index: 9, kind: input, shape index: {}]   ;;  %s6196_s10 = inlined_call_operand.vmem [shape: f32[24,32], index: 10, kind: input, shape index: {}]   ;;  %s6197_s11 = inlined_call_operand.vmem [shape: f32[4,32,128], index: 11, kind: input, shape index: {}]   ;;  %s6198_s12 = inlined_call_operand.vmem [shape: f32[2,128], index: 12, kind: input, shape index: {}]   ;;  %s6199_s13 = inlined_call_operand.hbm [shape: f32[2,8], index: 13, kind: output, shape index: {}]  }
   0x1   :  { %v55_v0 = vld [vmem:[%s6189_s3 + $0x28] sm:$0xff]  ;;  %v184_v1 = vld [vmem:[%s6190_s4] sm:$0xf]  ;;  %v53_v5 = vld [vmem:[%s6189_s3 + $0x18] sm:$0xff] }
   0x2   :  { %v182_v2 = vld [vmem:[%s6187_s1] sm:$0xff]  ;;  %4476 = vmatprep.subr.mxu0 %v55_v0  ;;  %4491 = vmatprep.subr.msk.mxu1 %vm196_vm0, %v184_v1  ;;  %v183_v4 = vld [vmem:[%s6187_s1 + $0x8] sm:$0xff]  ;;  %v52_v7 = vld [vmem:[%s6189_s3 + $0x10] sm:$0xff] }
   0x3   :  { %v54_v3 = vld [vmem:[%s6189_s3 + $0x20] sm:$0xff]  ;;  %4477 = vmatpush3.msra.mxu0 %v55_v0  ;;  %4492 = vmatpush3.msk.msra.mxu1 %vm196_vm0, %v184_v1 }
   0x4   :  { %4493 = vmatprep.mubr.msk.f32.mxu1 %vm189_vm1, %v182_v2  ;;  %4478 = vmatprep.subr.mxu0 %v54_v3  ;;  %v48_v6 = vld [vmem:[%s6186_s0] sm:$0xff] }
   0x5   :  { %4494 = vmatmul.mubr.msk.f32.vlgmr.msra.gmra.mxu1 %vm189_vm1, %v183_v4  ;;  %4479 = vmatpush3.msra.mxu0 %v54_v3 }
   0x6   :  { %18 = vsyncpa [#allocation3], 0  ;;  %4480 = vmatprep.subr.mxu0 %v53_v5  ;;  %4488 = vmatprep.mubr.msk.f32.mxu0 %vm60_vm2, %v48_v6  ;;  %v51_v8 = vld [vmem:[%s6189_s3 + $0x8] sm:$0xff]  ;;  %v50_v9 = vld [vmem:[%s6189_s3] sm:$0xff]  ;;  %v56_v11 = vlaneseq  ;;  %vm142_vm3 = vcmask 261120   ;;  %s5126_s25 = smov 96  }
   0x7   :  { %4481 = vmatpush3.msra.mxu0 %v53_v5  ;;  %v49_v10 = vld [vmem:[%s6186_s0 + $0x8] sm:$0xff]  ;;  %v5248_v14 = vld [vmem:[%s6196_s10] sm:$0xff]  ;;  %v4201_v50 = vld [vmem:[%s6191_s5 + $0x38] sm:$0xff]  ;;  %vm5128_vm5 = vmmov 0   ;;  %vm904_vm6 = vcmask 1041409   ;;  %s5130_s20 = smov 32  }
   0x8   :  { %4482 = vmatprep.subr.mxu0 %v52_v7  ;;  %v5242_v12 = vshrl.u32 %v56_v11, 7  ;;  %v4200_v51 = vld [vmem:[%s6191_s5 + $0x30] sm:$0xff]  ;;  %4496 = vmatprep.subr.mxu1 %v4201_v50  ;;  %v4199_v52 = vld [vmem:[%s6191_s5 + $0x28] sm:$0xff]  ;;  %v4198_v53 = vld [vmem:[%s6191_s5 + $0x20] sm:$0xff]  ;;  %vm4100_vm7 = vcmask 1040384   ;;  %vm4103_vm8 = vcmask 1041408  }
   0x9   :  { %4483 = vmatpush3.msra.mxu0 %v52_v7  ;;  %4497 = vmatpush3.msra.mxu1 %v4201_v50  ;;  %v318_v54 = vld [vmem:[%s6191_s5 + $0x18] sm:$0xff]  ;;  %vm4106_vm9 = vcmask 1042432   ;;  %vm4111_vm10 = vcmask 1044480   ;;  %vm4114_vm11 = vcmask 1045504   ;;  %vm4117_vm12 = vcmask 1046528  }
   0xa   :  { %4484 = vmatprep.subr.mxu0 %v51_v8  ;;  %v187_v13 = vsub.s32 3, %v5242_v12  ;;  %v5255_v21 = vsub.s32 0, %v5242_v12  ;;  %4498 = vmatprep.subr.mxu1 %v4200_v51  ;;  %v303_v1 = vsub.s32 4, %v5242_v12  ;;  %v309_v3 = vsub.s32 5, %v5242_v12 }
   0xb   :  { %4485 = vmatpush3.msra.mxu0 %v51_v8  ;;  %4499 = vmatpush3.msra.mxu1 %v4200_v51  ;;  %vm4177_vm13 = vcmask 58368  }
   0xc   :  { %4486 = vmatprep.subr.mxu0 %v50_v9  ;;  %v188_v15 = vrot.slane %v5248_v14, %v187_v13  ;;  %v59_v24 = vrot.slane %v5248_v14, %v5255_v21  ;;  %4500 = vmatprep.subr.mxu1 %v4199_v52  ;;  %v304_v5 = vrot.slane %v5248_v14, %v303_v1 }
   0xd   :  { %4487 = vmatpush3.msra.mxu0 %v50_v9  ;;  %4501 = vmatpush3.msra.mxu1 %v4199_v52  ;;  %v310_v8 = vrot.slane %v5248_v14, %v309_v3 }
   0xe   :  { %4489 = vmatmul.mubr.msk.f32.vlgmr.msra.gmra.mxu0 %vm60_vm2, %v49_v10  ;;  %4502 = vmatprep.subr.mxu1 %v4198_v53 }
   0xf   :  { %4503 = vmatpush3.msra.mxu1 %v4198_v53 }
  0x10   :  { %4507 = vmatprep.subr.mxu1 %v318_v54 }
  0xc5   :  { %v4495_v16 = vpop.f32.mrf.mxu1 }
  0xc6   :  { %v272_v19 = vadd.f32 %v4495_v16, %v188_v15 }
  0xc7   :  { %v266_v17 = vpop.f32.mrf.mxu1 }
  0xc8   :  { %v267_v18 = vadd.f32 %v266_v17, %v188_v15  ;;  %v278_v23 = vsel %vm142_vm3, %v272_v19, 0.0  ;;  %v5294_v15 = vsub.s32 1, %v5242_v12 }
  0xca   :  { %v275_v20 = vsel %vm142_vm3, %v267_v18, 0.0 }
  0xcb   :  { %276 = vadd.xlane.f32.xlu0 %v275_v20 }
  0xce   :  { %v4490_v22 = vpop.f32.mrf.mxu0 }
  0xcf   :  { %279 = vadd.xlane.f32.xlu0 %v278_v23  ;;  %v139_v27 = vadd.f32 %v4490_v22, %v59_v24  ;;  %v173_v22 = vrot.slane %v5248_v14, %v5294_v15 }
  0xd0   :  { %v133_v25 = vpop.f32.mrf.mxu0 }
  0xd1   :  { %v134_v26 = vadd.f32 %v133_v25, %v59_v24  ;;  %v146_v29 = vsel %vm142_vm3, %v139_v27, 0.0 }
  0xd3   :  { %v143_v28 = vsel %vm142_vm3, %v134_v26, 0.0 }
  0xd4   :  { %144 = vadd.xlane.f32.xlu1 %v143_v28  ;;  %v317_v28 = vld [vmem:[%s6191_s5 + $0x10] sm:$0xff] }
  0xd8   :  { %147 = vadd.xlane.f32.xlu1 %v146_v29 }
 0x154   :  { %v277_v30 = vpop.xlane.xlu0 %276 }
 0x155   :  { %v281_v31 = vmul.f32 0.03125, %v277_v30 }
 0x157   :  { %v283_v32 = vsub.f32 %v267_v18, %v281_v31  ;;  %v178_v18 = vsub.s32 2, %v5242_v12  ;;  %v316_v31 = vld [vmem:[%s6191_s5 + $0x8] sm:$0xff] }
 0x158   :  { %v280_v33 = vpop.xlane.xlu0 %279 }
 0x159   :  { %v282_v34 = vmul.f32 0.03125, %v280_v33  ;;  %v285_v35 = vmul.f32 %v283_v32, %v283_v32 }
 0x15b   :  { %v284_v36 = vsub.f32 %v272_v19, %v282_v34  ;;  %v287_v37 = vsel %vm142_vm3, %v285_v35, 0.0 }
 0x15c   :  { %288 = vadd.xlane.f32.xlu0 %v287_v37 }
 0x15d   :  { %v145_v38 = vpop.xlane.xlu1 %144  ;;  %v286_v39 = vmul.f32 %v284_v36, %v284_v36 }
 0x15e   :  { %v150_v40 = vmul.f32 0.03125, %v145_v38 }
 0x15f   :  { %v290_v41 = vsel %vm142_vm3, %v286_v39, 0.0 }
 0x160   :  { %v152_v42 = vsub.f32 %v134_v26, %v150_v40  ;;  %291 = vadd.xlane.f32.xlu1 %v290_v41  ;;  %v179_v26 = vrot.slane %v5248_v14, %v178_v18  ;;  %v490_v40 = vsub.s32 6, %v5242_v12 }
 0x161   :  { %v148_v43 = vpop.xlane.xlu1 %147 }
 0x162   :  { %v151_v44 = vmul.f32 0.03125, %v148_v43  ;;  %v154_v45 = vmul.f32 %v152_v42, %v152_v42 }
 0x164   :  { %v5264_v46 = vsub.f32 %v139_v27, %v151_v44  ;;  %v156_v47 = vsel %vm142_vm3, %v154_v45, 0.0 }
 0x165   :  { %157 = vadd.xlane.f32.xlu0 %v156_v47 }
 0x166   :  { %v155_v48 = vmul.f32 %v5264_v46, %v5264_v46 }
 0x168   :  { %v159_v49 = vsel %vm142_vm3, %v155_v48, 0.0 }
 0x169   :  { %160 = vadd.xlane.f32.xlu1 %v159_v49 }
 0x1e5   :  { %v289_v55 = vpop.xlane.xlu0 %288 }
 0x1e6   :  { %v293_v56 = vmul.f32 0.03125, %v289_v55 }
 0x1e8   :  { %v295_v57 = vadd.f32 1e-05, %v293_v56 }
 0x1e9   :  { %v292_v58 = vpop.xlane.xlu1 %291 }
 0x1ea   :  { %4862 = vrsqrt.f32 %v295_v57  ;;  %v294_v59 = vmul.f32 0.03125, %v292_v58 }
 0x1ec   :  { %v296_v60 = vadd.f32 1e-05, %v294_v59 }
 0x1ee   :  { %4864 = vrsqrt.f32 %v296_v60  ;;  %v158_v61 = vpop.xlane.xlu0 %157 }
 0x1ef   :  { %v162_v62 = vmul.f32 0.03125, %v158_v61  ;;  %v535_v61 = vld [vmem:[%s6192_s6 + $0x18] sm:$0xff] }
 0x1f0   :  { %4518 = vmatprep.subr.mxu0 %v535_v61 }
 0x1f1   :  { %v164_v63 = vadd.f32 1e-05, %v162_v62  ;;  %v534_v62 = vld [vmem:[%s6192_s6 + $0x10] sm:$0xff]  ;;  %4519 = vmatpush3.msra.mxu0 %v535_v61 }
 0x1f2   :  { %v161_v0 = vpop.xlane.xlu1 %160  ;;  %4520 = vmatprep.subr.mxu0 %v534_v62 }
 0x1f3   :  { %4866 = vrsqrt.f32 %v164_v63  ;;  %v163_v2 = vmul.f32 0.03125, %v161_v0  ;;  %v533_v63 = vld [vmem:[%s6192_s6 + $0x8] sm:$0xff]  ;;  %4521 = vmatpush3.msra.mxu0 %v534_v62  ;;  %v532_v0 = vld [vmem:[%s6192_s6] sm:$0xff] }
 0x1f4   :  { %4522 = vmatprep.subr.mxu0 %v533_v63 }
 0x1f5   :  { %v165_v4 = vadd.f32 1e-05, %v163_v2  ;;  %4523 = vmatpush3.msra.mxu0 %v533_v63 }
 0x1f6   :  { %4524 = vmatprep.subr.mxu0 %v532_v0 }
 0x1f7   :  { %v4863_v6 = vpop.eup %4862  ;;  %4868 = vrsqrt.f32 %v165_v4  ;;  %4525 = vmatpush3.msra.mxu0 %v532_v0 }
 0x1f8   :  { %v299_v7 = vmul.f32 %v4863_v6, %v283_v32 }
 0x1fa   :  { %v305_v9 = vmul.f32 %v304_v5, %v299_v7 }
 0x1fb   :  { %v4865_v10 = vpop.eup %4864 }
 0x1fc   :  { %v300_v16 = vmul.f32 %v4865_v10, %v284_v36  ;;  %v311_v17 = vadd.f32 %v310_v8, %v305_v9  ;;  %v315_v36 = vld [vmem:[%s6191_s5] sm:$0xff]  ;;  %v5337_v9 = vsub.s32 7, %v5242_v12 }
 0x1fe   :  { %v306_v19 = vmul.f32 %v304_v5, %v300_v16  ;;  %v319_v20 = vmax.f32 %v311_v17, 0.0  ;;  %v523_v16 = vrot.slane %v5248_v14, %v5337_v9  ;;  %v5344_v17 = vld [vmem:[%s6196_s10 + $0x8] sm:$0xff] }
 0x200   :  { %v4867_v23 = vpop.eup %4866  ;;  %v312_v24 = vadd.f32 %v310_v8, %v306_v19  ;;  %4504 = vmatprep.mubr.msk.f32.mxu1 %vm142_vm3, %v319_v20 }
 0x201   :  { %v168_v25 = vmul.f32 %v4867_v23, %v152_v42  ;;  %v491_v42 = vrot.slane %v5248_v14, %v490_v40  ;;  %v647_v14 = vld [vmem:[%s6194_s8 + $0x18] sm:$0xff] }
 0x202   :  { %v320_v27 = vmax.f32 %v312_v24, 0.0  ;;  %v529_v24 = vrot.slane %v5344_v17, %v5255_v21 }
 0x203   :  { %v174_v29 = vmul.f32 %v173_v22, %v168_v25 }
 0x204   :  { %v4869_v30 = vpop.eup %4868  ;;  %4505 = vmatmul.mubr.msk.f32.vlgmr.msra.gmra.mxu1 %vm142_vm3, %v320_v27 }
 0x205   :  { %4508 = vmatpush3.msra.mxu1 %v318_v54  ;;  %v169_v32 = vmul.f32 %v4869_v30, %v5264_v46  ;;  %v180_v33 = vadd.f32 %v179_v26, %v174_v29  ;;  %v645_v29 = vld [vmem:[%s6194_s8 + $0x8] sm:$0xff]  ;;  %v644_v30 = vld [vmem:[%s6194_s8] sm:$0xff] }
 0x206   :  { %4509 = vmatprep.subr.mxu1 %v317_v28 }
 0x207   :  { %4510 = vmatpush3.msra.mxu1 %v317_v28  ;;  %v175_v34 = vmul.f32 %v173_v22, %v169_v32  ;;  %v313_v35 = vmax.f32 %v180_v33, 0.0  ;;  %v646_v28 = vld [vmem:[%s6194_s8 + $0x10] sm:$0xff]  ;;  %v4206_v32 = vld [vmem:[%s6193_s7] ss:$0 sm:$0xff] }
 0x208   :  { %4511 = vmatprep.subr.mxu1 %v316_v31 }
 0x209   :  { %v181_v37 = vadd.f32 %v179_v26, %v175_v34  ;;  %4515 = vmatprep.mubr.msk.f32.mxu1 %vm142_vm3, %v313_v35  ;;  %4512 = vmatpush3.msra.mxu1 %v316_v31  ;;  %v729_v31 = vld [vmem:[%s6188_s2] sm:$0x3]  ;;  %v5125_v34 = vmov 0.0   ;;  %s5127_s2 = smov 64  }
 0x20a   :  { %4513 = vmatprep.subr.mxu1 %v315_v36  ;;  %vm730_vm4 = vcmp.eq.f32.partialorder %v729_v31, 0.0 }
 0x20b   :  { %4514 = vmatpush3.msra.mxu1 %v315_v36  ;;  %v314_v38 = vmax.f32 %v181_v37, 0.0  ;;  %v731_v35 = vsel %vm730_vm4, -1e+30, %v5125_v34 }
 0x20c   :  { %4529 = vmatprep.subr.mxu1 %v647_v14 }
 0x20d   :  { %4516 = vmatmul.mubr.msk.f32.vlgmr.msra.gmra.mxu1 %vm142_vm3, %v314_v38 }
 0x20e   :  { %4530 = vmatpush3.msra.mxu1 %v647_v14 }
 0x20f   :  { %4531 = vmatprep.subr.mxu1 %v646_v28 }
 0x210   :  { %4532 = vmatpush3.msra.mxu1 %v646_v28 }
 0x211   :  { %4533 = vmatprep.subr.mxu1 %v645_v29 }
 0x212   :  { %4534 = vmatpush3.msra.mxu1 %v645_v29 }
 0x213   :  { %4535 = vmatprep.subr.mxu1 %v644_v30 }
 0x214   :  { %4536 = vmatpush3.msra.mxu1 %v644_v30 }
 0x2c4   :  { %v4506_v39 = vpop.f32.mrf.mxu1 }
 0x2c6   :  { %v398_v41 = vpop.f32.mrf.mxu1 }
 0x2cd   :  { %v4517_v43 = vpop.f32.mrf.mxu1 }
 0x2ce   :  { %v485_v44 = vadd.f32 %v4517_v43, %v4506_v39  ;;  %v735_v39 = vrot.slane %v731_v35, %v5255_v21 }
 0x2cf   :  { %v479_v45 = vpop.f32.mrf.mxu1 }
 0x2d0   :  { %v480_v46 = vadd.f32 %v479_v45, %v398_v41  ;;  %v493_v47 = vadd.f32 %v491_v42, %v485_v44  ;;  %v742_v41 = vrot.slane %v731_v35, %v5294_v15 }
 0x2d2   :  { %v497_v48 = vsel %vm142_vm3, %v493_v47, 0.0  ;;  %v492_v49 = vadd.f32 %v491_v42, %v480_v46 }
 0x2d3   :  { %498 = vadd.xlane.f32.xlu1 %v497_v48 }
 0x2d4   :  { %v494_v50 = vsel %vm142_vm3, %v492_v49, 0.0 }
 0x2d5   :  { %495 = vadd.xlane.f32.xlu0 %v494_v50  ;;  %v786_v50 = vld [vmem:[%s6195_s9] sm:$0xf] }
 0x2d6   :  { %4540 = vmatprep.subr.msk.mxu0 %vm196_vm0, %v786_v50 }
 0x35c   :  { %v499_v51 = vpop.xlane.xlu1 %498 }
 0x35d   :  { %v501_v52 = vmul.f32 0.03125, %v499_v51 }
 0x35e   :  { %v496_v53 = vpop.xlane.xlu0 %495 }
 0x35f   :  { %v503_v54 = vsub.f32 %v493_v47, %v501_v52  ;;  %v500_v55 = vmul.f32 0.03125, %v496_v53 }
 0x361   :  { %v502_v56 = vsub.f32 %v492_v49, %v500_v55  ;;  %v505_v57 = vmul.f32 %v503_v54, %v503_v54 }
 0x363   :  { %v509_v58 = vsel %vm142_vm3, %v505_v57, 0.0  ;;  %v504_v59 = vmul.f32 %v502_v56, %v502_v56 }
 0x364   :  { %510 = vadd.xlane.f32.xlu1 %v509_v58 }
 0x365   :  { %v506_v60 = vsel %vm142_vm3, %v504_v59, 0.0 }
 0x366   :  { %507 = vadd.xlane.f32.xlu0 %v506_v60 }
 0x3ed   :  { %v511_v2 = vpop.xlane.xlu1 %510 }
 0x3ee   :  { %v513_v4 = vmul.f32 0.03125, %v511_v2 }
 0x3ef   :  { %v508_v5 = vpop.xlane.xlu0 %507 }
 0x3f0   :  { %v515_v6 = vadd.f32 1e-05, %v513_v4  ;;  %v512_v7 = vmul.f32 0.03125, %v508_v5 }
 0x3f2   :  { %4870 = vrsqrt.f32 %v515_v6  ;;  %v514_v8 = vadd.f32 1e-05, %v512_v7 }
 0x3f4   :  { %4872 = vrsqrt.f32 %v514_v8 }
 0x3ff   :  { %v4871_v10 = vpop.eup %4870 }
 0x400   :  { %v519_v19 = vmul.f32 %v4871_v10, %v503_v54 }
 0x401   :  { %v4873_v20 = vpop.eup %4872 }
 0x402   :  { %v518_v22 = vmul.f32 %v4873_v20, %v502_v56  ;;  %v525_v23 = vmul.f32 %v523_v16, %v519_v19 }
 0x404   :  { %v524_v25 = vmul.f32 %v523_v16, %v518_v22  ;;  %v5350_v27 = vadd.f32 %v529_v24, %v525_v23 }
 0x406   :  { %v5348_v26 = vadd.f32 %v529_v24, %v524_v25 }
 0x408   :  { %4526 = vmatprep.mubr.msk.f32.mxu0 %vm142_vm3, %v5348_v26 }
 0x409   :  { %4527 = vmatmul.mubr.msk.f32.vlgmr.msra.gmra.mxu0 %vm142_vm3, %v5350_v27 }
 0x40a   :  { %4541 = vmatpush3.msk.msra.mxu0 %vm196_vm0, %v786_v50 }
 0x40b   :  { %4545 = vmatprep.subr.mxu0 %v5125_v34 }
 0x4c9   :  { %v4528_v33 = vpop.f32.mrf.mxu0 }
 0x4ca   :  { %v621_v36 = vadd.f32 %v4528_v33, %v4206_v32 }
 0x4cb   :  { %v615_v37 = vpop.f32.mrf.mxu0 }
 0x4cc   :  { %v616_v38 = vadd.f32 %v4206_v32, %v615_v37  ;;  %638 = vrot.lane.b32.xlu1 %v621_v36, %s5126_s25  ;;  %v625_v43 = vmul.f32 0.35355338, %v621_v36 }
 0x4ce   :  { %636 = vrot.lane.b32.xlu0 %v616_v38, %s5126_s25  ;;  %v624_v42 = vmul.f32 0.35355338, %v616_v38  ;;  %v633_v46 = vrot.slane %v625_v43, %v5337_v9 }
 0x4d0   :  { %737 = vbcast.lane.b32.xlu1 %v735_v39, 256  ;;  %v629_v45 = vrot.slane %v624_v42, %v5337_v9 }
 0x4d2   :  { %871 = vrot.lane.b32.xlu0 %v616_v38, %s5127_s2 }
 0x4d4   :  { %744 = vbcast.lane.b32.xlu1 %v742_v41, 256 }
 0x4d8   :  { %873 = vrot.lane.b32.xlu1 %v621_v36, %s5127_s2 }
 0x53e   :  { %v639_v44 = vpop.permute.xlu1 %638 }
 0x53f   :  { %v643_v49 = vmul.f32 %v639_v44, %v633_v46  ;;  %v4216_v46 = vld [vmem:[%s6191_s5 + $0x50] sm:$0xff] }
 0x540   :  { %v637_v47 = vpop.permute.xlu0 %636 }
 0x541   :  { %v642_v48 = vmul.f32 %v637_v47, %v629_v45  ;;  %v4217_v45 = vld [vmem:[%s6191_s5 + $0x58] sm:$0xff]  ;;  %v4215_v47 = vld [vmem:[%s6191_s5 + $0x48] sm:$0xff] }
 0x542   :  { %v738_v51 = vpop.permute.xlu1 %737 }
 0x543   :  { %4537 = vmatprep.mubr.msk.f32.mxu1 %vm142_vm3, %v642_v48  ;;  %v4214_v48 = vld [vmem:[%s6191_s5 + $0x40] sm:$0xff] }
 0x544   :  { %4538 = vmatmul.mubr.msk.f32.vlgmr.msra.gmra.mxu1 %vm142_vm3, %v643_v49 }
 0x546   :  { %v745_v52 = vpop.permute.xlu1 %744 }
 0x54a   :  { %v874_v49 = vpop.permute.xlu1 %873 }
 0x604   :  { %v4539_v53 = vpop.f32.mrf.mxu1 }
 0x605   :  { %v747_v54 = vadd.f32 %v4539_v53, %v745_v52  ;;  %v872_v52 = vpop.permute.xlu0 %871 }
 0x606   :  { %v720_v55 = vpop.f32.mrf.mxu1 }
 0x607   :  { %v755_v56 = vsel %vm189_vm1, %v747_v54, -inf  ;;  %v746_v57 = vadd.f32 %v738_v51, %v720_v55 }
 0x608   :  { %v756_v58 = vrot.slane %v755_v56, 4 }
 0x609   :  { %v748_v59 = vsel %vm189_vm1, %v746_v57, -inf }
 0x60a   :  { %v757_v60 = vmax.f32 %v755_v56, %v756_v58  ;;  %v749_v61 = vrot.slane %v748_v59, 4 }
 0x60c   :  { %v758_v62 = vrot.slane %v757_v60, 2  ;;  %v750_v63 = vmax.f32 %v748_v59, %v749_v61 }
 0x60e   :  { %v759_v0 = vmax.f32 %v757_v60, %v758_v62  ;;  %v751_v2 = vrot.slane %v750_v63, 2 }
 0x610   :  { %v760_v4 = vrot.slane %v759_v0, 1  ;;  %v752_v5 = vmax.f32 %v750_v63, %v751_v2 }
 0x612   :  { %v761_v6 = vmax.f32 %v759_v0, %v760_v4  ;;  %v753_v7 = vrot.slane %v752_v5, 1 }
 0x614   :  { %v763_v8 = vsub.f32 %v747_v54, %v761_v6  ;;  %v754_v10 = vmax.f32 %v752_v5, %v753_v7 }
 0x616   :  { %v766_v16 = vmul.f32 1.442695, %v763_v8  ;;  %v762_v19 = vsub.f32 %v746_v57, %v754_v10  ;;  %v5129_v8 = vmov 1966171168  }
 0x617   :  { %v980_v10 = vunpack.c.l.s4 %v5129_v8 }
 0x618   :  { %4874 = vpow2.f32 %v766_v16  ;;  %v764_v20 = vmul.f32 1.442695, %v762_v19  ;;  %v901_v19 = vrot.slane %v5344_v17, %v5294_v15 }
 0x619   :  { %v981_v16 = vunpack.c.0.s8 %v980_v10 }
 0x61a   :  { %4876 = vpow2.f32 %v764_v20 }
 0x61b   :  { %v5419_v20 = vsub.s32 %v981_v16, %v5242_v12 }
 0x625   :  { %v4875_v22 = vpop.eup %4874 }
 0x626   :  { %v775_v23 = vsel %vm189_vm1, %v4875_v22, 0.0 }
 0x627   :  { %v4877_v24 = vpop.eup %4876  ;;  %v776_v25 = vrot.slane %v775_v23, 4 }
 0x628   :  { %v768_v14 = vsel %vm189_vm1, %v4877_v24, 0.0 }
 0x629   :  { %v777_v28 = vadd.f32 %v776_v25, %v775_v23  ;;  %v769_v29 = vrot.slane %v768_v14, 4 }
 0x62b   :  { %v778_v30 = vrot.slane %v777_v28, 2  ;;  %v770_v31 = vadd.f32 %v769_v29, %v768_v14 }
 0x62d   :  { %v779_v32 = vadd.f32 %v778_v30, %v777_v28  ;;  %v771_v33 = vrot.slane %v770_v31, 2 }
 0x62f   :  { %v780_v35 = vrot.slane %v779_v32, 1  ;;  %v772_v36 = vadd.f32 %v771_v33, %v770_v31 }
 0x631   :  { %v781_v37 = vadd.f32 %v780_v35, %v779_v32  ;;  %v773_v38 = vrot.slane %v772_v36, 1 }
 0x633   :  { %v774_v39 = vadd.f32 %v773_v38, %v772_v36  ;;  %4878 = vrcp.f32 %v781_v37 }
 0x635   :  { %4880 = vrcp.f32 %v774_v39 }
 0x640   :  { %v4879_v41 = vpop.eup %4878 }
 0x641   :  { %v785_v44 = vmul.f32 %v4879_v41, %v4875_v22 }
 0x642   :  { %v4881_v42 = vpop.eup %4880 }
 0x643   :  { %v784_v43 = vmul.f32 %v4881_v42, %v4877_v24 }
 0x645   :  { %4542 = vmatprep.mubr.msk.f32.mxu0 %vm189_vm1, %v784_v43 }
 0x646   :  { %4543 = vmatmul.mubr.msk.f32.vlgmr.msra.gmra.mxu0 %vm189_vm1, %v785_v44 }
 0x647   :  { %4546 = vmatpush3.msra.mxu0 %v4217_v45  ;;  %4553 = vmatprep.mubr.msk.f32.mxu0 %vm5128_vm5, %v5125_v34 }
 0x648   :  { %4547 = vmatprep.subr.mxu0 %v5125_v34 }
 0x649   :  { %4548 = vmatpush3.msra.mxu0 %v4216_v46 }
 0x64a   :  { %4549 = vmatprep.subr.mxu0 %v5125_v34 }
 0x64b   :  { %4550 = vmatpush3.msra.mxu0 %v4215_v47  ;;  %v4222_v47 = vld [vmem:[%s6191_s5 + $0x78] sm:$0xff] }
 0x64c   :  { %4551 = vmatprep.subr.mxu0 %v5125_v34  ;;  %4556 = vmatprep.subr.mxu1 %v4222_v47 }
 0x64d   :  { %4552 = vmatpush3.msra.mxu0 %v4214_v48  ;;  %v4221_v48 = vld [vmem:[%s6191_s5 + $0x70] sm:$0xff]  ;;  %4557 = vmatpush3.msra.mxu1 %v4222_v47  ;;  %v5512_v47 = vld [vmem:[%s6197_s11 + $0x20] sm:$0xff] }
 0x64e   :  { %4558 = vmatprep.subr.mxu1 %v4221_v48 }
 0x64f   :  { %4559 = vmatpush3.msra.mxu1 %v4221_v48  ;;  %v1273_v48 = vld [vmem:[%s6197_s11] sm:$0xff] }
 0x706   :  { %v4544_v50 = vpop.f32.mrf.mxu0 }
 0x707   :  { %v878_v51 = vmul.f32 %v4544_v50, %v874_v49  ;;  %v4220_v49 = vld [vmem:[%s6191_s5 + $0x68] sm:$0xff]  ;;  %v4219_v50 = vld [vmem:[%s6191_s5 + $0x60] sm:$0xff] }
 0x708   :  { %v862_v53 = vpop.f32.mrf.mxu0  ;;  %4560 = vmatprep.subr.mxu1 %v4220_v49 }
 0x709   :  { %v886_v54 = vsel %vm142_vm3, %v878_v51, 0.0  ;;  %v877_v55 = vmul.f32 %v872_v52, %v862_v53  ;;  %4561 = vmatpush3.msra.mxu1 %v4220_v49 }
 0x70a   :  { %v887_v56 = vrot.slane %v886_v54, 4  ;;  %4562 = vmatprep.subr.mxu1 %v4219_v50 }
 0x70b   :  { %v879_v57 = vsel %vm142_vm3, %v877_v55, 0.0  ;;  %4563 = vmatpush3.msra.mxu1 %v4219_v50 }
 0x70c   :  { %v888_v58 = vadd.f32 %v887_v56, %v886_v54  ;;  %v880_v59 = vrot.slane %v879_v57, 4 }
 0x70e   :  { %v889_v60 = vrot.slane %v888_v58, 2  ;;  %v881_v61 = vadd.f32 %v880_v59, %v879_v57  ;;  %v1042_v57 = vrot.slane %v5344_v17, %v178_v18  ;;  %v1048_v59 = vrot.slane %v5344_v17, %v187_v13  ;;  %v4228_v18 = vld [vmem:[%s6191_s5 + $0x98] sm:$0xff]  ;;  %v4227_v13 = vld [vmem:[%s6191_s5 + $0x90] sm:$0xff] }
 0x70f   :  { %4567 = vmatprep.subr.mxu0 %v4228_v18 }
 0x710   :  { %v890_v62 = vadd.f32 %v889_v60, %v888_v58  ;;  %v882_v63 = vrot.slane %v881_v61, 2 }
 0x712   :  { %v891_v0 = vrot.slane %v890_v62, 1  ;;  %v883_v2 = vadd.f32 %v882_v63, %v881_v61 }
 0x714   :  { %v884_v4 = vrot.slane %v883_v2, 1  ;;  %v892_v5 = vadd.f32 %v891_v0, %v890_v62 }
 0x716   :  { %v885_v6 = vadd.f32 %v884_v4, %v883_v2 }
 0x718   :  { %v905_v7 = vsel %vm904_vm6, %v892_v5, %v885_v6  ;;  %v4226_v5 = vld [vmem:[%s6191_s5 + $0x88] sm:$0xff]  ;;  %v4225_v6 = vld [vmem:[%s6191_s5 + $0x80] sm:$0xff] }
 0x719   :  { %4554 = vmatmul.mubr.msk.f32.vlgmr.msra.gmra.mxu0 %vm142_vm3, %v905_v7  ;;  %v1059_v7 = vrot.slane %v5344_v17, %v303_v1 }
 0x71a   :  { %4568 = vmatpush3.msra.mxu0 %v4228_v18 }
 0x71b   :  { %4569 = vmatprep.subr.mxu0 %v4227_v13 }
 0x71c   :  { %4570 = vmatpush3.msra.mxu0 %v4227_v13 }
 0x71d   :  { %4571 = vmatprep.subr.mxu0 %v4226_v5 }
 0x71e   :  { %4572 = vmatpush3.msra.mxu0 %v4226_v5 }
 0x71f   :  { %4573 = vmatprep.subr.mxu0 %v4225_v6 }
 0x720   :  { %4574 = vmatpush3.msra.mxu0 %v4225_v6 }
 0x721   :  { %4589 = vmatprep.subr.mxu0 %v5125_v34 }
 0x7d9   :  { %v974_v22 = vpop.f32.mrf.mxu0 }
 0x7da   :  { %v975_v23 = vadd.f32 %v974_v22, %v901_v19 }
 0x7db   :  { %v4555_v24 = vpop.f32.mrf.mxu0 }
 0x7dc   :  { %v985_v25 = vrot.slane %v975_v23, %v5419_v20  ;;  %v1151_v24 = vrot.slane %v5344_v17, %v309_v3 }
 0x7de   :  { %v986_v14 = vcombine.high %v985_v25, %v985_v25  ;;  %v993_v28 = vrot.slane %v985_v25, %v5419_v20 }
 0x7e0   :  { %v1004_v29 = vrot.slane %v993_v28, %v5255_v21  ;;  %v1000_v30 = vrot.slane %v986_v14, %v5419_v20 }
 0x7e2   :  { %v1011_v31 = vadd.f32 %v1004_v29, %v5348_v26  ;;  %v1008_v32 = vrot.slane %v1000_v30, %v5255_v21 }
 0x7e4   :  { %v1013_v15 = vsel %vm142_vm3, %v1011_v31, 0.0  ;;  %v1012_v33 = vadd.f32 %v1008_v32, %v5350_v27 }
 0x7e5   :  { %1014 = vadd.xlane.f32.xlu0 %v1013_v15 }
 0x7e6   :  { %v1016_v35 = vsel %vm142_vm3, %v1012_v33, 0.0 }
 0x7e7   :  { %1017 = vadd.xlane.f32.xlu1 %v1016_v35 }
 0x86e   :  { %v1015_v36 = vpop.xlane.xlu0 %1014 }
 0x86f   :  { %v1019_v37 = vmul.f32 0.03125, %v1015_v36 }
 0x870   :  { %v1018_v38 = vpop.xlane.xlu1 %1017 }
 0x871   :  { %v1021_v39 = vsub.f32 %v1011_v31, %v1019_v37  ;;  %v1020_v41 = vmul.f32 0.03125, %v1018_v38 }
 0x873   :  { %v1022_v42 = vsub.f32 %v1012_v33, %v1020_v41  ;;  %v1023_v43 = vmul.f32 %v1021_v39, %v1021_v39 }
 0x875   :  { %v1025_v44 = vsel %vm142_vm3, %v1023_v43, 0.0  ;;  %v1024_v45 = vmul.f32 %v1022_v42, %v1022_v42  ;;  %v5492_v43 = vld [vmem:[%s6197_s11 + $0x30] sm:$0xff] }
 0x876   :  { %1026 = vadd.xlane.f32.xlu0 %v1025_v44  ;;  %v1275_v44 = vld [vmem:[%s6197_s11 + $0x10] sm:$0xff] }
 0x877   :  { %v1028_v46 = vsel %vm142_vm3, %v1024_v45, 0.0  ;;  %v5502_v45 = vld [vmem:[%s6197_s11 + $0x28] sm:$0xff] }
 0x87a   :  { %1029 = vadd.xlane.f32.xlu0 %v1028_v46  ;;  %v1274_v46 = vld [vmem:[%s6197_s11 + $0x8] sm:$0xff] }
 0x8ff   :  { %v1027_v51 = vpop.xlane.xlu0 %1026 }
 0x900   :  { %v1031_v52 = vmul.f32 0.03125, %v1027_v51 }
 0x902   :  { %v1033_v53 = vadd.f32 1e-05, %v1031_v52 }
 0x903   :  { %v1030_v54 = vpop.xlane.xlu0 %1029 }
 0x904   :  { %4882 = vrsqrt.f32 %v1033_v53  ;;  %v1032_v55 = vmul.f32 0.03125, %v1030_v54 }
 0x906   :  { %v1034_v56 = vadd.f32 1e-05, %v1032_v55 }
 0x908   :  { %4884 = vrsqrt.f32 %v1034_v56  ;;  %v1264_v56 = vrot.slane %v5344_v17, %v490_v40  ;;  %v4231_v40 = vld [vmem:[%s6198_s12] ss:$0 sm:$0xff] }
 0x911   :  { %v4883_v58 = vpop.eup %4882 }
 0x912   :  { %v1037_v60 = vmul.f32 %v4883_v58, %v1021_v39 }
 0x914   :  { %v1043_v61 = vmul.f32 %v1042_v57, %v1037_v60 }
 0x915   :  { %v4885_v62 = vpop.eup %4884 }
 0x916   :  { %v1038_v63 = vmul.f32 %v4885_v62, %v1022_v42  ;;  %v1049_v0 = vadd.f32 %v1048_v59, %v1043_v61  ;;  %v1276_v42 = vld [vmem:[%s6197_s11 + $0x18] sm:$0xff]  ;;  %v1270_v61 = vrot.slane %v5344_v17, %v5337_v9 }
 0x917   :  { %4578 = vmatprep.subr.mxu1 %v1276_v42 }
 0x918   :  { %v1044_v2 = vmul.f32 %v1042_v57, %v1038_v63  ;;  %4564 = vmatprep.mubr.msk.f32.mxu1 %vm142_vm3, %v1049_v0 }
 0x91a   :  { %v1050_v4 = vadd.f32 %v1048_v59, %v1044_v2 }
 0x91c   :  { %4565 = vmatmul.mubr.msk.f32.vlgmr.msra.gmra.mxu1 %vm142_vm3, %v1050_v4 }
 0x91d   :  { %4579 = vmatpush3.msra.mxu1 %v1276_v42  ;;  %v5585_v42 = vld [vmem:[%s6197_s11 + $0x68] sm:$0xff] }
 0x91e   :  { %4580 = vmatprep.subr.mxu1 %v1275_v44 }
 0x91f   :  { %4581 = vmatpush3.msra.mxu1 %v1275_v44  ;;  %v5593_v44 = vld [vmem:[%s6197_s11 + $0x40] sm:$0xff] }
 0x920   :  { %4582 = vmatprep.subr.mxu1 %v1274_v46 }
 0x921   :  { %4583 = vmatpush3.msra.mxu1 %v1274_v46 }
 0x922   :  { %4584 = vmatprep.subr.mxu1 %v1273_v48 }
 0x923   :  { %4585 = vmatpush3.msra.mxu1 %v1273_v48 }
 0x924   :  { %4600 = vmatprep.subr.mxu1 %v5125_v34 }
 0x9dc   :  { %v4566_v8 = vpop.f32.mrf.mxu1 }
 0x9dd   :  { %v1138_v10 = vadd.f32 %v4566_v8, %v1059_v7 }
 0x9de   :  { %v1132_v16 = vpop.f32.mrf.mxu1 }
 0x9df   :  { %v1133_v19 = vadd.f32 %v1132_v16, %v1059_v7  ;;  %v1142_v23 = vmax.f32 %v1138_v10, 0.0 }
 0x9e1   :  { %v1141_v22 = vmax.f32 %v1133_v19, 0.0 }
 0x9e3   :  { %4575 = vmatprep.mubr.msk.f32.mxu0 %vm142_vm3, %v1141_v22 }
 0x9e4   :  { %4576 = vmatmul.mubr.msk.f32.vlgmr.msra.gmra.mxu0 %vm142_vm3, %v1142_v23 }
 0x9e5   :  { %4597 = vmatprep.mubr.msk.f32.mxu0 %vm5128_vm5, %v5125_v34 }
 0xaa4   :  { %v4577_v25 = vpop.f32.mrf.mxu0 }
 0xaa5   :  { %v1230_v14 = vadd.f32 %v4577_v25, %v1151_v24 }
 0xaa6   :  { %v1224_v1 = vpop.f32.mrf.mxu0 }
 0xaa7   :  { %v1225_v28 = vadd.f32 %v1224_v1, %v1151_v24  ;;  %v1234_v29 = vadd.f32 %v1230_v14, %v5350_v27 }
 0xaa9   :  { %v1238_v30 = vsel %vm142_vm3, %v1234_v29, 0.0  ;;  %v1233_v31 = vadd.f32 %v1225_v28, %v5348_v26  ;;  %v5484_v26 = vld [vmem:[%s6197_s11 + $0x38] sm:$0xff] }
 0xaaa   :  { %1239 = vadd.xlane.f32.xlu1 %v1238_v30  ;;  %4590 = vmatpush3.msra.mxu0 %v5484_v26 }
 0xaab   :  { %v1235_v32 = vsel %vm142_vm3, %v1233_v31, 0.0  ;;  %4591 = vmatprep.subr.mxu0 %v5125_v34 }
 0xaac   :  { %1236 = vadd.xlane.f32.xlu0 %v1235_v32  ;;  %4592 = vmatpush3.msra.mxu0 %v5492_v43 }
 0xaad   :  { %4593 = vmatprep.subr.mxu0 %v5125_v34 }
 0xaae   :  { %4594 = vmatpush3.msra.mxu0 %v5502_v45 }
 0xaaf   :  { %4595 = vmatprep.subr.mxu0 %v5125_v34 }
 0xab0   :  { %4596 = vmatpush3.msra.mxu0 %v5512_v47 }
 0xab1   :  { %4598 = vmatmul.mubr.f32.vlgmr.msra.gmra.mxu0 %v5125_v34  ;;  %4611 = vmatprep.subr.mxu0 %v5125_v34 }
 0xab2   :  { %4619 = vmatprep.mubr.msk.f32.mxu0 %vm5128_vm5, %v5125_v34 }
 0xb33   :  { %v1240_v15 = vpop.xlane.xlu1 %1239 }
 0xb34   :  { %v1242_v33 = vmul.f32 0.03125, %v1240_v15 }
 0xb35   :  { %v1237_v35 = vpop.xlane.xlu0 %1236 }
 0xb36   :  { %v1244_v36 = vsub.f32 %v1234_v29, %v1242_v33  ;;  %v1241_v37 = vmul.f32 0.03125, %v1237_v35 }
 0xb38   :  { %v1243_v3 = vsub.f32 %v1233_v31, %v1241_v37  ;;  %v1246_v38 = vmul.f32 %v1244_v36, %v1244_v36 }
 0xb3a   :  { %v1250_v39 = vsel %vm142_vm3, %v1246_v38, 0.0  ;;  %v1245_v41 = vmul.f32 %v1243_v3, %v1243_v3  ;;  %v5561_v38 = vld [vmem:[%s6197_s11 + $0x50] sm:$0xff] }
 0xb3b   :  { %1251 = vadd.xlane.f32.xlu1 %v1250_v39  ;;  %v5566_v39 = vld [vmem:[%s6197_s11 + $0x78] sm:$0xff] }
 0xb3c   :  { %v1247_v27 = vsel %vm142_vm3, %v1245_v41, 0.0  ;;  %4612 = vmatpush3.msra.mxu0 %v5566_v39  ;;  %v5573_v41 = vld [vmem:[%s6197_s11 + $0x70] sm:$0xff] }
 0xb3d   :  { %1248 = vadd.xlane.f32.xlu0 %v1247_v27  ;;  %v5579_v27 = vld [vmem:[%s6197_s11 + $0x48] sm:$0xff]  ;;  %4613 = vmatprep.subr.mxu0 %v5125_v34 }
 0xb3e   :  { %4614 = vmatpush3.msra.mxu0 %v5573_v41 }
 0xb3f   :  { %4615 = vmatprep.subr.mxu0 %v5125_v34 }
 0xb40   :  { %4616 = vmatpush3.msra.mxu0 %v5585_v42 }
 0xb41   :  { %4617 = vmatprep.subr.mxu0 %v5125_v34 }
 0xb71   :  { %v1438_v2 = vpop.f32.mrf.mxu0 }
 0xb72   :  { %v1443_v18 = vrot.slane %v1438_v2, 1 }
 0xb73   :  { %v4599_v4 = vpop.f32.mrf.mxu0 }
 0xbc4   :  { %v1252_v49 = vpop.xlane.xlu1 %1251 }
 0xbc5   :  { %v1254_v50 = vmul.f32 0.03125, %v1252_v49  ;;  %v5607_v49 = vld [vmem:[%s6197_s11 + $0x60] sm:$0xff] }
 0xbc6   :  { %v1249_v51 = vpop.xlane.xlu0 %1248  ;;  %4618 = vmatpush3.msra.mxu0 %v5607_v49 }
 0xbc7   :  { %v1256_v52 = vadd.f32 1e-05, %v1254_v50  ;;  %v1253_v53 = vmul.f32 0.03125, %v1249_v51  ;;  %4620 = vmatmul.mubr.f32.vlgmr.msra.gmra.mxu0 %v5125_v34  ;;  %4633 = vmatprep.subr.mxu0 %v5125_v34 }
 0xbc8   :  { %4641 = vmatprep.mubr.msk.f32.mxu0 %vm5128_vm5, %v5125_v34 }
 0xbc9   :  { %4886 = vrsqrt.f32 %v1256_v52  ;;  %v1255_v54 = vadd.f32 1e-05, %v1253_v53 }
 0xbcb   :  { %4888 = vrsqrt.f32 %v1255_v54 }
 0xbd6   :  { %v4887_v55 = vpop.eup %4886 }
 0xbd7   :  { %v1260_v57 = vmul.f32 %v4887_v55, %v1244_v36 }
 0xbd8   :  { %v4889_v58 = vpop.eup %4888 }
 0xbd9   :  { %v1259_v59 = vmul.f32 %v4889_v58, %v1243_v3  ;;  %v1266_v60 = vmul.f32 %v1264_v56, %v1260_v57  ;;  %v5556_v3 = vld [vmem:[%s6197_s11 + $0x58] sm:$0xff] }
 0xbda   :  { %4634 = vmatpush3.msra.mxu0 %v5556_v3 }
 0xbdb   :  { %v1265_v62 = vmul.f32 %v1264_v56, %v1259_v59  ;;  %v1272_v0 = vadd.f32 %v1270_v61, %v1266_v60  ;;  %4635 = vmatprep.subr.mxu0 %v5125_v34 }
 0xbdc   :  { %4636 = vmatpush3.msra.mxu0 %v5561_v38 }
 0xbdd   :  { %v1271_v63 = vadd.f32 %v1270_v61, %v1265_v62  ;;  %4637 = vmatprep.subr.mxu0 %v5125_v34 }
 0xbde   :  { %4638 = vmatpush3.msra.mxu0 %v5579_v27 }
 0xbdf   :  { %4586 = vmatprep.mubr.msk.f32.mxu1 %vm142_vm3, %v1271_v63  ;;  %4639 = vmatprep.subr.mxu0 %v5125_v34 }
 0xbe0   :  { %4587 = vmatmul.mubr.msk.f32.vlgmr.msra.gmra.mxu1 %vm142_vm3, %v1272_v0  ;;  %4640 = vmatpush3.msra.mxu0 %v5593_v44 }
 0xbe1   :  { %4608 = vmatprep.mubr.msk.f32.mxu1 %vm5128_vm5, %v5125_v34  ;;  %4601 = vmatpush3.msra.mxu1 %v5556_v3 }
 0xbe2   :  { %4602 = vmatprep.subr.mxu1 %v5125_v34  ;;  %4655 = vmatprep.subr.mxu0 %v5125_v34 }
 0xbe3   :  { %4603 = vmatpush3.msra.mxu1 %v5561_v38 }
 0xbe4   :  { %4604 = vmatprep.subr.mxu1 %v5125_v34 }
 0xbe5   :  { %4605 = vmatpush3.msra.mxu1 %v5579_v27 }
 0xbe6   :  { %4606 = vmatprep.subr.mxu1 %v5125_v34 }
 0xbe7   :  { %4607 = vmatpush3.msra.mxu1 %v5593_v44 }
 0xbe8   :  { %4622 = vmatprep.subr.mxu1 %v5125_v34 }
 0xc87   :  { %v1654_v57 = vpop.f32.mrf.mxu0 }
 0xc89   :  { %v4621_v58 = vpop.f32.mrf.mxu0 }
 0xca0   :  { %v4588_v13 = vpop.f32.mrf.mxu1 }
 0xca1   :  { %v5537_v5 = vadd.f32 %v4588_v13, %v4231_v40 }
 0xca2   :  { %v1354_v9 = vpop.f32.mrf.mxu1 }
 0xca3   :  { %v1447_v17 = vadd.f32 %v1443_v18, %v5537_v5  ;;  %v5540_v6 = vadd.f32 %v4231_v40, %v1354_v9 }
 0xca5   :  { %v1446_v7 = vadd.f32 %v1438_v2, %v5540_v6  ;;  %4890 = vtanh.f32 %v1447_v17  ;;  %v4239_v16 = vmul.f32 -1.442695, %v1447_v17 }
 0xca7   :  { %4892 = vtanh.f32 %v1446_v7  ;;  %v4238_v19 = vmul.f32 -1.442695, %v1446_v7 }
 0xca8   :  { %4894 = vpow2.f32 %v4239_v16 }
 0xca9   :  { %4896 = vpow2.f32 %v4238_v19 }
 0xcb2   :  { %v4891_v8 = vpop.eup %4890 }
 0xcb3   :  { %1468 = vrot.lane.b32.xlu0 %v4891_v8, %s5130_s20  ;;  %v5653_v8 = vld [vmem:[%s6198_s12 + $0x1] ss:$0 sm:$0xff] }
 0xcb4   :  { %v4893_v10 = vpop.eup %4892 }
 0xcb5   :  { %1466 = vrot.lane.b32.xlu1 %v4893_v10, %s5130_s20  ;;  %v4895_v22 = vpop.eup %4894 }
 0xcb6   :  { %v1455_v23 = vadd.f32 1.0, %v4895_v22  ;;  %v4897_v24 = vpop.eup %4896 }
 0xcb7   :  { %v1454_v25 = vadd.f32 1.0, %v4897_v24 }
 0xcb8   :  { %4898 = vrcp.f32 %v1455_v23 }
 0xcb9   :  { %4900 = vrcp.f32 %v1454_v25 }
 0xcc5   :  { %v4899_v14 = vpop.eup %4898 }
 0xcc6   :  { %v4901_v30 = vpop.eup %4900  ;;  %v1463_v32 = vmul.f32 0.0, %v4899_v14 }
 0xcc7   :  { %v1462_v35 = vmul.f32 0.0, %v4901_v30 }
 0xd25   :  { %v1469_v1 = vpop.permute.xlu0 %1468 }
 0xd26   :  { %v1473_v28 = vmul.f32 %v4899_v14, %v1469_v1 }
 0xd27   :  { %v1467_v29 = vpop.permute.xlu1 %1466 }
 0xd28   :  { %1478 = vrot.lane.b32.xlu1 %v1473_v28, %s5130_s20  ;;  %v1472_v31 = vmul.f32 %v4901_v30, %v1467_v29 }
 0xd2c   :  { %1476 = vrot.lane.b32.xlu1 %v1472_v31, %s5130_s20 }
 0xd9a   :  { %v1479_v15 = vpop.permute.xlu1 %1478 }
 0xd9b   :  { %v5547_v33 = vadd.f32 %v1479_v15, %v1463_v32 }
 0xd9d   :  { %4902 = vtanh.f32 %v5547_v33 }
 0xd9e   :  { %v1477_v36 = vpop.permute.xlu1 %1476 }
 0xd9f   :  { %v5550_v37 = vadd.f32 %v1477_v36, %v1462_v35 }
 0xda1   :  { %4904 = vtanh.f32 %v5550_v37  ;;  %v1775_v32 = vrot.slane %v5550_v37, 7 }
 0xdaa   :  { %v4903_v46 = vpop.eup %4902 }
 0xdab   :  { %1490 = vrot.lane.b32.xlu0 %v4903_v46, %s5130_s20 }
 0xdae   :  { %v4905_v48 = vpop.eup %4904 }
 0xdaf   :  { %1488 = vrot.lane.b32.xlu1 %v4905_v48, %s5130_s20 }
 0xe1d   :  { %v1491_v50 = vpop.permute.xlu0 %1490 }
 0xe1e   :  { %v1495_v51 = vmul.f32 %v4899_v14, %v1491_v50 }
 0xe20   :  { %v1507_v53 = vrot.slane %v1495_v51, 7 }
 0xe21   :  { %v1489_v52 = vpop.permute.xlu1 %1488 }
 0xe22   :  { %v1494_v54 = vmul.f32 %v4901_v30, %v1489_v52  ;;  %v1776_v30 = vrot.slane %v5547_v33, 7 }
 0xe24   :  { %v1508_v55 = vsel %vm904_vm6, %v1507_v53, %v1494_v54 }
 0xe25   :  { %1509 = vrot.lane.b32.xlu0 %v1508_v55, %s5127_s2 }
 0xe97   :  { %v1510_v56 = vpop.permute.xlu0 %1509 }
 0xe98   :  { %4609 = vmatmul.mubr.msk.f32.vlgmr.msra.gmra.mxu1 %vm142_vm3, %v1510_v56 }
 0xe99   :  { %4623 = vmatpush3.msra.mxu1 %v5484_v26  ;;  %4630 = vmatprep.mubr.msk.f32.mxu1 %vm5128_vm5, %v5125_v34 }
 0xe9a   :  { %4624 = vmatprep.subr.mxu1 %v5125_v34 }
 0xe9b   :  { %4625 = vmatpush3.msra.mxu1 %v5492_v43 }
 0xe9c   :  { %4626 = vmatprep.subr.mxu1 %v5125_v34 }
 0xe9d   :  { %4627 = vmatpush3.msra.mxu1 %v5502_v45 }
 0xe9e   :  { %4628 = vmatprep.subr.mxu1 %v5125_v34 }
 0xe9f   :  { %4629 = vmatpush3.msra.mxu1 %v5512_v47 }
 0xea0   :  { %4631 = vmatmul.mubr.msk.f32.vlgmr.msra.gmra.mxu1 %vm142_vm3, %v1510_v56  ;;  %4644 = vmatprep.subr.mxu1 %v5125_v34 }
 0xea1   :  { %4645 = vmatpush3.msra.mxu1 %v5566_v39  ;;  %4652 = vmatprep.mubr.msk.f32.mxu1 %vm5128_vm5, %v5125_v34 }
 0xea2   :  { %4646 = vmatprep.subr.mxu1 %v5125_v34 }
 0xea3   :  { %4647 = vmatpush3.msra.mxu1 %v5573_v41 }
 0xea4   :  { %4648 = vmatprep.subr.mxu1 %v5125_v34 }
 0xea5   :  { %4649 = vmatpush3.msra.mxu1 %v5585_v42 }
 0xea6   :  { %4650 = vmatprep.subr.mxu1 %v5125_v34 }
 0xea7   :  { %4651 = vmatpush3.msra.mxu1 %v5607_v49 }
 0xea8   :  { %4666 = vmatprep.subr.mxu1 %v5125_v34 }
 0xf58   :  { %v1579_v59 = vpop.f32.mrf.mxu1 }
 0xf59   :  { %v1580_v16 = vadd.f32 %v5653_v8, %v1579_v59 }
 0xf5a   :  { %v4610_v60 = vpop.f32.mrf.mxu1 }
 0xf5b   :  { %v1658_v19 = vadd.f32 %v1654_v57, %v1580_v16 }
 0xf5d   :  { %v4250_v29 = vmul.f32 -1.442695, %v1658_v19 }
 0xf60   :  { %v1749_v61 = vpop.f32.mrf.mxu1 }
 0xf61   :  { %v1754_v62 = vrot.slane %v1749_v61, 7  ;;  %v1758_v63 = vadd.f32 %v1749_v61, %v5537_v5 }
 0xf62   :  { %v4632_v0 = vpop.f32.mrf.mxu1 }
 0xf63   :  { %v1757_v2 = vadd.f32 %v1754_v62, %v5540_v6  ;;  %4906 = vtanh.f32 %v1758_v63  ;;  %v4253_v18 = vmul.f32 -1.442695, %v1758_v63 }
 0xf65   :  { %4908 = vtanh.f32 %v1757_v2  ;;  %v4252_v13 = vmul.f32 -1.442695, %v1757_v2 }
 0xf66   :  { %4910 = vpow2.f32 %v4253_v18 }
 0xf67   :  { %4912 = vpow2.f32 %v4252_v13 }
 0xf70   :  { %v4907_v4 = vpop.eup %4906 }
 0xf71   :  { %1785 = vrot.lane.b32.xlu0 %v4907_v4, %s5130_s20 }
 0xf72   :  { %v4909_v40 = vpop.eup %4908 }
 0xf73   :  { %1783 = vrot.lane.b32.xlu1 %v4909_v40, %s5130_s20  ;;  %v4911_v9 = vpop.eup %4910 }
 0xf74   :  { %v4913_v17 = vpop.eup %4912  ;;  %v1766_v7 = vadd.f32 1.0, %v4911_v9 }
 0xf75   :  { %v1765_v10 = vadd.f32 1.0, %v4913_v17 }
 0xf76   :  { %4914 = vrcp.f32 %v1766_v7 }
 0xf77   :  { %4916 = vrcp.f32 %v1765_v10 }
 0xf78   :  { %4918 = vtanh.f32 %v1658_v19 }
 0xf79   :  { %4920 = vpow2.f32 %v4250_v29 }
 0xf83   :  { %v4915_v22 = vpop.eup %4914 }
 0xf84   :  { %v4917_v25 = vpop.eup %4916  ;;  %v1780_v31 = vmul.f32 %v4915_v22, %v1776_v30 }
 0xf85   :  { %v4919_v28 = vpop.eup %4918  ;;  %v1779_v46 = vmul.f32 %v4917_v25, %v1775_v32 }
 0xf86   :  { %v4921_v35 = vpop.eup %4920 }
 0xf87   :  { %v1662_v50 = vadd.f32 1.0, %v4921_v35 }
 0xfe3   :  { %v1786_v23 = vpop.permute.xlu0 %1785 }
 0xfe4   :  { %v1790_v24 = vmul.f32 %v4915_v22, %v1786_v23 }
 0xfe5   :  { %v1784_v14 = vpop.permute.xlu1 %1783 }
 0xfe6   :  { %1795 = vrot.lane.b32.xlu0 %v1790_v24, %s5130_s20  ;;  %v1789_v1 = vmul.f32 %v4917_v25, %v1784_v14 }
 0xfe8   :  { %1793 = vrot.lane.b32.xlu1 %v1789_v1, %s5130_s20 }
 0xfec   :  { %1668 = vrot.lane.b32.xlu1 %v4919_v28, %s5130_s20 }
0x1058   :  { %v1796_v15 = vpop.permute.xlu0 %1795 }
0x1059   :  { %v5661_v36 = vadd.f32 %v1796_v15, %v1780_v31 }
0x105a   :  { %v1794_v48 = vpop.permute.xlu1 %1793 }
0x105b   :  { %4922 = vtanh.f32 %v5661_v36  ;;  %v5664_v51 = vadd.f32 %v1794_v48, %v1779_v46 }
0x105d   :  { %4924 = vtanh.f32 %v5664_v51 }
0x105e   :  { %4926 = vrcp.f32 %v1662_v50  ;;  %v1669_v53 = vpop.permute.xlu1 %1668 }
0x1068   :  { %v4923_v52 = vpop.eup %4922 }
0x1069   :  { %1807 = vrot.lane.b32.xlu1 %v4923_v52, %s5130_s20 }
0x106a   :  { %v4925_v33 = vpop.eup %4924 }
0x106b   :  { %1805 = vrot.lane.b32.xlu0 %v4925_v33, %s5130_s20  ;;  %v4927_v37 = vpop.eup %4926 }
0x106c   :  { %v1671_v54 = vmul.f32 %v4927_v37, %v1669_v53  ;;  %v1666_v60 = vmul.f32 0.0, %v4927_v37 }
0x106f   :  { %1673 = vrot.lane.b32.xlu0 %v1671_v54, %s5130_s20 }
0x10db   :  { %v1808_v55 = vpop.permute.xlu1 %1807 }
0x10dc   :  { %v1812_v58 = vmul.f32 %v4915_v22, %v1808_v55 }
0x10dd   :  { %v1806_v56 = vpop.permute.xlu0 %1805 }
0x10de   :  { %v1811_v57 = vmul.f32 %v4917_v25, %v1806_v56 }
0x10e0   :  { %v1815_v59 = vrot.slane %v1811_v57, 1  ;;  %v2084_v57 = vrot.slane %v5664_v51, 7 }
0x10e1   :  { %v1674_v61 = vpop.permute.xlu0 %1673 }
0x10e2   :  { %v5670_v62 = vadd.f32 %v1674_v61, %v1666_v60  ;;  %v1816_v63 = vsel %vm904_vm6, %v1812_v58, %v1815_v59  ;;  %v2085_v58 = vrot.slane %v5661_v36, 7 }
0x10e3   :  { %1817 = vrot.lane.b32.xlu1 %v1816_v63, %s5127_s2 }
0x10e4   :  { %4928 = vtanh.f32 %v5670_v62 }
0x10f1   :  { %v4929_v0 = vpop.eup %4928 }
0x10f2   :  { %1679 = vrot.lane.b32.xlu0 %v4929_v0, %s5130_s20 }
0x1155   :  { %v1818_v2 = vpop.permute.xlu1 %1817 }
0x1156   :  { %4642 = vmatmul.mubr.msk.f32.vlgmr.msra.gmra.mxu0 %vm142_vm3, %v1818_v2 }
0x1157   :  { %4656 = vmatpush3.msra.mxu0 %v5484_v26  ;;  %4663 = vmatprep.mubr.msk.f32.mxu0 %vm5128_vm5, %v5125_v34 }
0x1158   :  { %4657 = vmatprep.subr.mxu0 %v5125_v34 }
0x1159   :  { %4658 = vmatpush3.msra.mxu0 %v5492_v43 }
0x115a   :  { %4659 = vmatprep.subr.mxu0 %v5125_v34 }
0x115b   :  { %4660 = vmatpush3.msra.mxu0 %v5502_v45 }
0x115c   :  { %4661 = vmatprep.subr.mxu0 %v5125_v34 }
0x115d   :  { %4662 = vmatpush3.msra.mxu0 %v5512_v47 }
0x115e   :  { %4664 = vmatmul.mubr.msk.f32.vlgmr.msra.gmra.mxu0 %vm142_vm3, %v1818_v2  ;;  %4677 = vmatprep.subr.mxu0 %v5125_v34 }
0x115f   :  { %4678 = vmatpush3.msra.mxu0 %v5566_v39  ;;  %4685 = vmatprep.mubr.msk.f32.mxu0 %vm5128_vm5, %v5125_v34 }
0x1160   :  { %4679 = vmatprep.subr.mxu0 %v5125_v34 }
0x1161   :  { %4680 = vmatpush3.msra.mxu0 %v5573_v41 }
0x1162   :  { %4681 = vmatprep.subr.mxu0 %v5125_v34 }
0x1163   :  { %4682 = vmatpush3.msra.mxu0 %v5585_v42 }
0x1164   :  { %v1680_v4 = vpop.permute.xlu0 %1679  ;;  %4683 = vmatprep.subr.mxu0 %v5125_v34 }
0x1165   :  { %v5696_v40 = vmul.f32 %v4927_v37, %v1680_v4  ;;  %4684 = vmatpush3.msra.mxu0 %v5607_v49 }
0x1166   :  { %4699 = vmatprep.subr.mxu0 %v5125_v34 }
0x1167   :  { %1892 = vrot.lane.b32.xlu1 %v5696_v40, %s5127_s2 }
0x11d9   :  { %v1893_v18 = vpop.permute.xlu1 %1892 }
0x11da   :  { %4653 = vmatmul.mubr.msk.f32.vlgmr.msra.gmra.mxu1 %vm142_vm3, %v1893_v18 }
0x11db   :  { %4667 = vmatpush3.msra.mxu1 %v5556_v3  ;;  %4674 = vmatprep.mubr.msk.f32.mxu1 %vm5128_vm5, %v5125_v34 }
0x11dc   :  { %4668 = vmatprep.subr.mxu1 %v5125_v34 }
0x11dd   :  { %4669 = vmatpush3.msra.mxu1 %v5561_v38 }
0x11de   :  { %4670 = vmatprep.subr.mxu1 %v5125_v34 }
0x11df   :  { %4671 = vmatpush3.msra.mxu1 %v5579_v27 }
0x11e0   :  { %4672 = vmatprep.subr.mxu1 %v5125_v34 }
0x11e1   :  { %4673 = vmatpush3.msra.mxu1 %v5593_v44 }
0x11e2   :  { %4688 = vmatprep.subr.mxu1 %v5125_v34 }
0x1216   :  { %v1887_v13 = vpop.f32.mrf.mxu0 }
0x1217   :  { %v1888_v31 = vadd.f32 %v5653_v8, %v1887_v13 }
0x1218   :  { %v4643_v9 = vpop.f32.mrf.mxu0 }
0x121e   :  { %v2057_v17 = vpop.f32.mrf.mxu0 }
0x121f   :  { %v2062_v7 = vrot.slane %v2057_v17, 6  ;;  %v2063_v10 = vrot.slane %v2057_v17, 7 }
0x1220   :  { %v4665_v16 = vpop.f32.mrf.mxu0 }
0x1221   :  { %v2066_v19 = vadd.f32 %v2062_v7, %v5540_v6  ;;  %v2067_v22 = vadd.f32 %v2063_v10, %v5537_v5 }
0x1223   :  { %4930 = vtanh.f32 %v2066_v19  ;;  %v4258_v25 = vmul.f32 -1.442695, %v2066_v19  ;;  %v4259_v14 = vmul.f32 -1.442695, %v2067_v22 }
0x1224   :  { %4932 = vtanh.f32 %v2067_v22 }
0x1225   :  { %4934 = vpow2.f32 %v4258_v25 }
0x1226   :  { %4936 = vpow2.f32 %v4259_v14 }
0x1230   :  { %v4931_v23 = vpop.eup %4930 }
0x1231   :  { %v4933_v24 = vpop.eup %4932  ;;  %2092 = vrot.lane.b32.xlu0 %v4931_v23, %s5130_s20 }
0x1232   :  { %2094 = vrot.lane.b32.xlu1 %v4933_v24, %s5130_s20  ;;  %v4935_v1 = vpop.eup %4934 }
0x1233   :  { %v4937_v28 = vpop.eup %4936  ;;  %v2074_v29 = vadd.f32 1.0, %v4935_v1 }
0x1234   :  { %v2075_v30 = vadd.f32 1.0, %v4937_v28  ;;  %v3857_v28 = vrot.slane %v5696_v40, %v5419_v20 }
0x1235   :  { %4938 = vrcp.f32 %v2074_v29 }
0x1236   :  { %4940 = vrcp.f32 %v2075_v30 }
0x1242   :  { %v4939_v46 = vpop.eup %4938 }
0x1243   :  { %v4941_v50 = vpop.eup %4940  ;;  %v2088_v59 = vmul.f32 %v4939_v46, %v2084_v57 }
0x1244   :  { %v2089_v60 = vmul.f32 %v4941_v50, %v2085_v58 }
0x129a   :  { %v1962_v32 = vpop.f32.mrf.mxu1 }
0x129b   :  { %v1966_v15 = vadd.f32 %v1962_v32, %v1888_v31  ;;  %v3858_v31 = vcombine.high %v3857_v28, %v3857_v28 }
0x129c   :  { %v4654_v35 = vpop.f32.mrf.mxu1 }
0x129d   :  { %4942 = vtanh.f32 %v1966_v15  ;;  %v4256_v54 = vmul.f32 -1.442695, %v1966_v15  ;;  %v3865_v15 = vrot.slane %v3857_v28, %v5419_v20 }
0x129f   :  { %4944 = vpow2.f32 %v4256_v54 }
0x12a3   :  { %v2093_v48 = vpop.permute.xlu0 %2092 }
0x12a4   :  { %v2095_v52 = vpop.permute.xlu1 %2094  ;;  %v2098_v33 = vmul.f32 %v4939_v46, %v2093_v48  ;;  %v3872_v48 = vrot.slane %v3858_v31, %v5419_v20 }
0x12a5   :  { %v2099_v53 = vmul.f32 %v4941_v50, %v2095_v52 }
0x12a6   :  { %2102 = vrot.lane.b32.xlu0 %v2098_v33, %s5130_s20 }
0x12a7   :  { %2104 = vrot.lane.b32.xlu1 %v2099_v53, %s5130_s20 }
0x12aa   :  { %v4943_v37 = vpop.eup %4942 }
0x12ab   :  { %1976 = vrot.lane.b32.xlu0 %v4943_v37, %s5130_s20 }
0x12ac   :  { %v4945_v55 = vpop.eup %4944 }
0x12ad   :  { %v1970_v56 = vadd.f32 1.0, %v4945_v55 }
0x12af   :  { %4946 = vrcp.f32 %v1970_v56 }
0x12bc   :  { %v4947_v4 = vpop.eup %4946 }
0x12bd   :  { %v1974_v36 = vmul.f32 %v4947_v4, %v5670_v62 }
0x1318   :  { %v2103_v61 = vpop.permute.xlu0 %2102 }
0x1319   :  { %v2105_v63 = vpop.permute.xlu1 %2104  ;;  %v5723_v0 = vadd.f32 %v2103_v61, %v2088_v59 }
0x131a   :  { %v5725_v2 = vadd.f32 %v2105_v63, %v2089_v60 }
0x131b   :  { %4948 = vtanh.f32 %v5723_v0 }
0x131c   :  { %4950 = vtanh.f32 %v5725_v2 }
0x131d   :  { %v1977_v18 = vpop.permute.xlu0 %1976 }
0x131e   :  { %v1979_v13 = vmul.f32 %v4947_v4, %v1977_v18 }
0x1320   :  { %1981 = vrot.lane.b32.xlu1 %v1979_v13, %s5130_s20 }
0x1328   :  { %v4949_v51 = vpop.eup %4948 }
0x1329   :  { %v4951_v9 = vpop.eup %4950  ;;  %2114 = vrot.lane.b32.xlu0 %v4949_v51, %s5130_s20 }
0x132a   :  { %2116 = vrot.lane.b32.xlu1 %v4951_v9, %s5130_s20 }
0x1392   :  { %v1982_v17 = vpop.permute.xlu1 %1981 }
0x1393   :  { %v5733_v7 = vadd.f32 %v1982_v17, %v1974_v36 }
0x1395   :  { %4952 = vtanh.f32 %v5733_v7 }
0x139b   :  { %v2115_v10 = vpop.permute.xlu0 %2114 }
0x139c   :  { %v2120_v16 = vmul.f32 %v4939_v46, %v2115_v10  ;;  %v2117_v19 = vpop.permute.xlu1 %2116 }
0x139d   :  { %v2121_v22 = vmul.f32 %v4941_v50, %v2117_v19 }
0x139e   :  { %v2124_v23 = vrot.slane %v2120_v16, 2 }
0x139f   :  { %v2125_v24 = vrot.slane %v2121_v22, 1 }
0x13a1   :  { %v2126_v25 = vsel %vm904_vm6, %v2125_v24, %v2124_v23 }
0x13a2   :  { %v4953_v14 = vpop.eup %4952  ;;  %2127 = vrot.lane.b32.xlu0 %v2126_v25, %s5127_s2 }
0x13a3   :  { %1987 = vrot.lane.b32.xlu1 %v4953_v14, %s5130_s20 }
0x1414   :  { %v2128_v1 = vpop.permute.xlu0 %2127 }
0x1415   :  { %4675 = vmatmul.mubr.msk.f32.vlgmr.msra.gmra.mxu1 %vm142_vm3, %v2128_v1  ;;  %v1988_v62 = vpop.permute.xlu1 %1987 }
0x1416   :  { %4689 = vmatpush3.msra.mxu1 %v5484_v26  ;;  %v1990_v29 = vmul.f32 %v4947_v4, %v1988_v62  ;;  %4696 = vmatprep.mubr.msk.f32.mxu1 %vm5128_vm5, %v5125_v34 }
0x1417   :  { %4690 = vmatprep.subr.mxu1 %v5125_v34 }
0x1418   :  { %4691 = vmatpush3.msra.mxu1 %v5492_v43  ;;  %v3881_v30 = vrot.slane %v1990_v29, %v5419_v20  ;;  %2202 = vrot.lane.b32.xlu0 %v1990_v29, %s5127_s2 }
0x1419   :  { %4692 = vmatprep.subr.mxu1 %v5125_v34 }
0x141a   :  { %v3882_v32 = vcombine.high %v3881_v30, %v3881_v30  ;;  %v3889_v40 = vrot.slane %v3881_v30, %v5419_v20  ;;  %4693 = vmatpush3.msra.mxu1 %v5502_v45 }
0x141b   :  { %4694 = vmatprep.subr.mxu1 %v5125_v34 }
0x141c   :  { %v3896_v35 = vrot.slane %v3882_v32, %v5419_v20  ;;  %v4033_v46 = vrot.slane %v3889_v40, %v5255_v21  ;;  %4695 = vmatpush3.msra.mxu1 %v5512_v47 }
0x141d   :  { %4697 = vmatmul.mubr.msk.f32.vlgmr.msra.gmra.mxu1 %vm142_vm3, %v2128_v1  ;;  %4710 = vmatprep.subr.mxu1 %v5125_v34 }
0x141e   :  { %v4037_v50 = vrot.slane %v3896_v35, %v5255_v21  ;;  %v5761_v52 = vsel %vm4100_vm7, %v3865_v15, %v4033_v46  ;;  %4711 = vmatpush3.msra.mxu1 %v5566_v39  ;;  %4718 = vmatprep.mubr.msk.f32.mxu1 %vm5128_vm5, %v5125_v34  ;;  %v2394_v15 = vrot.slane %v5723_v0, 7  ;;  %v2395_v35 = vrot.slane %v5725_v2, 7 }
0x141f   :  { %4712 = vmatprep.subr.mxu1 %v5125_v34 }
0x1420   :  { %v5767_v33 = vsel %vm4100_vm7, %v3872_v48, %v4037_v50  ;;  %4713 = vmatpush3.msra.mxu1 %v5573_v41 }
0x1421   :  { %4714 = vmatprep.subr.mxu1 %v5125_v34 }
0x1422   :  { %4715 = vmatpush3.msra.mxu1 %v5585_v42 }
0x1423   :  { %4716 = vmatprep.subr.mxu1 %v5125_v34 }
0x1424   :  { %4717 = vmatpush3.msra.mxu1 %v5607_v49 }
0x1425   :  { %4732 = vmatprep.subr.mxu1 %v5125_v34 }
0x148a   :  { %v2203_v53 = vpop.permute.xlu0 %2202 }
0x148b   :  { %4686 = vmatmul.mubr.msk.f32.vlgmr.msra.gmra.mxu0 %vm142_vm3, %v2203_v53 }
0x148c   :  { %4700 = vmatpush3.msra.mxu0 %v5556_v3  ;;  %4707 = vmatprep.mubr.msk.f32.mxu0 %vm5128_vm5, %v5125_v34 }
0x148d   :  { %4701 = vmatprep.subr.mxu0 %v5125_v34 }
0x148e   :  { %4702 = vmatpush3.msra.mxu0 %v5561_v38 }
0x148f   :  { %4703 = vmatprep.subr.mxu0 %v5125_v34 }
0x1490   :  { %4704 = vmatpush3.msra.mxu0 %v5579_v27 }
0x1491   :  { %4705 = vmatprep.subr.mxu0 %v5125_v34 }
0x1492   :  { %4706 = vmatpush3.msra.mxu0 %v5593_v44 }
0x1493   :  { %4721 = vmatprep.subr.mxu0 %v5125_v34 }
0x14d5   :  { %v2197_v37 = vpop.f32.mrf.mxu1 }
0x14d6   :  { %v2198_v13 = vadd.f32 %v5653_v8, %v2197_v37 }
0x14d7   :  { %v4676_v54 = vpop.f32.mrf.mxu1 }
0x14dd   :  { %v2367_v55 = vpop.f32.mrf.mxu1 }
0x14de   :  { %v2372_v56 = vrot.slane %v2367_v55, 5  ;;  %v2373_v57 = vrot.slane %v2367_v55, 6 }
0x14df   :  { %v4698_v58 = vpop.f32.mrf.mxu1 }
0x14e0   :  { %v2376_v59 = vadd.f32 %v2372_v56, %v5540_v6  ;;  %v2377_v60 = vadd.f32 %v2373_v57, %v5537_v5 }
0x14e2   :  { %4954 = vtanh.f32 %v2376_v59  ;;  %v4264_v4 = vmul.f32 -1.442695, %v2376_v59  ;;  %v4265_v18 = vmul.f32 -1.442695, %v2377_v60 }
0x14e3   :  { %4956 = vtanh.f32 %v2377_v60 }
0x14e4   :  { %4958 = vpow2.f32 %v4264_v4 }
0x14e5   :  { %4960 = vpow2.f32 %v4265_v18 }
0x14ef   :  { %v4955_v61 = vpop.eup %4954 }
0x14f0   :  { %v4957_v63 = vpop.eup %4956  ;;  %2402 = vrot.lane.b32.xlu1 %v4955_v61, %s5130_s20 }
0x14f1   :  { %2404 = vrot.lane.b32.xlu0 %v4957_v63, %s5130_s20  ;;  %v4959_v17 = vpop.eup %4958 }
0x14f2   :  { %v4961_v10 = vpop.eup %4960  ;;  %v2384_v16 = vadd.f32 1.0, %v4959_v17 }
0x14f3   :  { %v2385_v19 = vadd.f32 1.0, %v4961_v10 }
0x154b   :  { %v2272_v51 = vpop.f32.mrf.mxu0 }
0x154c   :  { %v2276_v9 = vadd.f32 %v2272_v51, %v2198_v13 }
0x154d   :  { %v4687_v36 = vpop.f32.mrf.mxu0 }
0x154e   :  { %4962 = vtanh.f32 %v2276_v9  ;;  %v4262_v28 = vmul.f32 -1.442695, %v2276_v9 }
0x154f   :  { %4964 = vrcp.f32 %v2384_v16 }
0x1550   :  { %4966 = vrcp.f32 %v2385_v19 }
0x1551   :  { %4968 = vpow2.f32 %v4262_v28 }
0x155b   :  { %v4963_v22 = vpop.eup %4962 }
0x155c   :  { %2286 = vrot.lane.b32.xlu1 %v4963_v22, %s5130_s20  ;;  %v4965_v23 = vpop.eup %4964 }
0x155d   :  { %v4967_v25 = vpop.eup %4966  ;;  %v2398_v46 = vmul.f32 %v4965_v23, %v2394_v15 }
0x155e   :  { %v4969_v29 = vpop.eup %4968  ;;  %v2399_v48 = vmul.f32 %v4967_v25, %v2395_v35 }
0x155f   :  { %v2280_v30 = vadd.f32 1.0, %v4969_v29 }
0x1561   :  { %4970 = vrcp.f32 %v2280_v30 }
0x1562   :  { %v2403_v24 = vpop.permute.xlu1 %2402 }
0x1563   :  { %v2405_v14 = vpop.permute.xlu0 %2404  ;;  %v2408_v1 = vmul.f32 %v4965_v23, %v2403_v24 }
0x1564   :  { %v2409_v62 = vmul.f32 %v4967_v25, %v2405_v14 }
0x1565   :  { %2412 = vrot.lane.b32.xlu0 %v2408_v1, %s5130_s20 }
0x1566   :  { %2414 = vrot.lane.b32.xlu1 %v2409_v62, %s5130_s20 }
0x156e   :  { %v4971_v31 = vpop.eup %4970 }
0x156f   :  { %v2284_v0 = vmul.f32 %v4971_v31, %v5733_v7 }
0x15ce   :  { %v2287_v32 = vpop.permute.xlu1 %2286 }
0x15cf   :  { %v2289_v40 = vmul.f32 %v4971_v31, %v2287_v32 }
0x15d1   :  { %2291 = vrot.lane.b32.xlu0 %v2289_v40, %s5130_s20 }
0x15d7   :  { %v2413_v50 = vpop.permute.xlu0 %2412 }
0x15d8   :  { %v2415_v53 = vpop.permute.xlu1 %2414  ;;  %v5797_v37 = vadd.f32 %v2413_v50, %v2398_v46 }
0x15d9   :  { %v5799_v54 = vadd.f32 %v2415_v53, %v2399_v48 }
0x15da   :  { %4972 = vtanh.f32 %v5797_v37 }
0x15db   :  { %4974 = vtanh.f32 %v5799_v54 }
0x15e7   :  { %v4973_v55 = vpop.eup %4972 }
0x15e8   :  { %v4975_v56 = vpop.eup %4974  ;;  %2424 = vrot.lane.b32.xlu1 %v4973_v55, %s5130_s20 }
0x15e9   :  { %2426 = vrot.lane.b32.xlu0 %v4975_v56, %s5130_s20 }
0x1643   :  { %v2292_v2 = vpop.permute.xlu0 %2291 }
0x1644   :  { %v5806_v57 = vadd.f32 %v2292_v2, %v2284_v0 }
0x1646   :  { %4976 = vtanh.f32 %v5806_v57 }
0x1653   :  { %v4977_v58 = vpop.eup %4976 }
0x1654   :  { %2297 = vrot.lane.b32.xlu1 %v4977_v58, %s5130_s20 }
0x165a   :  { %v2425_v59 = vpop.permute.xlu1 %2424 }
0x165b   :  { %v2427_v60 = vpop.permute.xlu0 %2426  ;;  %v2430_v61 = vmul.f32 %v4965_v23, %v2425_v59  ;;  %v2704_v59 = vrot.slane %v5797_v37, 7 }
0x165c   :  { %v2431_v63 = vmul.f32 %v4967_v25, %v2427_v60  ;;  %v2705_v60 = vrot.slane %v5799_v54, 7 }
0x165d   :  { %v2434_v4 = vrot.slane %v2430_v61, 3 }
0x165e   :  { %v2435_v18 = vrot.slane %v2431_v63, 2 }
0x1660   :  { %v2436_v13 = vsel %vm904_vm6, %v2435_v18, %v2434_v4 }
0x1661   :  { %2437 = vrot.lane.b32.xlu0 %v2436_v13, %s5127_s2 }
0x16c6   :  { %v2298_v51 = vpop.permute.xlu1 %2297 }
0x16c7   :  { %v2300_v7 = vmul.f32 %v4971_v31, %v2298_v51 }
0x16c9   :  { %v3903_v9 = vrot.slane %v2300_v7, %v5419_v20  ;;  %2512 = vrot.lane.b32.xlu1 %v2300_v7, %s5127_s2 }
0x16cb   :  { %v3904_v36 = vcombine.high %v3903_v9, %v3903_v9  ;;  %v3911_v17 = vrot.slane %v3903_v9, %v5419_v20 }
0x16cd   :  { %v3918_v10 = vrot.slane %v3904_v36, %v5419_v20  ;;  %v4043_v16 = vrot.slane %v3911_v17, %v5255_v21 }
0x16cf   :  { %v4047_v19 = vrot.slane %v3918_v10, %v5255_v21  ;;  %v5819_v22 = vsel %vm4103_vm8, %v5761_v52, %v4043_v16 }
0x16d1   :  { %v5822_v23 = vsel %vm4103_vm8, %v5767_v33, %v4047_v19 }
0x16d3   :  { %v2438_v24 = vpop.permute.xlu0 %2437 }
0x16d4   :  { %4708 = vmatmul.mubr.msk.f32.vlgmr.msra.gmra.mxu0 %vm142_vm3, %v2438_v24 }
0x16d5   :  { %4722 = vmatpush3.msra.mxu0 %v5484_v26  ;;  %4729 = vmatprep.mubr.msk.f32.mxu0 %vm5128_vm5, %v5125_v34 }
0x16d6   :  { %4723 = vmatprep.subr.mxu0 %v5125_v34 }
0x16d7   :  { %4724 = vmatpush3.msra.mxu0 %v5492_v43 }
0x16d8   :  { %4725 = vmatprep.subr.mxu0 %v5125_v34 }
0x16d9   :  { %4726 = vmatpush3.msra.mxu0 %v5502_v45 }
0x16da   :  { %4727 = vmatprep.subr.mxu0 %v5125_v34 }
0x16db   :  { %4728 = vmatpush3.msra.mxu0 %v5512_v47 }
0x16dc   :  { %4730 = vmatmul.mubr.msk.f32.vlgmr.msra.gmra.mxu0 %vm142_vm3, %v2438_v24  ;;  %4743 = vmatprep.subr.mxu0 %v5125_v34 }
0x16dd   :  { %4744 = vmatpush3.msra.mxu0 %v5566_v39  ;;  %4751 = vmatprep.mubr.msk.f32.mxu0 %vm5128_vm5, %v5125_v34 }
0x16de   :  { %4745 = vmatprep.subr.mxu0 %v5125_v34 }
0x16df   :  { %4746 = vmatpush3.msra.mxu0 %v5573_v41 }
0x16e0   :  { %4747 = vmatprep.subr.mxu0 %v5125_v34 }
0x16e1   :  { %4748 = vmatpush3.msra.mxu0 %v5585_v42 }
0x16e2   :  { %4749 = vmatprep.subr.mxu0 %v5125_v34 }
0x16e3   :  { %4750 = vmatpush3.msra.mxu0 %v5607_v49 }
0x16e4   :  { %4765 = vmatprep.subr.mxu0 %v5125_v34 }
0x173b   :  { %v2513_v26 = vpop.permute.xlu1 %2512 }
0x173c   :  { %4719 = vmatmul.mubr.msk.f32.vlgmr.msra.gmra.mxu1 %vm142_vm3, %v2513_v26 }
0x173d   :  { %4733 = vmatpush3.msra.mxu1 %v5556_v3  ;;  %4740 = vmatprep.mubr.msk.f32.mxu1 %vm5128_vm5, %v5125_v34 }
0x173e   :  { %4734 = vmatprep.subr.mxu1 %v5125_v34 }
0x173f   :  { %4735 = vmatpush3.msra.mxu1 %v5561_v38 }
0x1740   :  { %4736 = vmatprep.subr.mxu1 %v5125_v34 }
0x1741   :  { %4737 = vmatpush3.msra.mxu1 %v5579_v27 }
0x1742   :  { %4738 = vmatprep.subr.mxu1 %v5125_v34 }
0x1743   :  { %4739 = vmatpush3.msra.mxu1 %v5593_v44 }
0x1744   :  { %4754 = vmatprep.subr.mxu1 %v5125_v34 }
0x1794   :  { %v2507_v43 = vpop.f32.mrf.mxu0 }
0x1795   :  { %v2508_v44 = vadd.f32 %v5653_v8, %v2507_v43 }
0x1796   :  { %v4709_v45 = vpop.f32.mrf.mxu0 }
0x179c   :  { %v2677_v47 = vpop.f32.mrf.mxu0 }
0x179d   :  { %v2682_v3 = vrot.slane %v2677_v47, 4  ;;  %v2683_v39 = vrot.slane %v2677_v47, 5 }
0x179e   :  { %v4731_v41 = vpop.f32.mrf.mxu0 }
0x179f   :  { %v2686_v42 = vadd.f32 %v2682_v3, %v5540_v6  ;;  %v2687_v38 = vadd.f32 %v2683_v39, %v5537_v5 }
0x17a1   :  { %4978 = vtanh.f32 %v2686_v42  ;;  %v4270_v33 = vmul.f32 -1.442695, %v2686_v42  ;;  %v4271_v14 = vmul.f32 -1.442695, %v2687_v38 }
0x17a2   :  { %4980 = vtanh.f32 %v2687_v38 }
0x17ae   :  { %v4979_v52 = vpop.eup %4978 }
0x17af   :  { %v4981_v27 = vpop.eup %4980  ;;  %2712 = vrot.lane.b32.xlu0 %v4979_v52, %s5130_s20 }
0x17b0   :  { %2714 = vrot.lane.b32.xlu1 %v4981_v27, %s5130_s20 }
0x17fc   :  { %v2582_v25 = vpop.f32.mrf.mxu1 }
0x17fd   :  { %v2586_v1 = vadd.f32 %v2582_v25, %v2508_v44  ;;  %v5899_v25 = vld [vmem:[%s6197_s11 + $0x38] sm:$0xff] }
0x17fe   :  { %v4720_v62 = vpop.f32.mrf.mxu1 }
0x17ff   :  { %4982 = vtanh.f32 %v2586_v1  ;;  %v4268_v53 = vmul.f32 -1.442695, %v2586_v1  ;;  %v5930_v1 = vld [vmem:[%s6197_s11 + $0x78] sm:$0xff]  ;;  %v5939_v62 = vld [vmem:[%s6197_s11 + $0x70] sm:$0xff] }
0x1800   :  { %4984 = vpow2.f32 %v4270_v33 }
0x1801   :  { %4986 = vpow2.f32 %v4271_v14  ;;  %v5922_v14 = vld [vmem:[%s6197_s11 + $0x20] sm:$0xff] }
0x180c   :  { %v4983_v28 = vpop.eup %4982 }
0x180d   :  { %v4985_v29 = vpop.eup %4984  ;;  %2596 = vrot.lane.b32.xlu0 %v4983_v28, %s5130_s20  ;;  %v5946_v28 = vld [vmem:[%s6197_s11 + $0x68] sm:$0xff] }
0x180e   :  { %v4987_v30 = vpop.eup %4986  ;;  %v2694_v31 = vadd.f32 1.0, %v4985_v29 }
0x180f   :  { %v2695_v32 = vadd.f32 1.0, %v4987_v30  ;;  %v5956_v30 = vld [vmem:[%s6197_s11 + $0x58] sm:$0xff] }
0x1810   :  { %4988 = vrcp.f32 %v2694_v31  ;;  %v5972_v31 = vld [vmem:[%s6197_s11 + $0x48] sm:$0xff] }
0x1811   :  { %4990 = vrcp.f32 %v2695_v32  ;;  %v5979_v32 = vld [vmem:[%s6197_s11 + $0x40] sm:$0xff] }
0x1812   :  { %4992 = vpow2.f32 %v4268_v53 }
0x181d   :  { %v4989_v40 = vpop.eup %4988 }
0x181e   :  { %v4991_v35 = vpop.eup %4990  ;;  %v2708_v61 = vmul.f32 %v4989_v40, %v2704_v59 }
0x181f   :  { %v4993_v55 = vpop.eup %4992  ;;  %v2709_v4 = vmul.f32 %v4991_v35, %v2705_v60 }
0x1820   :  { %v2590_v56 = vadd.f32 1.0, %v4993_v55 }
0x1821   :  { %v2713_v15 = vpop.permute.xlu0 %2712 }
0x1822   :  { %v2718_v46 = vmul.f32 %v4989_v40, %v2713_v15  ;;  %v2715_v48 = vpop.permute.xlu1 %2714  ;;  %4994 = vrcp.f32 %v2590_v56 }
0x1823   :  { %v2719_v50 = vmul.f32 %v4991_v35, %v2715_v48 }
0x1824   :  { %2722 = vrot.lane.b32.xlu1 %v2718_v46, %s5130_s20 }
0x1825   :  { %2724 = vrot.lane.b32.xlu0 %v2719_v50, %s5130_s20 }
0x182f   :  { %v4995_v0 = vpop.eup %4994 }
0x1830   :  { %v2594_v37 = vmul.f32 %v4995_v0, %v5806_v57 }
0x187f   :  { %v2597_v2 = vpop.permute.xlu0 %2596 }
0x1880   :  { %v2599_v58 = vmul.f32 %v4995_v0, %v2597_v2 }
0x1882   :  { %2601 = vrot.lane.b32.xlu1 %v2599_v58, %s5130_s20 }
0x1896   :  { %v2723_v63 = vpop.permute.xlu1 %2722 }
0x1897   :  { %v5868_v18 = vadd.f32 %v2723_v63, %v2708_v61  ;;  %v2725_v13 = vpop.permute.xlu0 %2724 }
0x1898   :  { %v5870_v51 = vadd.f32 %v2725_v13, %v2709_v4 }
0x1899   :  { %4996 = vtanh.f32 %v5868_v18 }
0x189a   :  { %4998 = vtanh.f32 %v5870_v51 }
0x18a6   :  { %v4997_v7 = vpop.eup %4996 }
0x18a7   :  { %v4999_v9 = vpop.eup %4998  ;;  %2734 = vrot.lane.b32.xlu0 %v4997_v7, %s5130_s20 }
0x18a8   :  { %2736 = vrot.lane.b32.xlu1 %v4999_v9, %s5130_s20 }
0x18f4   :  { %v2602_v54 = vpop.permute.xlu1 %2601 }
0x18f5   :  { %v5877_v36 = vadd.f32 %v2602_v54, %v2594_v37 }
0x18f7   :  { %5000 = vtanh.f32 %v5877_v36 }
0x1904   :  { %v5001_v17 = vpop.eup %5000 }
0x1905   :  { %2607 = vrot.lane.b32.xlu0 %v5001_v17, %s5130_s20 }
0x1919   :  { %v2735_v10 = vpop.permute.xlu0 %2734 }
0x191a   :  { %v2740_v16 = vmul.f32 %v4989_v40, %v2735_v10  ;;  %v2737_v19 = vpop.permute.xlu1 %2736 }
0x191b   :  { %v2741_v24 = vmul.f32 %v4991_v35, %v2737_v19 }
0x191c   :  { %v2744_v26 = vrot.slane %v2740_v16, 4 }
0x191d   :  { %v2745_v43 = vrot.slane %v2741_v24, 3 }
0x191f   :  { %v2746_v45 = vsel %vm904_vm6, %v2745_v43, %v2744_v26 }
0x1920   :  { %2747 = vrot.lane.b32.xlu1 %v2746_v45, %s5127_s2 }
0x1977   :  { %v2608_v47 = vpop.permute.xlu0 %2607 }
0x1978   :  { %v2610_v57 = vmul.f32 %v4995_v0, %v2608_v47 }
0x197a   :  { %v3925_v3 = vrot.slane %v2610_v57, %v5419_v20  ;;  %2822 = vrot.lane.b32.xlu0 %v2610_v57, %s5127_s2 }
0x197c   :  { %v3926_v39 = vcombine.high %v3925_v3, %v3925_v3  ;;  %v3933_v41 = vrot.slane %v3925_v3, %v5419_v20  ;;  %v3014_v3 = vrot.slane %v5868_v18, 7 }
0x197e   :  { %v3940_v42 = vrot.slane %v3926_v39, %v5419_v20  ;;  %v4053_v38 = vrot.slane %v3933_v41, %v5255_v21  ;;  %v3015_v39 = vrot.slane %v5870_v51, 7 }
0x1980   :  { %v4057_v52 = vrot.slane %v3940_v42, %v5255_v21  ;;  %v5890_v27 = vsel %vm4106_vm9, %v5819_v22, %v4053_v38  ;;  %v5908_v22 = vld [vmem:[%s6197_s11 + $0x30] sm:$0xff] }
0x1982   :  { %v5893_v44 = vsel %vm4106_vm9, %v5822_v23, %v4057_v52  ;;  %v5915_v23 = vld [vmem:[%s6197_s11 + $0x28] sm:$0xff] }
0x1992   :  { %v2748_v33 = vpop.permute.xlu1 %2747 }
0x1993   :  { %4741 = vmatmul.mubr.msk.f32.vlgmr.msra.gmra.mxu1 %vm142_vm3, %v2748_v33 }
0x1994   :  { %4755 = vmatpush3.msra.mxu1 %v5899_v25  ;;  %4762 = vmatprep.mubr.msk.f32.mxu1 %vm5128_vm5, %v5125_v34 }
0x1995   :  { %4756 = vmatprep.subr.mxu1 %v5125_v34 }
0x1996   :  { %4757 = vmatpush3.msra.mxu1 %v5908_v22 }
0x1997   :  { %4758 = vmatprep.subr.mxu1 %v5125_v34 }
0x1998   :  { %4759 = vmatpush3.msra.mxu1 %v5915_v23 }
0x1999   :  { %4760 = vmatprep.subr.mxu1 %v5125_v34 }
0x199a   :  { %4761 = vmatpush3.msra.mxu1 %v5922_v14 }
0x199b   :  { %4763 = vmatmul.mubr.msk.f32.vlgmr.msra.gmra.mxu1 %vm142_vm3, %v2748_v33  ;;  %4776 = vmatprep.subr.mxu1 %v5125_v34 }
0x199c   :  { %4777 = vmatpush3.msra.mxu1 %v5930_v1  ;;  %4784 = vmatprep.mubr.msk.f32.mxu1 %vm5128_vm5, %v5125_v34 }
0x199d   :  { %4778 = vmatprep.subr.mxu1 %v5125_v34 }
0x199e   :  { %4779 = vmatpush3.msra.mxu1 %v5939_v62 }
0x199f   :  { %4780 = vmatprep.subr.mxu1 %v5125_v34 }
0x19a0   :  { %4781 = vmatpush3.msra.mxu1 %v5946_v28 }
0x19a1   :  { %4782 = vmatprep.subr.mxu1 %v5125_v34 }
0x19a2   :  { %4783 = vmatpush3.msra.mxu1 %v5607_v49  ;;  %v5965_v49 = vld [vmem:[%s6197_s11 + $0x50] sm:$0xff] }
0x19a3   :  { %4798 = vmatprep.subr.mxu1 %v5125_v34 }
0x19ec   :  { %v2823_v29 = vpop.permute.xlu0 %2822 }
0x19ed   :  { %4752 = vmatmul.mubr.msk.f32.vlgmr.msra.gmra.mxu0 %vm142_vm3, %v2823_v29 }
0x19ee   :  { %4766 = vmatpush3.msra.mxu0 %v5956_v30  ;;  %4773 = vmatprep.mubr.msk.f32.mxu0 %vm5128_vm5, %v5125_v34 }
0x19ef   :  { %4767 = vmatprep.subr.mxu0 %v5125_v34 }
0x19f0   :  { %4768 = vmatpush3.msra.mxu0 %v5965_v49 }
0x19f1   :  { %4769 = vmatprep.subr.mxu0 %v5125_v34 }
0x19f2   :  { %4770 = vmatpush3.msra.mxu0 %v5972_v31 }
0x19f3   :  { %4771 = vmatprep.subr.mxu0 %v5125_v34 }
0x19f4   :  { %4772 = vmatpush3.msra.mxu0 %v5979_v32 }
0x19f5   :  { %4787 = vmatprep.subr.mxu0 %v5125_v34 }
0x1a53   :  { %v2817_v40 = vpop.f32.mrf.mxu1 }
0x1a54   :  { %v2818_v2 = vadd.f32 %v5653_v8, %v2817_v40 }
0x1a55   :  { %v4742_v15 = vpop.f32.mrf.mxu1 }
0x1a5b   :  { %v2987_v35 = vpop.f32.mrf.mxu1 }
0x1a5c   :  { %v2992_v46 = vrot.slane %v2987_v35, 3  ;;  %v2993_v48 = vrot.slane %v2987_v35, 4 }
0x1a5d   :  { %v4764_v50 = vpop.f32.mrf.mxu1 }
0x1a5e   :  { %v2996_v53 = vadd.f32 %v2992_v46, %v5540_v6  ;;  %v2997_v55 = vadd.f32 %v2993_v48, %v5537_v5 }
0x1a60   :  { %5002 = vtanh.f32 %v2996_v53  ;;  %v4276_v61 = vmul.f32 -1.442695, %v2996_v53  ;;  %v4277_v63 = vmul.f32 -1.442695, %v2997_v55 }
0x1a61   :  { %5004 = vtanh.f32 %v2997_v55 }
0x1a6d   :  { %v5003_v56 = vpop.eup %5002 }
0x1a6e   :  { %v5005_v0 = vpop.eup %5004  ;;  %3022 = vrot.lane.b32.xlu1 %v5003_v56, %s5130_s20 }
0x1a6f   :  { %3024 = vrot.lane.b32.xlu0 %v5005_v0, %s5130_s20 }
0x1aad   :  { %v2892_v58 = vpop.f32.mrf.mxu0 }
0x1aae   :  { %v2896_v59 = vadd.f32 %v2892_v58, %v2818_v2 }
0x1aaf   :  { %v4753_v60 = vpop.f32.mrf.mxu0 }
0x1ab0   :  { %5006 = vtanh.f32 %v2896_v59  ;;  %v4274_v24 = vmul.f32 -1.442695, %v2896_v59 }
0x1ab1   :  { %5008 = vpow2.f32 %v4276_v61 }
0x1ab2   :  { %5010 = vpow2.f32 %v4277_v63 }
0x1abd   :  { %v5007_v4 = vpop.eup %5006 }
0x1abe   :  { %2906 = vrot.lane.b32.xlu1 %v5007_v4, %s5130_s20  ;;  %v5009_v13 = vpop.eup %5008 }
0x1abf   :  { %v5011_v7 = vpop.eup %5010  ;;  %v3004_v9 = vadd.f32 1.0, %v5009_v13 }
0x1ac0   :  { %v3005_v37 = vadd.f32 1.0, %v5011_v7 }
0x1ac1   :  { %5012 = vrcp.f32 %v3004_v9 }
0x1ac2   :  { %5014 = vrcp.f32 %v3005_v37 }
0x1ac3   :  { %5016 = vpow2.f32 %v4274_v24 }
0x1ace   :  { %v5013_v54 = vpop.eup %5012 }
0x1acf   :  { %v5015_v8 = vpop.eup %5014  ;;  %v3018_v41 = vmul.f32 %v5013_v54, %v3014_v3 }
0x1ad0   :  { %v5017_v26 = vpop.eup %5016  ;;  %v3019_v42 = vmul.f32 %v5015_v8, %v3015_v39 }
0x1ad1   :  { %v2900_v43 = vadd.f32 1.0, %v5017_v26 }
0x1ad3   :  { %5018 = vrcp.f32 %v2900_v43 }
0x1ae0   :  { %v3023_v17 = vpop.permute.xlu1 %3022  ;;  %v5019_v45 = vpop.eup %5018 }
0x1ae1   :  { %v3025_v10 = vpop.permute.xlu0 %3024  ;;  %v3028_v16 = vmul.f32 %v5013_v54, %v3023_v17  ;;  %v2904_v18 = vmul.f32 %v5019_v45, %v5877_v36 }
0x1ae2   :  { %v3029_v19 = vmul.f32 %v5015_v8, %v3025_v10 }
0x1ae3   :  { %3032 = vrot.lane.b32.xlu0 %v3028_v16, %s5130_s20 }
0x1ae4   :  { %3034 = vrot.lane.b32.xlu1 %v3029_v19, %s5130_s20 }
0x1b30   :  { %v2907_v47 = vpop.permute.xlu1 %2906 }
0x1b31   :  { %v2909_v57 = vmul.f32 %v5019_v45, %v2907_v47  ;;  %v6068_v47 = vld [vmem:[%s6198_s12 + $0x1] ss:$0 sm:$0xff] }
0x1b33   :  { %2911 = vrot.lane.b32.xlu0 %v2909_v57, %s5130_s20 }
0x1b55   :  { %v3033_v38 = vpop.permute.xlu0 %3032 }
0x1b56   :  { %v3035_v52 = vpop.permute.xlu1 %3034  ;;  %v5994_v33 = vadd.f32 %v3033_v38, %v3018_v41 }
0x1b57   :  { %v5996_v29 = vadd.f32 %v3035_v52, %v3019_v42 }
0x1b58   :  { %5020 = vtanh.f32 %v5994_v33 }
0x1b59   :  { %5022 = vtanh.f32 %v5996_v29 }
0x1b65   :  { %v5021_v40 = vpop.eup %5020 }
0x1b66   :  { %v5023_v15 = vpop.eup %5022  ;;  %3044 = vrot.lane.b32.xlu1 %v5021_v40, %s5130_s20 }
0x1b67   :  { %3046 = vrot.lane.b32.xlu0 %v5023_v15, %s5130_s20 }
0x1ba5   :  { %v2912_v51 = vpop.permute.xlu0 %2911 }
0x1ba6   :  { %v6003_v35 = vadd.f32 %v2912_v51, %v2904_v18 }
0x1ba8   :  { %5024 = vtanh.f32 %v6003_v35 }
0x1bb5   :  { %v5025_v46 = vpop.eup %5024 }
0x1bb6   :  { %2917 = vrot.lane.b32.xlu1 %v5025_v46, %s5130_s20 }
0x1bd8   :  { %v3045_v48 = vpop.permute.xlu1 %3044 }
0x1bd9   :  { %v3047_v50 = vpop.permute.xlu0 %3046  ;;  %v3050_v53 = vmul.f32 %v5013_v54, %v3045_v48 }
0x1bda   :  { %v3051_v55 = vmul.f32 %v5015_v8, %v3047_v50 }
0x1bdb   :  { %v3054_v56 = vrot.slane %v3050_v53, 5 }
0x1bdc   :  { %v3055_v0 = vrot.slane %v3051_v55, 4 }
0x1bde   :  { %v3056_v2 = vsel %vm904_vm6, %v3055_v0, %v3054_v56 }
0x1bdf   :  { %3057 = vrot.lane.b32.xlu0 %v3056_v2, %s5127_s2 }
0x1c28   :  { %v2918_v58 = vpop.permute.xlu1 %2917 }
0x1c29   :  { %v2920_v36 = vmul.f32 %v5019_v45, %v2918_v58 }
0x1c2b   :  { %v3947_v59 = vrot.slane %v2920_v36, %v5419_v20  ;;  %3132 = vrot.lane.b32.xlu1 %v2920_v36, %s5127_s2 }
0x1c2d   :  { %v3948_v60 = vcombine.high %v3947_v59, %v3947_v59  ;;  %v3955_v61 = vrot.slane %v3947_v59, %v5419_v20 }
0x1c2f   :  { %v3962_v63 = vrot.slane %v3948_v60, %v5419_v20  ;;  %v4063_v4 = vrot.slane %v3955_v61, %v5255_v21  ;;  %v3324_v61 = vrot.slane %v5994_v33, 7 }
0x1c31   :  { %v4067_v13 = vrot.slane %v3962_v63, %v5255_v21  ;;  %v6017_v7 = vsel %vm196_vm0, %v5890_v27, %v4063_v4  ;;  %v6046_v27 = vld [vmem:[%s6197_s11 + $0x60] sm:$0xff]  ;;  %v3325_v63 = vrot.slane %v5996_v29, 7 }
0x1c33   :  { %v6021_v9 = vsel %vm196_vm0, %v5893_v44, %v4067_v13 }
0x1c51   :  { %v3058_v37 = vpop.permute.xlu0 %3057 }
0x1c52   :  { %4774 = vmatmul.mubr.msk.f32.vlgmr.msra.gmra.mxu0 %vm142_vm3, %v3058_v37 }
0x1c53   :  { %4788 = vmatpush3.msra.mxu0 %v5899_v25  ;;  %4795 = vmatprep.mubr.msk.f32.mxu0 %vm5128_vm5, %v5125_v34 }
0x1c54   :  { %4789 = vmatprep.subr.mxu0 %v5125_v34 }
0x1c55   :  { %4790 = vmatpush3.msra.mxu0 %v5908_v22 }
0x1c56   :  { %4791 = vmatprep.subr.mxu0 %v5125_v34 }
0x1c57   :  { %4792 = vmatpush3.msra.mxu0 %v5915_v23 }
0x1c58   :  { %4793 = vmatprep.subr.mxu0 %v5125_v34 }
0x1c59   :  { %4794 = vmatpush3.msra.mxu0 %v5922_v14 }
0x1c5a   :  { %4796 = vmatmul.mubr.msk.f32.vlgmr.msra.gmra.mxu0 %vm142_vm3, %v3058_v37  ;;  %4809 = vmatprep.subr.mxu0 %v5125_v34 }
0x1c5b   :  { %4810 = vmatpush3.msra.mxu0 %v5930_v1  ;;  %4817 = vmatprep.mubr.msk.f32.mxu0 %vm5128_vm5, %v5125_v34 }
0x1c5c   :  { %4811 = vmatprep.subr.mxu0 %v5125_v34 }
0x1c5d   :  { %4812 = vmatpush3.msra.mxu0 %v5939_v62 }
0x1c5e   :  { %4813 = vmatprep.subr.mxu0 %v5125_v34 }
0x1c5f   :  { %4814 = vmatpush3.msra.mxu0 %v5946_v28 }
0x1c60   :  { %4815 = vmatprep.subr.mxu0 %v5125_v34 }
0x1c61   :  { %4816 = vmatpush3.msra.mxu0 %v6046_v27 }
0x1c62   :  { %4831 = vmatprep.subr.mxu0 %v5125_v34 }
0x1c9d   :  { %v3133_v44 = vpop.permute.xlu1 %3132 }
0x1c9e   :  { %4785 = vmatmul.mubr.msk.f32.vlgmr.msra.gmra.mxu1 %vm142_vm3, %v3133_v44 }
0x1c9f   :  { %4799 = vmatpush3.msra.mxu1 %v5956_v30  ;;  %4806 = vmatprep.mubr.msk.f32.mxu1 %vm5128_vm5, %v5125_v34 }
0x1ca0   :  { %4800 = vmatprep.subr.mxu1 %v5125_v34 }
0x1ca1   :  { %4801 = vmatpush3.msra.mxu1 %v5965_v49 }
0x1ca2   :  { %4802 = vmatprep.subr.mxu1 %v5125_v34 }
0x1ca3   :  { %4803 = vmatpush3.msra.mxu1 %v5972_v31 }
0x1ca4   :  { %4804 = vmatprep.subr.mxu1 %v5125_v34 }
0x1ca5   :  { %4805 = vmatpush3.msra.mxu1 %v5979_v32 }
0x1ca6   :  { %4820 = vmatprep.subr.mxu1 %v5125_v34 }
0x1d12   :  { %v3127_v54 = vpop.f32.mrf.mxu0 }
0x1d13   :  { %v3128_v57 = vadd.f32 %v6068_v47, %v3127_v54 }
0x1d14   :  { %v4775_v17 = vpop.f32.mrf.mxu0 }
0x1d1a   :  { %v3297_v8 = vpop.f32.mrf.mxu0 }
0x1d1b   :  { %v3302_v10 = vrot.slane %v3297_v8, 2  ;;  %v3303_v16 = vrot.slane %v3297_v8, 3 }
0x1d1c   :  { %v4797_v19 = vpop.f32.mrf.mxu0 }
0x1d1d   :  { %v3306_v24 = vadd.f32 %v3302_v10, %v5540_v6  ;;  %v3307_v26 = vadd.f32 %v3303_v16, %v5537_v5 }
0x1d1f   :  { %5026 = vtanh.f32 %v3306_v24  ;;  %v4282_v38 = vmul.f32 -1.442695, %v3306_v24  ;;  %v4283_v52 = vmul.f32 -1.442695, %v3307_v26 }
0x1d20   :  { %5028 = vtanh.f32 %v3307_v26 }
0x1d2c   :  { %v5027_v43 = vpop.eup %5026 }
0x1d2d   :  { %v5029_v45 = vpop.eup %5028  ;;  %3332 = vrot.lane.b32.xlu0 %v5027_v43, %s5130_s20 }
0x1d2e   :  { %3334 = vrot.lane.b32.xlu1 %v5029_v45, %s5130_s20 }
0x1d5e   :  { %v3202_v3 = vpop.f32.mrf.mxu1 }
0x1d5f   :  { %v3206_v39 = vadd.f32 %v3202_v3, %v3128_v57 }
0x1d60   :  { %v4786_v41 = vpop.f32.mrf.mxu1 }
0x1d61   :  { %5030 = vtanh.f32 %v3206_v39  ;;  %v4280_v0 = vmul.f32 -1.442695, %v3206_v39 }
0x1d62   :  { %5032 = vpow2.f32 %v4282_v38 }
0x1d63   :  { %5034 = vpow2.f32 %v4283_v52 }
0x1d6e   :  { %v5031_v42 = vpop.eup %5030 }
0x1d6f   :  { %3216 = vrot.lane.b32.xlu0 %v5031_v42, %s5130_s20  ;;  %v5033_v40 = vpop.eup %5032 }
0x1d70   :  { %v5035_v15 = vpop.eup %5034  ;;  %v3314_v18 = vadd.f32 1.0, %v5033_v40 }
0x1d71   :  { %v3315_v51 = vadd.f32 1.0, %v5035_v15 }
0x1d72   :  { %5036 = vrcp.f32 %v3314_v18 }
0x1d73   :  { %5038 = vrcp.f32 %v3315_v51 }
0x1d74   :  { %5040 = vpow2.f32 %v4280_v0 }
0x1d7f   :  { %v5037_v46 = vpop.eup %5036 }
0x1d80   :  { %v5039_v50 = vpop.eup %5038  ;;  %v3328_v4 = vmul.f32 %v5037_v46, %v3324_v61 }
0x1d81   :  { %v5041_v2 = vpop.eup %5040  ;;  %v3329_v37 = vmul.f32 %v5039_v50, %v3325_v63 }
0x1d82   :  { %v3210_v58 = vadd.f32 1.0, %v5041_v2 }
0x1d84   :  { %5042 = vrcp.f32 %v3210_v58 }
0x1d91   :  { %v5043_v36 = vpop.eup %5042 }
0x1d92   :  { %v3214_v33 = vmul.f32 %v5043_v36, %v6003_v35 }
0x1d9f   :  { %v3333_v48 = vpop.permute.xlu0 %3332 }
0x1da0   :  { %v3338_v53 = vmul.f32 %v5037_v46, %v3333_v48  ;;  %v3335_v55 = vpop.permute.xlu1 %3334 }
0x1da1   :  { %v3339_v56 = vmul.f32 %v5039_v50, %v3335_v55 }
0x1da2   :  { %3342 = vrot.lane.b32.xlu1 %v3338_v53, %s5130_s20 }
0x1da3   :  { %3344 = vrot.lane.b32.xlu0 %v3339_v56, %s5130_s20 }
0x1de1   :  { %v3217_v59 = vpop.permute.xlu0 %3216 }
0x1de2   :  { %v3219_v60 = vmul.f32 %v5043_v36, %v3217_v59 }
0x1de4   :  { %3221 = vrot.lane.b32.xlu1 %v3219_v60, %s5130_s20 }
0x1e14   :  { %v3343_v13 = vpop.permute.xlu1 %3342 }
0x1e15   :  { %v6077_v44 = vadd.f32 %v3343_v13, %v3328_v4  ;;  %v3345_v54 = vpop.permute.xlu0 %3344 }
0x1e16   :  { %v6079_v17 = vadd.f32 %v3345_v54, %v3329_v37 }
0x1e17   :  { %5044 = vtanh.f32 %v6077_v44 }
0x1e18   :  { %5046 = vtanh.f32 %v6079_v17 }
0x1e24   :  { %v5045_v8 = vpop.eup %5044 }
0x1e25   :  { %v5047_v10 = vpop.eup %5046  ;;  %3354 = vrot.lane.b32.xlu0 %v5045_v8, %s5130_s20 }
0x1e26   :  { %3356 = vrot.lane.b32.xlu1 %v5047_v10, %s5130_s20  ;;  %v3634_v10 = vrot.slane %v6077_v44, 7 }
0x1e56   :  { %v3222_v29 = vpop.permute.xlu1 %3221 }
0x1e57   :  { %v6086_v16 = vadd.f32 %v3222_v29, %v3214_v33  ;;  %v3635_v33 = vrot.slane %v6079_v17, 7 }
0x1e59   :  { %5048 = vtanh.f32 %v6086_v16 }
0x1e66   :  { %v5049_v19 = vpop.eup %5048 }
0x1e67   :  { %3227 = vrot.lane.b32.xlu0 %v5049_v19, %s5130_s20 }
0x1e97   :  { %v3355_v24 = vpop.permute.xlu0 %3354 }
0x1e98   :  { %v3360_v26 = vmul.f32 %v5037_v46, %v3355_v24  ;;  %v3357_v43 = vpop.permute.xlu1 %3356 }
0x1e99   :  { %v3361_v45 = vmul.f32 %v5039_v50, %v3357_v43 }
0x1e9a   :  { %v3364_v57 = vrot.slane %v3360_v26, 6 }
0x1e9b   :  { %v3365_v3 = vrot.slane %v3361_v45, 5 }
0x1e9d   :  { %v3366_v39 = vsel %vm904_vm6, %v3365_v3, %v3364_v57 }
0x1e9e   :  { %3367 = vrot.lane.b32.xlu1 %v3366_v39, %s5127_s2 }
0x1ed9   :  { %v3228_v41 = vpop.permute.xlu0 %3227 }
0x1eda   :  { %v3230_v35 = vmul.f32 %v5043_v36, %v3228_v41 }
0x1edc   :  { %v3969_v42 = vrot.slane %v3230_v35, %v5419_v20  ;;  %3442 = vrot.lane.b32.xlu0 %v3230_v35, %s5127_s2 }
0x1ede   :  { %v3970_v38 = vcombine.high %v3969_v42, %v3969_v42  ;;  %v3977_v52 = vrot.slane %v3969_v42, %v5419_v20 }
0x1ee0   :  { %v3984_v40 = vrot.slane %v3970_v38, %v5419_v20  ;;  %v4073_v15 = vrot.slane %v3977_v52, %v5255_v21 }
0x1ee2   :  { %v4077_v18 = vrot.slane %v3984_v40, %v5255_v21  ;;  %v6099_v51 = vsel %vm4111_vm10, %v6017_v7, %v4073_v15 }
0x1ee4   :  { %v6102_v46 = vsel %vm4111_vm10, %v6021_v9, %v4077_v18 }
0x1f10   :  { %v3368_v48 = vpop.permute.xlu1 %3367 }
0x1f11   :  { %4807 = vmatmul.mubr.msk.f32.vlgmr.msra.gmra.mxu1 %vm142_vm3, %v3368_v48 }
0x1f12   :  { %4821 = vmatpush3.msra.mxu1 %v5899_v25  ;;  %4828 = vmatprep.mubr.msk.f32.mxu1 %vm5128_vm5, %v5125_v34 }
0x1f13   :  { %4822 = vmatprep.subr.mxu1 %v5125_v34 }
0x1f14   :  { %4823 = vmatpush3.msra.mxu1 %v5908_v22 }
0x1f15   :  { %4824 = vmatprep.subr.mxu1 %v5125_v34 }
0x1f16   :  { %4825 = vmatpush3.msra.mxu1 %v5915_v23 }
0x1f17   :  { %4826 = vmatprep.subr.mxu1 %v5125_v34 }
0x1f18   :  { %4827 = vmatpush3.msra.mxu1 %v5922_v14 }
0x1f19   :  { %4829 = vmatmul.mubr.msk.f32.vlgmr.msra.gmra.mxu1 %vm142_vm3, %v3368_v48  ;;  %4842 = vmatprep.subr.mxu1 %v5125_v34 }
0x1f1a   :  { %4843 = vmatpush3.msra.mxu1 %v5930_v1  ;;  %4850 = vmatprep.mubr.msk.f32.mxu1 %vm5128_vm5, %v5125_v34 }
0x1f1b   :  { %4844 = vmatprep.subr.mxu1 %v5125_v34 }
0x1f1c   :  { %4845 = vmatpush3.msra.mxu1 %v5939_v62 }
0x1f1d   :  { %4846 = vmatprep.subr.mxu1 %v5125_v34 }
0x1f1e   :  { %4847 = vmatpush3.msra.mxu1 %v5946_v28 }
0x1f1f   :  { %4848 = vmatprep.subr.mxu1 %v5125_v34 }
0x1f20   :  { %4849 = vmatpush3.msra.mxu1 %v6046_v27 }
0x1f4e   :  { %v3443_v25 = vpop.permute.xlu0 %3442 }
0x1f4f   :  { %4818 = vmatmul.mubr.msk.f32.vlgmr.msra.gmra.mxu0 %vm142_vm3, %v3443_v25 }
0x1f50   :  { %4832 = vmatpush3.msra.mxu0 %v5956_v30  ;;  %4839 = vmatprep.mubr.msk.f32.mxu0 %vm5128_vm5, %v5125_v34 }
0x1f51   :  { %4833 = vmatprep.subr.mxu0 %v5125_v34 }
0x1f52   :  { %4834 = vmatpush3.msra.mxu0 %v5965_v49 }
0x1f53   :  { %4835 = vmatprep.subr.mxu0 %v5125_v34 }
0x1f54   :  { %4836 = vmatpush3.msra.mxu0 %v5972_v31 }
0x1f55   :  { %4837 = vmatprep.subr.mxu0 %v5125_v34 }
0x1f56   :  { %4838 = vmatpush3.msra.mxu0 %v5979_v32 }
0x1fd1   :  { %v3437_v22 = vpop.f32.mrf.mxu1 }
0x1fd2   :  { %v3438_v34 = vadd.f32 %v6068_v47, %v3437_v22 }
0x1fd3   :  { %v4808_v23 = vpop.f32.mrf.mxu1 }
0x1fd9   :  { %v3607_v14 = vpop.f32.mrf.mxu1 }
0x1fda   :  { %v3612_v1 = vrot.slane %v3607_v14, 1  ;;  %v3613_v62 = vrot.slane %v3607_v14, 2 }
0x1fdb   :  { %v4830_v28 = vpop.f32.mrf.mxu1 }
0x1fdc   :  { %v3616_v30 = vadd.f32 %v3612_v1, %v5540_v6  ;;  %v3617_v7 = vadd.f32 %v3613_v62, %v5537_v5 }
0x1fde   :  { %5050 = vtanh.f32 %v3616_v30  ;;  %v4288_v6 = vmul.f32 -1.442695, %v3616_v30  ;;  %v4289_v53 = vmul.f32 -1.442695, %v3617_v7 }
0x1fdf   :  { %5052 = vtanh.f32 %v3617_v7 }
0x1feb   :  { %v5051_v49 = vpop.eup %5050 }
0x1fec   :  { %v5053_v9 = vpop.eup %5052  ;;  %3642 = vrot.lane.b32.xlu1 %v5051_v49, %s5130_s20 }
0x1fed   :  { %3644 = vrot.lane.b32.xlu0 %v5053_v9, %s5130_s20 }
0x200f   :  { %v3512_v31 = vpop.f32.mrf.mxu0 }
0x2010   :  { %v3516_v32 = vadd.f32 %v3512_v31, %v3438_v34 }
0x2011   :  { %v4819_v27 = vpop.f32.mrf.mxu0 }
0x2012   :  { %5054 = vtanh.f32 %v3516_v32  ;;  %v4286_v63 = vmul.f32 -1.442695, %v3516_v32 }
0x2013   :  { %5056 = vpow2.f32 %v4288_v6 }
0x2014   :  { %5058 = vpow2.f32 %v4289_v53 }
0x201f   :  { %v5055_v50 = vpop.eup %5054 }
0x2020   :  { %3526 = vrot.lane.b32.xlu1 %v5055_v50, %s5130_s20  ;;  %v5057_v5 = vpop.eup %5056 }
0x2021   :  { %v5059_v55 = vpop.eup %5058  ;;  %v3624_v56 = vadd.f32 1.0, %v5057_v5 }
0x2022   :  { %v3625_v0 = vadd.f32 1.0, %v5059_v55 }
0x2023   :  { %5060 = vrcp.f32 %v3624_v56 }
0x2024   :  { %5062 = vrcp.f32 %v3625_v0 }
0x2025   :  { %5064 = vpow2.f32 %v4286_v63 }
0x2030   :  { %v5061_v2 = vpop.eup %5060 }
0x2031   :  { %v5063_v36 = vpop.eup %5062  ;;  %v3638_v29 = vmul.f32 %v5061_v2, %v3634_v10 }
0x2032   :  { %v5065_v4 = vpop.eup %5064  ;;  %v3639_v19 = vmul.f32 %v5063_v36, %v3635_v33 }
0x2033   :  { %v3520_v13 = vadd.f32 1.0, %v5065_v4 }
0x2035   :  { %5066 = vrcp.f32 %v3520_v13 }
0x2042   :  { %v5067_v37 = vpop.eup %5066 }
0x2043   :  { %v3524_v39 = vmul.f32 %v5067_v37, %v6086_v16 }
0x205e   :  { %v3643_v58 = vpop.permute.xlu1 %3642 }
0x205f   :  { %v3645_v59 = vpop.permute.xlu0 %3644  ;;  %v3648_v60 = vmul.f32 %v5061_v2, %v3643_v58 }
0x2060   :  { %v3649_v61 = vmul.f32 %v5063_v36, %v3645_v59 }
0x2061   :  { %3652 = vrot.lane.b32.xlu0 %v3648_v60, %s5130_s20 }
0x2062   :  { %3654 = vrot.lane.b32.xlu1 %v3649_v61, %s5130_s20 }
0x2092   :  { %v3527_v54 = vpop.permute.xlu1 %3526 }
0x2093   :  { %v3529_v8 = vmul.f32 %v5067_v37, %v3527_v54 }
0x2095   :  { %3531 = vrot.lane.b32.xlu0 %v3529_v8, %s5130_s20 }
0x20d3   :  { %v3653_v24 = vpop.permute.xlu0 %3652 }
0x20d4   :  { %v3655_v26 = vpop.permute.xlu1 %3654  ;;  %v3658_v43 = vadd.f32 %v3653_v24, %v3638_v29 }
0x20d5   :  { %v3659_v45 = vadd.f32 %v3655_v26, %v3639_v19 }
0x20d6   :  { %5068 = vtanh.f32 %v3658_v43 }
0x20d7   :  { %5070 = vtanh.f32 %v3659_v45 }
0x20e3   :  { %v5069_v57 = vpop.eup %5068 }
0x20e4   :  { %v5071_v3 = vpop.eup %5070  ;;  %3664 = vrot.lane.b32.xlu1 %v5069_v57, %s5130_s20 }
0x20e5   :  { %3666 = vrot.lane.b32.xlu0 %v5071_v3, %s5130_s20 }
0x2107   :  { %v3532_v41 = vpop.permute.xlu0 %3531 }
0x2108   :  { %v3534_v44 = vadd.f32 %v3532_v41, %v3524_v39 }
0x210a   :  { %5072 = vtanh.f32 %v3534_v44 }
0x2117   :  { %v5073_v17 = vpop.eup %5072 }
0x2118   :  { %3537 = vrot.lane.b32.xlu1 %v5073_v17, %s5130_s20 }
0x2156   :  { %v3665_v35 = vpop.permute.xlu1 %3664 }
0x2157   :  { %v3667_v42 = vpop.permute.xlu0 %3666  ;;  %v3670_v38 = vmul.f32 %v5061_v2, %v3665_v35 }
0x2158   :  { %v3671_v52 = vmul.f32 %v5063_v36, %v3667_v42 }
0x2159   :  { %v3674_v40 = vrot.slane %v3670_v38, 7 }
0x215a   :  { %v3675_v15 = vrot.slane %v3671_v52, 6 }
0x215c   :  { %v3676_v18 = vsel %vm904_vm6, %v3675_v15, %v3674_v40  ;;  %v4166_v15 = vand.u32 127, %v56_v11 }
0x215d   :  { %3677 = vrot.lane.b32.xlu0 %v3676_v18, %s5127_s2 }
0x215e   :  { %v4169_v18 = vsub.s32 %v4166_v15, %v5242_v12 }
0x218a   :  { %v3538_v48 = vpop.permute.xlu1 %3537 }
0x218b   :  { %v3540_v25 = vmul.f32 %v5067_v37, %v3538_v48 }
0x218d   :  { %v3991_v16 = vrot.slane %v3540_v25, %v5419_v20  ;;  %3752 = vrot.lane.b32.xlu1 %v3540_v25, %s5127_s2 }
0x218f   :  { %v3992_v22 = vcombine.high %v3991_v16, %v3991_v16  ;;  %v3999_v23 = vrot.slane %v3991_v16, %v5419_v20 }
0x2191   :  { %v4006_v14 = vrot.slane %v3992_v22, %v5419_v20  ;;  %v4083_v1 = vrot.slane %v3999_v23, %v5255_v21 }
0x2193   :  { %v4087_v62 = vrot.slane %v4006_v14, %v5255_v21  ;;  %v4115_v28 = vsel %vm4114_vm11, %v6099_v51, %v4083_v1 }
0x2195   :  { %v4116_v30 = vsel %vm4114_vm11, %v6102_v46, %v4087_v62 }
0x21cf   :  { %v3678_v7 = vpop.permute.xlu0 %3677 }
0x21d0   :  { %4840 = vmatmul.mubr.msk.f32.vlgmr.msra.gmra.mxu0 %vm142_vm3, %v3678_v7 }
0x21ff   :  { %v3753_v49 = vpop.permute.xlu1 %3752 }
0x2200   :  { %4851 = vmatmul.mubr.msk.f32.vlgmr.msra.gmra.mxu1 %vm142_vm3, %v3753_v49 }
0x2290   :  { %v3747_v9 = vpop.f32.mrf.mxu0 }
0x2291   :  { %v3748_v31 = vadd.f32 %v6068_v47, %v3747_v9  ;;  %v47_v47 = vld [vmem:[%s6196_s10 + $0x10] sm:$0xff] }
0x2292   :  { %v4841_v34 = vpop.f32.mrf.mxu0  ;;  %v4123_v0 = vrot.slane %v47_v47, %v5255_v21  ;;  %v4145_v63 = vrot.slane %v47_v47, 1 }
0x2294   :  { %4853 = vpush %v4145_v63 }
0x22c0   :  { %v3822_v32 = vpop.f32.mrf.mxu1 }
0x22c1   :  { %v3826_v27 = vadd.f32 %v3822_v32, %v3748_v31 }
0x22c2   :  { %v4852_v50 = vpop.f32.mrf.mxu1 }
0x22c3   :  { %5074 = vtanh.f32 %v3826_v27  ;;  %v4292_v51 = vmul.f32 -1.442695, %v3826_v27 }
0x22c5   :  { %5076 = vpow2.f32 %v4292_v51  ;;  %s4854_s10 = spop %4853 }
0x22c6   :  { %v4147_v3 = vstv %s4854_s10 }
0x22d0   :  { %v5075_v6 = vpop.eup %5074 }
0x22d1   :  { %3836 = vrot.lane.b32.xlu0 %v5075_v6, %s5130_s20 }
0x22d2   :  { %v5077_v46 = vpop.eup %5076 }
0x22d3   :  { %v3830_v53 = vadd.f32 1.0, %v5077_v46 }
0x22d5   :  { %5078 = vrcp.f32 %v3830_v53 }
0x22e2   :  { %v5079_v5 = vpop.eup %5078 }
0x22e3   :  { %v3834_v2 = vmul.f32 %v5079_v5, %v3534_v44 }
0x2343   :  { %v3837_v55 = vpop.permute.xlu0 %3836 }
0x2344   :  { %v3839_v56 = vmul.f32 %v5079_v5, %v3837_v55 }
0x2346   :  { %3841 = vrot.lane.b32.xlu1 %v3839_v56, %s5130_s20 }
0x234a   :  { %4125 = vrot.lane.b32.xlu1 %v4123_v0, %s5127_s2 }
0x23b8   :  { %v3842_v58 = vpop.permute.xlu1 %3841 }
0x23b9   :  { %v3844_v36 = vadd.f32 %v3842_v58, %v3834_v2 }
0x23bb   :  { %5080 = vtanh.f32 %v3844_v36 }
0x23bc   :  { %v4126_v10 = vpop.permute.xlu1 %4125 }
0x23c8   :  { %v5081_v59 = vpop.eup %5080 }
0x23c9   :  { %3847 = vrot.lane.b32.xlu0 %v5081_v59, %s5130_s20 }
0x243b   :  { %v3848_v60 = vpop.permute.xlu0 %3847 }
0x243c   :  { %v3850_v61 = vmul.f32 %v5079_v5, %v3848_v60 }
0x243e   :  { %v4014_v4 = vrot.slane %v3850_v61, %v5419_v20 }
0x2440   :  { %v4015_v13 = vcombine.high %v4014_v4, %v4014_v4  ;;  %v4022_v37 = vrot.slane %v4014_v4, %v5419_v20 }
0x2442   :  { %v4029_v54 = vrot.slane %v4015_v13, %v5419_v20  ;;  %v4093_v8 = vrot.slane %v4022_v37, %v5255_v21 }
0x2444   :  { %v4097_v33 = vrot.slane %v4029_v54, %v5255_v21  ;;  %v4118_v29 = vsel %vm4117_vm12, %v4115_v28, %v4093_v8 }
0x2445   :  { %v4128_v19 = vmul.f32 %v4126_v10, %v4118_v29 }
0x2446   :  { %v4119_v24 = vsel %vm4117_vm12, %v4116_v30, %v4097_v33 }
0x2447   :  { %v4129_v26 = vmul.f32 %v4126_v10, %v4119_v24  ;;  %4132 = vrot.lane.b32.xlu0 %v4128_v19, %s5127_s2 }
0x2449   :  { %4134 = vrot.lane.b32.xlu1 %v4129_v26, %s5127_s2  ;;  %s5131_s2 = smov [#allocation2]  }
0x244a   :  { %s4185_s20 = sshll.u32 %s5131_s2, 4  ;;  %s4186_s20 = int_to_ptr.vmem [resolvable:$true] %s4185_s20 }
0x244b   :  { %s5103_s15 = scalar_lea.vmem %s4186_s20, 32  ;;  %p5108_p1 = scmp.lt.s32.totalorder %s4186_s20, %s4186_s20 }
0x244c   :  { %p5104_p0 = scmp.ne.s32.totalorder %s4186_s20, %s5103_s15  ;;  %p5109_p2 = scmp.lt.s32.totalorder %s5103_s15, %s5103_s15 }
0x244e   :  { %p5110_p3 = por %p5109_p2, %p5108_p1 }
0x2450   :  { %p5111_p4 = pnand %p5110_p3, %p5104_p0 }
0x24b9   :  { %v4133_v43 = vpop.permute.xlu0 %4132 }
0x24ba   :  { %v4138_v45 = vsel %vm142_vm3, %v4133_v43, 0.0 }
0x24bb   :  { %4139 = vadd.xlane.f32.xlu0 %v4138_v45  ;;  %v4135_v57 = vpop.permute.xlu1 %4134 }
0x24bc   :  { %v4141_v20 = vsel %vm142_vm3, %v4135_v57, 0.0 }
0x24bd   :  { %4142 = vadd.xlane.f32.xlu1 %v4141_v20 }
0x2544   :  { %v4140_v39 = vpop.xlane.xlu0 %4139 }
0x2545   :  { %v4149_v21 = vadd.f32 %v4147_v3, %v4140_v39 }
0x2546   :  { %v4143_v41 = vpop.xlane.xlu1 %4142 }
0x2547   :  { %v4293_v44 = vmul.f32 -1.442695, %v4149_v21  ;;  %v4150_v17 = vadd.f32 %v4147_v3, %v4143_v41 }
0x2549   :  { %5082 = vpow2.f32 %v4293_v44  ;;  %v4294_v35 = vmul.f32 -1.442695, %v4150_v17 }
0x254b   :  { %5084 = vpow2.f32 %v4294_v35 }
0x2556   :  { %v5083_v42 = vpop.eup %5082 }
0x2557   :  { %v4157_v38 = vadd.f32 1.0, %v5083_v42 }
0x2558   :  { %v5085_v52 = vpop.eup %5084 }
0x2559   :  { %5086 = vrcp.f32 %v4157_v38  ;;  %v4158_v40 = vadd.f32 1.0, %v5085_v52 }
0x255b   :  { %5088 = vrcp.f32 %v4158_v40 }
0x2566   :  { %v5087_v48 = vpop.eup %5086 }
0x2567   :  { %v4170_v16 = vrot.slane %v5087_v48, %v4169_v18 }
0x2568   :  { %v5089_v25 = vpop.eup %5088 }
0x2569   :  { %v4174_v22 = vrot.slane %v5089_v25, %v4169_v18 }
0x256b   :  { %v4175_v23 = vsel %vm904_vm6, %v4174_v22, %v4170_v16 }
0x256c   :  { %4178 = vst.msk [vmem:[#allocation2] sm:$0x3] %vm4177_vm13, %v4175_v23 }
0x256d   :  { %5114 = shalt.err (!%p5111_p4)
}
0x256e   :  { %4188 = dma.vmem_to_hbm [thread:$0]  %s4186_s20, 32, %s6199_s13, [#allocation3]  }
0x256f   :  { %5123 = dma.done.wait [#allocation3], 32  }
0x2570   :  { %5124 = vsyncadd [#allocation3], 4294967264 }
0x2571   :  { %4192 = vsyncpa [#allocation3], 1 }

</bundles_post_ra>
